<compile_context>
chip_gen: v5e
topology: v5e:2x2
jax: 0.10.0
libtpu: 0.0.40
codegen_flags: <defaults>
</compile_context>

<pallas_src>
import functools
import math

import jax
import jax.numpy as jnp
from jax.experimental import pallas as pl
from jax.experimental.pallas import tpu as pltpu

num_heads = 4
num_layers = 2

_PARAM_ORDER = (
    "in_w", "in_b", "pos_enc",
    "enc_wqkv", "enc_bqkv", "enc_wo", "enc_bo", "enc_ln1",
    "enc_w1", "enc_b1", "enc_w2", "enc_b2", "enc_ln2",
    "enc_lnf",
    "dec_sa_wqkv", "dec_sa_bqkv", "dec_sa_wo", "dec_sa_bo", "dec_ln1",
    "dec_ca_wq", "dec_ca_bq", "dec_ca_wkv", "dec_ca_bkv", "dec_ca_wo",
    "dec_ca_bo", "dec_ln2",
    "dec_w1", "dec_b1", "dec_w2", "dec_b2", "dec_ln3",
    "dec_lnf",
    "fc_w", "fc_b",
)


# ------------------------------ fused kernel ------------------------------

def _tst_kernel(
    x_ref,
    in_w, in_b, pos_enc,
    enc_wqkv, enc_bqkv, enc_wo, enc_bo, enc_ln1,
    enc_w1, enc_b1, enc_w2, enc_b2, enc_ln2,
    enc_lnf,
    dec_sa_wqkv, dec_sa_bqkv, dec_sa_wo, dec_sa_bo, dec_ln1,
    dec_ca_wq, dec_ca_bq, dec_ca_wkv, dec_ca_bkv, dec_ca_wo, dec_ca_bo, dec_ln2,
    dec_w1, dec_b1, dec_w2, dec_b2, dec_ln3,
    dec_lnf,
    fc_w, fc_b,
    o_ref,
    *, nheads, n_layers, d_model,
):
    f32 = jnp.float32
    D = d_model
    Dh = D // nheads
    scale = 1.0 / math.sqrt(Dh)

    def dense(x, w, b, relu=False):
        y = jnp.dot(x, w, preferred_element_type=f32) + b
        if relu:
            y = jnp.maximum(y, 0.0)
        return y

    def ln(x, ln2d, eps=1e-5):
        # Residual add is done by the caller (x is already the residual sum).
        g = ln2d[0:1, :]
        b = ln2d[1:2, :]
        mean = jnp.mean(x, axis=-1, keepdims=True)
        var = jnp.mean(jnp.square(x - mean), axis=-1, keepdims=True)
        return (x - mean) * jax.lax.rsqrt(var + eps) * g + b

    def softmax(s):
        m = jnp.max(s, axis=-1, keepdims=True)
        p = jnp.exp(s - m)
        return p * pl.reciprocal(jnp.sum(p, axis=-1, keepdims=True), approx=True)

    def mha(q, k, v):
        # q:(Sq,D)  k,v:(Sk,D).  Static head loop on the VMEM tile.
        outs = []
        for h in range(nheads):
            lo, hi = h * Dh, (h + 1) * Dh
            qh, kh, vh = q[:, lo:hi], k[:, lo:hi], v[:, lo:hi]
            s = jax.lax.dot_general(
                qh, kh, (((1,), (1,)), ((), ())),
                preferred_element_type=f32) * scale          # (Sq, Sk)
            p = softmax(s)
            outs.append(jnp.dot(p, vh, preferred_element_type=f32))
        return jnp.concatenate(outs, axis=-1)                # (Sq, D)

    # ---- input projection + positional encoding (fused) ----
    x = x_ref[...].astype(f32)                               # (S, input_dim)
    S = x.shape[0]
    h0 = dense(x, in_w[...], in_b[...]) + pos_enc[...]       # (S, D)

    # ---- encoder stack (post-norm) ----
    mem = h0
    for l in range(n_layers):
        qkv = dense(mem, enc_wqkv[l], enc_bqkv[l])           # (S, 3D)
        attn = mha(qkv[:, :D], qkv[:, D:2 * D], qkv[:, 2 * D:])
        attn = dense(attn, enc_wo[l], enc_bo[l])
        mem = ln(mem + attn, enc_ln1[l])
        ffn = dense(mem, enc_w1[l], enc_b1[l], relu=True)    # (S, 4D) stays in VMEM
        ffn = dense(ffn, enc_w2[l], enc_b2[l])
        mem = ln(mem + ffn, enc_ln2[l])
    mem = ln(mem, enc_lnf[...])                              # encoder final norm

    # ---- decoder stack (post-norm; no tgt mask: nn.Transformer default) ----
    out = h0
    for l in range(n_layers):
        # self-attention
        qkv = dense(out, dec_sa_wqkv[l], dec_sa_bqkv[l])
        sa = mha(qkv[:, :D], qkv[:, D:2 * D], qkv[:, 2 * D:])
        sa = dense(sa, dec_sa_wo[l], dec_sa_bo[l])
        out = ln(out + sa, dec_ln1[l])
        # cross-attention (K/V from encoder memory, fused KV projection)
        q = dense(out, dec_ca_wq[l], dec_ca_bq[l])
        kv = dense(mem, dec_ca_wkv[l], dec_ca_bkv[l])        # (S, 2D)
        ca = mha(q, kv[:, :D], kv[:, D:])
        ca = dense(ca, dec_ca_wo[l], dec_ca_bo[l])
        out = ln(out + ca, dec_ln2[l])
        # feed-forward
        ffn = dense(out, dec_w1[l], dec_b1[l], relu=True)
        ffn = dense(ffn, dec_w2[l], dec_b2[l])
        out = ln(out + ffn, dec_ln3[l])
    out = ln(out, dec_lnf[...])                              # decoder final norm

    # ---- final fc on the last time step only ----
    last = out[S - 1:S, :]                                   # (1, D)
    o_ref[...] = dense(last, fc_w[...], fc_b[...]).astype(o_ref.dtype)


# ------------------------------ wrapper ------------------------------

def _replicated_spec(arr):
    nd = arr.ndim
    return pl.BlockSpec(arr.shape, lambda b, _nd=nd: (0,) * _nd)


def tst_forward(x, params):
    B, S, input_dim = x.shape
    D = params["pos_enc"].shape[-1]
    F = params["enc_w1"].shape[-1]
    out_dim = params["fc_w"].shape[-1]

    weights = [params[name] for name in _PARAM_ORDER]

    in_specs = [pl.BlockSpec((None, S, input_dim), lambda b: (b, 0, 0))]
    in_specs += [_replicated_spec(a) for a in weights]

    kernel = functools.partial(
        _tst_kernel, nheads=num_heads, n_layers=num_layers, d_model=D)

    # Advisory cost estimate for the XLA scheduler.
    n_attn = num_layers * 3  # enc-self + dec-self + dec-cross
    flops_b = (2 * S * input_dim * D
               + num_layers * 2 * (2 * S * D * 3 * D + 2 * S * D * D + 4 * S * D * F)
               + num_layers * (2 * S * D * D + 2 * S * D * 2 * D + 2 * S * D * D)
               + n_attn * 4 * S * S * D
               + 2 * D * out_dim)
    cost = pl.CostEstimate(
        flops=int(B * flops_b),
        transcendentals=int(B * n_attn * S * S),
        bytes_accessed=int(4 * (x.size + sum(a.size for a in weights) + B * out_dim)),
    )

    out = pl.pallas_call(
        kernel,
        out_shape=jax.ShapeDtypeStruct((B, 1, out_dim), x.dtype),
        grid=(B,),
        in_specs=in_specs,
        out_specs=pl.BlockSpec((None, 1, out_dim), lambda b: (b, 0, 0)),
        compiler_params=pltpu.CompilerParams(
            dimension_semantics=("parallel",),   # one batch element per TensorCore
        ),
        cost_estimate=cost,
    )(x, *weights)
    return out.reshape(B, out_dim)


# ------------------------------ pure-JAX reference ------------------------------

def _ref_forward(x, params):
    D = params["pos_enc"].shape[-1]
    H = num_heads
    Dh = D // H
    scale = 1.0 / math.sqrt(Dh)

    def dense(t, w, b, relu=False):
        y = t @ w + b
        return jnp.maximum(y, 0.0) if relu else y

    def ln(t, ln2d, eps=1e-5):
        g, b = ln2d[0], ln2d[1]
        mean = jnp.mean(t, -1, keepdims=True)
        var = jnp.mean(jnp.square(t - mean), -1, keepdims=True)
        return (t - mean) * jax.lax.rsqrt(var + eps) * g + b

    def mha(q, k, v):
        B, Sq, _ = q.shape
        Sk = k.shape[1]
        qh = q.reshape(B, Sq, H, Dh).transpose(0, 2, 1, 3)
        kh = k.reshape(B, Sk, H, Dh).transpose(0, 2, 1, 3)
        vh = v.reshape(B, Sk, H, Dh).transpose(0, 2, 1, 3)
        s = jnp.einsum("bhqd,bhkd->bhqk", qh, kh) * scale
        p = jax.nn.softmax(s, axis=-1)
        o = jnp.einsum("bhqk,bhkd->bhqd", p, vh)
        return o.transpose(0, 2, 1, 3).reshape(B, Sq, D)

    p = params
    h0 = dense(x, p["in_w"], p["in_b"]) + p["pos_enc"][None]

    mem = h0
    for l in range(num_layers):
        qkv = dense(mem, p["enc_wqkv"][l], p["enc_bqkv"][l])
        attn = mha(qkv[..., :D], qkv[..., D:2 * D], qkv[..., 2 * D:])
        attn = dense(attn, p["enc_wo"][l], p["enc_bo"][l])
        mem = ln(mem + attn, p["enc_ln1"][l])
        ffn = dense(mem, p["enc_w1"][l], p["enc_b1"][l], relu=True)
        ffn = dense(ffn, p["enc_w2"][l], p["enc_b2"][l])
        mem = ln(mem + ffn, p["enc_ln2"][l])
    mem = ln(mem, p["enc_lnf"])

    out = h0
    for l in range(num_layers):
        qkv = dense(out, p["dec_sa_wqkv"][l], p["dec_sa_bqkv"][l])
        sa = mha(qkv[..., :D], qkv[..., D:2 * D], qkv[..., 2 * D:])
        sa = dense(sa, p["dec_sa_wo"][l], p["dec_sa_bo"][l])
        out = ln(out + sa, p["dec_ln1"][l])
        q = dense(out, p["dec_ca_wq"][l], p["dec_ca_bq"][l])
        kv = dense(mem, p["dec_ca_wkv"][l], p["dec_ca_bkv"][l])
        ca = mha(q, kv[..., :D], kv[..., D:])
        ca = dense(ca, p["dec_ca_wo"][l], p["dec_ca_bo"][l])
        out = ln(out + ca, p["dec_ln2"][l])
        ffn = dense(out, p["dec_w1"][l], p["dec_b1"][l], relu=True)
        ffn = dense(ffn, p["dec_w2"][l], p["dec_b2"][l])
        out = ln(out + ffn, p["dec_ln3"][l])
    out = ln(out, p["dec_lnf"])

    return dense(out[:, -1, :], p["fc_w"], p["fc_b"])


# ------------------------------ parameter init ------------------------------

def init_params(key, input_dim, hidden_dim, n_layers, nheads, output_dim, seq_len):
    keys = iter(jax.random.split(key, 256))

    def w(shape, scale=0.02):
        return (scale * jax.random.normal(next(keys), shape)).astype(jnp.float32)

    zeros = lambda shape: jnp.zeros(shape, jnp.float32)
    D, F = hidden_dim, 4 * hidden_dim

    def stack_w(shape, scale=0.02):
        return jnp.stack([w(shape, scale) for _ in range(n_layers)], axis=0)

    def ln_pair():  # (2, D): [gamma; beta]
        return jnp.stack([jnp.ones((D,), jnp.float32),
                          jnp.zeros((D,), jnp.float32)], axis=0)

    def stack_ln():
        return jnp.stack([ln_pair() for _ in range(n_layers)], axis=0)

    return dict(
        in_w=w((input_dim, D)), in_b=zeros((1, D)),
        pos_enc=w((seq_len, D), scale=1.0),
        # encoder layers (stacked over L)
        enc_wqkv=stack_w((D, 3 * D)), enc_bqkv=zeros((n_layers, 1, 3 * D)),
        enc_wo=stack_w((D, D)), enc_bo=zeros((n_layers, 1, D)),
        enc_ln1=stack_ln(),
        enc_w1=stack_w((D, F)), enc_b1=zeros((n_layers, 1, F)),
        enc_w2=stack_w((F, D)), enc_b2=zeros((n_layers, 1, D)),
        enc_ln2=stack_ln(),
        enc_lnf=ln_pair(),
        # decoder layers (stacked over L)
        dec_sa_wqkv=stack_w((D, 3 * D)), dec_sa_bqkv=zeros((n_layers, 1, 3 * D)),
        dec_sa_wo=stack_w((D, D)), dec_sa_bo=zeros((n_layers, 1, D)),
        dec_ln1=stack_ln(),
        dec_ca_wq=stack_w((D, D)), dec_ca_bq=zeros((n_layers, 1, D)),
        dec_ca_wkv=stack_w((D, 2 * D)), dec_ca_bkv=zeros((n_layers, 1, 2 * D)),
        dec_ca_wo=stack_w((D, D)), dec_ca_bo=zeros((n_layers, 1, D)),
        dec_ln2=stack_ln(),
        dec_w1=stack_w((D, F)), dec_b1=zeros((n_layers, 1, F)),
        dec_w2=stack_w((F, D)), dec_b2=zeros((n_layers, 1, D)),
        dec_ln3=stack_ln(),
        dec_lnf=ln_pair(),
        fc_w=w((D, output_dim)), fc_b=zeros((1, output_dim)),
    )


# ------------------------------ main ------------------------------

if __name__ == "__main__":
    input_dim, hidden_dim, output_dim, seq_len = 4, 32, 4, 8
    batch = 2

    key = jax.random.PRNGKey(0)
    pkey, xkey = jax.random.split(key)
    params = init_params(pkey, input_dim, hidden_dim, num_layers, num_heads,
                         output_dim, seq_len)
    x = jax.random.normal(xkey, (batch, seq_len, input_dim), dtype=jnp.float32)

    fwd = jax.jit(tst_forward)
    out = jax.block_until_ready(fwd(x, params))
    assert out.shape == (batch, output_dim), out.shape
    assert bool(jnp.all(jnp.isfinite(out)))

    # Numerical check against a pure-JAX reference (approx reciprocal in the
    # kernel's softmax => loose-ish tolerance).
    ref = jax.block_until_ready(_ref_forward(x, params))
    assert bool(jnp.allclose(out, ref, rtol=1e-2, atol=1e-2)), (
        float(jnp.max(jnp.abs(out - ref))))

    print("KERNEL_OK")
</pallas_src>

<mosaic_0001>
module attributes {stable_mosaic.version = 11 : i64} {
  func.func @_tst_kernel(%arg0: i32, %arg1: memref<1x8x4xf32, #tpu.memory_space<vmem>>, %arg2: memref<4x32xf32, #tpu.memory_space<vmem>>, %arg3: memref<1x32xf32, #tpu.memory_space<vmem>>, %arg4: memref<8x32xf32, #tpu.memory_space<vmem>>, %arg5: memref<2x32x96xf32, #tpu.memory_space<vmem>>, %arg6: memref<2x1x96xf32, #tpu.memory_space<vmem>>, %arg7: memref<2x32x32xf32, #tpu.memory_space<vmem>>, %arg8: memref<2x1x32xf32, #tpu.memory_space<vmem>>, %arg9: memref<2x2x32xf32, #tpu.memory_space<vmem>>, %arg10: memref<2x32x128xf32, #tpu.memory_space<vmem>>, %arg11: memref<2x1x128xf32, #tpu.memory_space<vmem>>, %arg12: memref<2x128x32xf32, #tpu.memory_space<vmem>>, %arg13: memref<2x1x32xf32, #tpu.memory_space<vmem>>, %arg14: memref<2x2x32xf32, #tpu.memory_space<vmem>>, %arg15: memref<2x32xf32, #tpu.memory_space<vmem>>, %arg16: memref<2x32x96xf32, #tpu.memory_space<vmem>>, %arg17: memref<2x1x96xf32, #tpu.memory_space<vmem>>, %arg18: memref<2x32x32xf32, #tpu.memory_space<vmem>>, %arg19: memref<2x1x32xf32, #tpu.memory_space<vmem>>, %arg20: memref<2x2x32xf32, #tpu.memory_space<vmem>>, %arg21: memref<2x32x32xf32, #tpu.memory_space<vmem>>, %arg22: memref<2x1x32xf32, #tpu.memory_space<vmem>>, %arg23: memref<2x32x64xf32, #tpu.memory_space<vmem>>, %arg24: memref<2x1x64xf32, #tpu.memory_space<vmem>>, %arg25: memref<2x32x32xf32, #tpu.memory_space<vmem>>, %arg26: memref<2x1x32xf32, #tpu.memory_space<vmem>>, %arg27: memref<2x2x32xf32, #tpu.memory_space<vmem>>, %arg28: memref<2x32x128xf32, #tpu.memory_space<vmem>>, %arg29: memref<2x1x128xf32, #tpu.memory_space<vmem>>, %arg30: memref<2x128x32xf32, #tpu.memory_space<vmem>>, %arg31: memref<2x1x32xf32, #tpu.memory_space<vmem>>, %arg32: memref<2x2x32xf32, #tpu.memory_space<vmem>>, %arg33: memref<2x32xf32, #tpu.memory_space<vmem>>, %arg34: memref<32x4xf32, #tpu.memory_space<vmem>>, %arg35: memref<1x4xf32, #tpu.memory_space<vmem>>, %arg36: memref<1x1x4xf32, #tpu.memory_space<vmem>>) attributes {dimension_semantics = [#tpu.dimension_semantics<parallel>], iteration_bounds = array<i64: 2>, scalar_prefetch = 0 : i64, scratch_operands = 0 : i64, tpu.core_type = #tpu.core_type<tc>, window_params = [{transform_indices = @transform_0, window_bounds = array<i64: 1, 8, 4>}, {pipeline_mode = #tpu.pipeline_mode<synchronous>, transform_indices = @transform_1, window_bounds = array<i64: 4, 32>}, {pipeline_mode = #tpu.pipeline_mode<synchronous>, transform_indices = @transform_2, window_bounds = array<i64: 1, 32>}, {pipeline_mode = #tpu.pipeline_mode<synchronous>, transform_indices = @transform_3, window_bounds = array<i64: 8, 32>}, {pipeline_mode = #tpu.pipeline_mode<synchronous>, transform_indices = @transform_4, window_bounds = array<i64: 2, 32, 96>}, {pipeline_mode = #tpu.pipeline_mode<synchronous>, transform_indices = @transform_5, window_bounds = array<i64: 2, 1, 96>}, {pipeline_mode = #tpu.pipeline_mode<synchronous>, transform_indices = @transform_6, window_bounds = array<i64: 2, 32, 32>}, {pipeline_mode = #tpu.pipeline_mode<synchronous>, transform_indices = @transform_7, window_bounds = array<i64: 2, 1, 32>}, {pipeline_mode = #tpu.pipeline_mode<synchronous>, transform_indices = @transform_8, window_bounds = array<i64: 2, 2, 32>}, {pipeline_mode = #tpu.pipeline_mode<synchronous>, transform_indices = @transform_9, window_bounds = array<i64: 2, 32, 128>}, {pipeline_mode = #tpu.pipeline_mode<synchronous>, transform_indices = @transform_10, window_bounds = array<i64: 2, 1, 128>}, {pipeline_mode = #tpu.pipeline_mode<synchronous>, transform_indices = @transform_11, window_bounds = array<i64: 2, 128, 32>}, {pipeline_mode = #tpu.pipeline_mode<synchronous>, transform_indices = @transform_12, window_bounds = array<i64: 2, 1, 32>}, {pipeline_mode = #tpu.pipeline_mode<synchronous>, transform_indices = @transform_13, window_bounds = array<i64: 2, 2, 32>}, {pipeline_mode = #tpu.pipeline_mode<synchronous>, transform_indices = @transform_14, window_bounds = array<i64: 2, 32>}, {pipeline_mode = #tpu.pipeline_mode<synchronous>, transform_indices = @transform_15, window_bounds = array<i64: 2, 32, 96>}, {pipeline_mode = #tpu.pipeline_mode<synchronous>, transform_indices = @transform_16, window_bounds = array<i64: 2, 1, 96>}, {pipeline_mode = #tpu.pipeline_mode<synchronous>, transform_indices = @transform_17, window_bounds = array<i64: 2, 32, 32>}, {pipeline_mode = #tpu.pipeline_mode<synchronous>, transform_indices = @transform_18, window_bounds = array<i64: 2, 1, 32>}, {pipeline_mode = #tpu.pipeline_mode<synchronous>, transform_indices = @transform_19, window_bounds = array<i64: 2, 2, 32>}, {pipeline_mode = #tpu.pipeline_mode<synchronous>, transform_indices = @transform_20, window_bounds = array<i64: 2, 32, 32>}, {pipeline_mode = #tpu.pipeline_mode<synchronous>, transform_indices = @transform_21, window_bounds = array<i64: 2, 1, 32>}, {pipeline_mode = #tpu.pipeline_mode<synchronous>, transform_indices = @transform_22, window_bounds = array<i64: 2, 32, 64>}, {pipeline_mode = #tpu.pipeline_mode<synchronous>, transform_indices = @transform_23, window_bounds = array<i64: 2, 1, 64>}, {pipeline_mode = #tpu.pipeline_mode<synchronous>, transform_indices = @transform_24, window_bounds = array<i64: 2, 32, 32>}, {pipeline_mode = #tpu.pipeline_mode<synchronous>, transform_indices = @transform_25, window_bounds = array<i64: 2, 1, 32>}, {pipeline_mode = #tpu.pipeline_mode<synchronous>, transform_indices = @transform_26, window_bounds = array<i64: 2, 2, 32>}, {pipeline_mode = #tpu.pipeline_mode<synchronous>, transform_indices = @transform_27, window_bounds = array<i64: 2, 32, 128>}, {pipeline_mode = #tpu.pipeline_mode<synchronous>, transform_indices = @transform_28, window_bounds = array<i64: 2, 1, 128>}, {pipeline_mode = #tpu.pipeline_mode<synchronous>, transform_indices = @transform_29, window_bounds = array<i64: 2, 128, 32>}, {pipeline_mode = #tpu.pipeline_mode<synchronous>, transform_indices = @transform_30, window_bounds = array<i64: 2, 1, 32>}, {pipeline_mode = #tpu.pipeline_mode<synchronous>, transform_indices = @transform_31, window_bounds = array<i64: 2, 2, 32>}, {pipeline_mode = #tpu.pipeline_mode<synchronous>, transform_indices = @transform_32, window_bounds = array<i64: 2, 32>}, {pipeline_mode = #tpu.pipeline_mode<synchronous>, transform_indices = @transform_33, window_bounds = array<i64: 32, 4>}, {pipeline_mode = #tpu.pipeline_mode<synchronous>, transform_indices = @transform_34, window_bounds = array<i64: 1, 4>}, {transform_indices = @transform_35, window_bounds = array<i64: 1, 1, 4>}]} {
    %c0 = arith.constant 0 : index
    %c0_0 = arith.constant 0 : index
    %c0_1 = arith.constant 0 : index
    %0 = vector.load %arg1[%c0, %c0_0, %c0_1] : memref<1x8x4xf32, #tpu.memory_space<vmem>>, vector<1x8x4xf32>
    %1 = vector.shape_cast %0 : vector<1x8x4xf32> to vector<8x4xf32>
    %c0_2 = arith.constant 0 : index
    %c0_3 = arith.constant 0 : index
    %2 = vector.load %arg2[%c0_2, %c0_3] : memref<4x32xf32, #tpu.memory_space<vmem>>, vector<4x32xf32>
    %c0_4 = arith.constant 0 : index
    %c0_5 = arith.constant 0 : index
    %3 = vector.load %arg3[%c0_4, %c0_5] : memref<1x32xf32, #tpu.memory_space<vmem>>, vector<1x32xf32>
    %cst = arith.constant dense<0.000000e+00> : vector<8x32xf32>
    %4 = tpu.matmul %1, %2, %cst {dimension_numbers = #tpu.dot_dimension_numbers<[1], [0], [0], [1], [0, 0, 1, 1], [], []>} : vector<8x4xf32>, vector<4x32xf32>, vector<8x32xf32> -> vector<8x32xf32>
    %5 = vector.broadcast %3 : vector<1x32xf32> to vector<8x32xf32>
    %6 = arith.addf %4, %5 : vector<8x32xf32>
    %c0_6 = arith.constant 0 : index
    %c0_7 = arith.constant 0 : index
    %7 = vector.load %arg4[%c0_6, %c0_7] : memref<8x32xf32, #tpu.memory_space<vmem>>, vector<8x32xf32>
    %8 = arith.addf %6, %7 : vector<8x32xf32>
    %c0_8 = arith.constant 0 : index
    %c0_9 = arith.constant 0 : index
    %c0_10 = arith.constant 0 : index
    %9 = vector.load %arg5[%c0_8, %c0_9, %c0_10] : memref<2x32x96xf32, #tpu.memory_space<vmem>>, vector<1x32x96xf32>
    %10 = vector.shape_cast %9 : vector<1x32x96xf32> to vector<32x96xf32>
    %c0_11 = arith.constant 0 : index
    %c0_12 = arith.constant 0 : index
    %c0_13 = arith.constant 0 : index
    %11 = vector.load %arg6[%c0_11, %c0_12, %c0_13] : memref<2x1x96xf32, #tpu.memory_space<vmem>>, vector<1x1x96xf32>
    %12 = vector.shape_cast %11 : vector<1x1x96xf32> to vector<1x96xf32>
    %cst_14 = arith.constant dense<0.000000e+00> : vector<8x96xf32>
    %13 = tpu.matmul %8, %10, %cst_14 {dimension_numbers = #tpu.dot_dimension_numbers<[1], [0], [0], [1], [0, 0, 1, 1], [], []>} : vector<8x32xf32>, vector<32x96xf32>, vector<8x96xf32> -> vector<8x96xf32>
    %14 = vector.broadcast %12 : vector<1x96xf32> to vector<8x96xf32>
    %15 = arith.addf %13, %14 : vector<8x96xf32>
    %16 = vector.extract_strided_slice %15 {offsets = [0, 0], sizes = [8, 32], strides = [1, 1]} : vector<8x96xf32> to vector<8x32xf32>
    %17 = vector.extract_strided_slice %15 {offsets = [0, 32], sizes = [8, 32], strides = [1, 1]} : vector<8x96xf32> to vector<8x32xf32>
    %18 = vector.extract_strided_slice %15 {offsets = [0, 64], sizes = [8, 32], strides = [1, 1]} : vector<8x96xf32> to vector<8x32xf32>
    %19 = vector.extract_strided_slice %16 {offsets = [0, 0], sizes = [8, 8], strides = [1, 1]} : vector<8x32xf32> to vector<8x8xf32>
    %20 = vector.extract_strided_slice %17 {offsets = [0, 0], sizes = [8, 8], strides = [1, 1]} : vector<8x32xf32> to vector<8x8xf32>
    %21 = vector.extract_strided_slice %18 {offsets = [0, 0], sizes = [8, 8], strides = [1, 1]} : vector<8x32xf32> to vector<8x8xf32>
    %cst_15 = arith.constant dense<0.000000e+00> : vector<8x8xf32>
    %22 = tpu.matmul %19, %20, %cst_15 {dimension_numbers = #tpu.dot_dimension_numbers<[1], [1], [0], [0], [0, 0, 1, 0], [], []>} : vector<8x8xf32>, vector<8x8xf32>, vector<8x8xf32> -> vector<8x8xf32>
    %cst_16 = arith.constant 0.353553385 : f32
    %23 = vector.broadcast %cst_16 : f32 to vector<8x8xf32>
    %24 = arith.mulf %22, %23 : vector<8x8xf32>
    %cst_17 = arith.constant dense<0xFF800000> : vector<8xf32>
    %25 = vector.multi_reduction <maximumf>, %24, %cst_17 [1] : vector<8x8xf32> to vector<8xf32>
    %26 = vector.shape_cast %25 : vector<8xf32> to vector<8x1xf32>
    %27 = vector.broadcast %26 : vector<8x1xf32> to vector<8x8xf32>
    %28 = arith.subf %24, %27 : vector<8x8xf32>
    %29 = math.exp %28 : vector<8x8xf32>
    %cst_18 = arith.constant dense<0.000000e+00> : vector<8xf32>
    %30 = vector.multi_reduction <add>, %29, %cst_18 [1] : vector<8x8xf32> to vector<8xf32>
    %31 = vector.shape_cast %30 : vector<8xf32> to vector<8x1xf32>
    %32 = tpu.reciprocal %31 {approx = true} : vector<8x1xf32> -> vector<8x1xf32>
    %33 = vector.broadcast %32 : vector<8x1xf32> to vector<8x8xf32>
    %34 = arith.mulf %29, %33 : vector<8x8xf32>
    %cst_19 = arith.constant dense<0.000000e+00> : vector<8x8xf32>
    %35 = tpu.matmul %34, %21, %cst_19 {dimension_numbers = #tpu.dot_dimension_numbers<[1], [0], [0], [1], [0, 0, 1, 1], [], []>} : vector<8x8xf32>, vector<8x8xf32>, vector<8x8xf32> -> vector<8x8xf32>
    %36 = vector.extract_strided_slice %16 {offsets = [0, 8], sizes = [8, 8], strides = [1, 1]} : vector<8x32xf32> to vector<8x8xf32>
    %37 = vector.extract_strided_slice %17 {offsets = [0, 8], sizes = [8, 8], strides = [1, 1]} : vector<8x32xf32> to vector<8x8xf32>
    %38 = vector.extract_strided_slice %18 {offsets = [0, 8], sizes = [8, 8], strides = [1, 1]} : vector<8x32xf32> to vector<8x8xf32>
    %cst_20 = arith.constant dense<0.000000e+00> : vector<8x8xf32>
    %39 = tpu.matmul %36, %37, %cst_20 {dimension_numbers = #tpu.dot_dimension_numbers<[1], [1], [0], [0], [0, 0, 1, 0], [], []>} : vector<8x8xf32>, vector<8x8xf32>, vector<8x8xf32> -> vector<8x8xf32>
    %cst_21 = arith.constant 0.353553385 : f32
    %40 = vector.broadcast %cst_21 : f32 to vector<8x8xf32>
    %41 = arith.mulf %39, %40 : vector<8x8xf32>
    %cst_22 = arith.constant dense<0xFF800000> : vector<8xf32>
    %42 = vector.multi_reduction <maximumf>, %41, %cst_22 [1] : vector<8x8xf32> to vector<8xf32>
    %43 = vector.shape_cast %42 : vector<8xf32> to vector<8x1xf32>
    %44 = vector.broadcast %43 : vector<8x1xf32> to vector<8x8xf32>
    %45 = arith.subf %41, %44 : vector<8x8xf32>
    %46 = math.exp %45 : vector<8x8xf32>
    %cst_23 = arith.constant dense<0.000000e+00> : vector<8xf32>
    %47 = vector.multi_reduction <add>, %46, %cst_23 [1] : vector<8x8xf32> to vector<8xf32>
    %48 = vector.shape_cast %47 : vector<8xf32> to vector<8x1xf32>
    %49 = tpu.reciprocal %48 {approx = true} : vector<8x1xf32> -> vector<8x1xf32>
    %50 = vector.broadcast %49 : vector<8x1xf32> to vector<8x8xf32>
    %51 = arith.mulf %46, %50 : vector<8x8xf32>
    %cst_24 = arith.constant dense<0.000000e+00> : vector<8x8xf32>
    %52 = tpu.matmul %51, %38, %cst_24 {dimension_numbers = #tpu.dot_dimension_numbers<[1], [0], [0], [1], [0, 0, 1, 1], [], []>} : vector<8x8xf32>, vector<8x8xf32>, vector<8x8xf32> -> vector<8x8xf32>
    %53 = vector.extract_strided_slice %16 {offsets = [0, 16], sizes = [8, 8], strides = [1, 1]} : vector<8x32xf32> to vector<8x8xf32>
    %54 = vector.extract_strided_slice %17 {offsets = [0, 16], sizes = [8, 8], strides = [1, 1]} : vector<8x32xf32> to vector<8x8xf32>
    %55 = vector.extract_strided_slice %18 {offsets = [0, 16], sizes = [8, 8], strides = [1, 1]} : vector<8x32xf32> to vector<8x8xf32>
    %cst_25 = arith.constant dense<0.000000e+00> : vector<8x8xf32>
    %56 = tpu.matmul %53, %54, %cst_25 {dimension_numbers = #tpu.dot_dimension_numbers<[1], [1], [0], [0], [0, 0, 1, 0], [], []>} : vector<8x8xf32>, vector<8x8xf32>, vector<8x8xf32> -> vector<8x8xf32>
    %cst_26 = arith.constant 0.353553385 : f32
    %57 = vector.broadcast %cst_26 : f32 to vector<8x8xf32>
    %58 = arith.mulf %56, %57 : vector<8x8xf32>
    %cst_27 = arith.constant dense<0xFF800000> : vector<8xf32>
    %59 = vector.multi_reduction <maximumf>, %58, %cst_27 [1] : vector<8x8xf32> to vector<8xf32>
    %60 = vector.shape_cast %59 : vector<8xf32> to vector<8x1xf32>
    %61 = vector.broadcast %60 : vector<8x1xf32> to vector<8x8xf32>
    %62 = arith.subf %58, %61 : vector<8x8xf32>
    %63 = math.exp %62 : vector<8x8xf32>
    %cst_28 = arith.constant dense<0.000000e+00> : vector<8xf32>
    %64 = vector.multi_reduction <add>, %63, %cst_28 [1] : vector<8x8xf32> to vector<8xf32>
    %65 = vector.shape_cast %64 : vector<8xf32> to vector<8x1xf32>
    %66 = tpu.reciprocal %65 {approx = true} : vector<8x1xf32> -> vector<8x1xf32>
    %67 = vector.broadcast %66 : vector<8x1xf32> to vector<8x8xf32>
    %68 = arith.mulf %63, %67 : vector<8x8xf32>
    %cst_29 = arith.constant dense<0.000000e+00> : vector<8x8xf32>
    %69 = tpu.matmul %68, %55, %cst_29 {dimension_numbers = #tpu.dot_dimension_numbers<[1], [0], [0], [1], [0, 0, 1, 1], [], []>} : vector<8x8xf32>, vector<8x8xf32>, vector<8x8xf32> -> vector<8x8xf32>
    %70 = vector.extract_strided_slice %16 {offsets = [0, 24], sizes = [8, 8], strides = [1, 1]} : vector<8x32xf32> to vector<8x8xf32>
    %71 = vector.extract_strided_slice %17 {offsets = [0, 24], sizes = [8, 8], strides = [1, 1]} : vector<8x32xf32> to vector<8x8xf32>
    %72 = vector.extract_strided_slice %18 {offsets = [0, 24], sizes = [8, 8], strides = [1, 1]} : vector<8x32xf32> to vector<8x8xf32>
    %cst_30 = arith.constant dense<0.000000e+00> : vector<8x8xf32>
    %73 = tpu.matmul %70, %71, %cst_30 {dimension_numbers = #tpu.dot_dimension_numbers<[1], [1], [0], [0], [0, 0, 1, 0], [], []>} : vector<8x8xf32>, vector<8x8xf32>, vector<8x8xf32> -> vector<8x8xf32>
    %cst_31 = arith.constant 0.353553385 : f32
    %74 = vector.broadcast %cst_31 : f32 to vector<8x8xf32>
    %75 = arith.mulf %73, %74 : vector<8x8xf32>
    %cst_32 = arith.constant dense<0xFF800000> : vector<8xf32>
    %76 = vector.multi_reduction <maximumf>, %75, %cst_32 [1] : vector<8x8xf32> to vector<8xf32>
    %77 = vector.shape_cast %76 : vector<8xf32> to vector<8x1xf32>
    %78 = vector.broadcast %77 : vector<8x1xf32> to vector<8x8xf32>
    %79 = arith.subf %75, %78 : vector<8x8xf32>
    %80 = math.exp %79 : vector<8x8xf32>
    %cst_33 = arith.constant dense<0.000000e+00> : vector<8xf32>
    %81 = vector.multi_reduction <add>, %80, %cst_33 [1] : vector<8x8xf32> to vector<8xf32>
    %82 = vector.shape_cast %81 : vector<8xf32> to vector<8x1xf32>
    %83 = tpu.reciprocal %82 {approx = true} : vector<8x1xf32> -> vector<8x1xf32>
    %84 = vector.broadcast %83 : vector<8x1xf32> to vector<8x8xf32>
    %85 = arith.mulf %80, %84 : vector<8x8xf32>
    %cst_34 = arith.constant dense<0.000000e+00> : vector<8x8xf32>
    %86 = tpu.matmul %85, %72, %cst_34 {dimension_numbers = #tpu.dot_dimension_numbers<[1], [0], [0], [1], [0, 0, 1, 1], [], []>} : vector<8x8xf32>, vector<8x8xf32>, vector<8x8xf32> -> vector<8x8xf32>
    %87 = tpu.concatenate %35, %52, %69, %86 in 1 : vector<8x8xf32>, vector<8x8xf32>, vector<8x8xf32>, vector<8x8xf32> -> vector<8x32xf32>
    %c0_35 = arith.constant 0 : index
    %c0_36 = arith.constant 0 : index
    %c0_37 = arith.constant 0 : index
    %88 = vector.load %arg7[%c0_35, %c0_36, %c0_37] : memref<2x32x32xf32, #tpu.memory_space<vmem>>, vector<1x32x32xf32>
    %89 = vector.shape_cast %88 : vector<1x32x32xf32> to vector<32x32xf32>
    %c0_38 = arith.constant 0 : index
    %c0_39 = arith.constant 0 : index
    %c0_40 = arith.constant 0 : index
    %90 = vector.load %arg8[%c0_38, %c0_39, %c0_40] : memref<2x1x32xf32, #tpu.memory_space<vmem>>, vector<1x1x32xf32>
    %91 = vector.shape_cast %90 : vector<1x1x32xf32> to vector<1x32xf32>
    %cst_41 = arith.constant dense<0.000000e+00> : vector<8x32xf32>
    %92 = tpu.matmul %87, %89, %cst_41 {dimension_numbers = #tpu.dot_dimension_numbers<[1], [0], [0], [1], [0, 0, 1, 1], [], []>} : vector<8x32xf32>, vector<32x32xf32>, vector<8x32xf32> -> vector<8x32xf32>
    %93 = vector.broadcast %91 : vector<1x32xf32> to vector<8x32xf32>
    %94 = arith.addf %92, %93 : vector<8x32xf32>
    %95 = arith.addf %8, %94 : vector<8x32xf32>
    %c0_42 = arith.constant 0 : index
    %c0_43 = arith.constant 0 : index
    %c0_44 = arith.constant 0 : index
    %96 = vector.load %arg9[%c0_42, %c0_43, %c0_44] : memref<2x2x32xf32, #tpu.memory_space<vmem>>, vector<1x2x32xf32>
    %97 = vector.shape_cast %96 : vector<1x2x32xf32> to vector<2x32xf32>
    %98 = vector.extract_strided_slice %97 {offsets = [0, 0], sizes = [1, 32], strides = [1, 1]} : vector<2x32xf32> to vector<1x32xf32>
    %99 = vector.extract_strided_slice %97 {offsets = [1, 0], sizes = [1, 32], strides = [1, 1]} : vector<2x32xf32> to vector<1x32xf32>
    %cst_45 = arith.constant dense<0.000000e+00> : vector<8xf32>
    %100 = vector.multi_reduction <add>, %95, %cst_45 [1] : vector<8x32xf32> to vector<8xf32>
    %101 = vector.shape_cast %100 : vector<8xf32> to vector<8x1xf32>
    %cst_46 = arith.constant 3.200000e+01 : f32
    %102 = vector.broadcast %cst_46 : f32 to vector<8x1xf32>
    %103 = arith.divf %101, %102 : vector<8x1xf32>
    %104 = vector.broadcast %103 : vector<8x1xf32> to vector<8x32xf32>
    %105 = arith.subf %95, %104 : vector<8x32xf32>
    %106 = arith.mulf %105, %105 : vector<8x32xf32>
    %cst_47 = arith.constant dense<0.000000e+00> : vector<8xf32>
    %107 = vector.multi_reduction <add>, %106, %cst_47 [1] : vector<8x32xf32> to vector<8xf32>
    %108 = vector.shape_cast %107 : vector<8xf32> to vector<8x1xf32>
    %cst_48 = arith.constant 3.200000e+01 : f32
    %109 = vector.broadcast %cst_48 : f32 to vector<8x1xf32>
    %110 = arith.divf %108, %109 : vector<8x1xf32>
    %111 = vector.broadcast %103 : vector<8x1xf32> to vector<8x32xf32>
    %112 = arith.subf %95, %111 : vector<8x32xf32>
    %cst_49 = arith.constant 9.99999974E-6 : f32
    %113 = vector.broadcast %cst_49 : f32 to vector<8x1xf32>
    %114 = arith.addf %110, %113 : vector<8x1xf32>
    %115 = math.rsqrt %114 : vector<8x1xf32>
    %116 = vector.broadcast %115 : vector<8x1xf32> to vector<8x32xf32>
    %117 = arith.mulf %112, %116 : vector<8x32xf32>
    %118 = vector.broadcast %98 : vector<1x32xf32> to vector<8x32xf32>
    %119 = arith.mulf %117, %118 : vector<8x32xf32>
    %120 = vector.broadcast %99 : vector<1x32xf32> to vector<8x32xf32>
    %121 = arith.addf %119, %120 : vector<8x32xf32>
    %c0_50 = arith.constant 0 : index
    %c0_51 = arith.constant 0 : index
    %c0_52 = arith.constant 0 : index
    %122 = vector.load %arg10[%c0_50, %c0_51, %c0_52] : memref<2x32x128xf32, #tpu.memory_space<vmem>>, vector<1x32x128xf32>
    %123 = vector.shape_cast %122 : vector<1x32x128xf32> to vector<32x128xf32>
    %c0_53 = arith.constant 0 : index
    %c0_54 = arith.constant 0 : index
    %c0_55 = arith.constant 0 : index
    %124 = vector.load %arg11[%c0_53, %c0_54, %c0_55] : memref<2x1x128xf32, #tpu.memory_space<vmem>>, vector<1x1x128xf32>
    %125 = vector.shape_cast %124 : vector<1x1x128xf32> to vector<1x128xf32>
    %cst_56 = arith.constant dense<0.000000e+00> : vector<8x128xf32>
    %126 = tpu.matmul %121, %123, %cst_56 {dimension_numbers = #tpu.dot_dimension_numbers<[1], [0], [0], [1], [0, 0, 1, 1], [], []>} : vector<8x32xf32>, vector<32x128xf32>, vector<8x128xf32> -> vector<8x128xf32>
    %127 = vector.broadcast %125 : vector<1x128xf32> to vector<8x128xf32>
    %128 = arith.addf %126, %127 : vector<8x128xf32>
    %cst_57 = arith.constant 0.000000e+00 : f32
    %129 = vector.broadcast %cst_57 : f32 to vector<8x128xf32>
    %130 = arith.maximumf %128, %129 : vector<8x128xf32>
    %c0_58 = arith.constant 0 : index
    %c0_59 = arith.constant 0 : index
    %c0_60 = arith.constant 0 : index
    %131 = vector.load %arg12[%c0_58, %c0_59, %c0_60] : memref<2x128x32xf32, #tpu.memory_space<vmem>>, vector<1x128x32xf32>
    %132 = vector.shape_cast %131 : vector<1x128x32xf32> to vector<128x32xf32>
    %c0_61 = arith.constant 0 : index
    %c0_62 = arith.constant 0 : index
    %c0_63 = arith.constant 0 : index
    %133 = vector.load %arg13[%c0_61, %c0_62, %c0_63] : memref<2x1x32xf32, #tpu.memory_space<vmem>>, vector<1x1x32xf32>
    %134 = vector.shape_cast %133 : vector<1x1x32xf32> to vector<1x32xf32>
    %cst_64 = arith.constant dense<0.000000e+00> : vector<8x32xf32>
    %135 = tpu.matmul %130, %132, %cst_64 {dimension_numbers = #tpu.dot_dimension_numbers<[1], [0], [0], [1], [0, 0, 1, 1], [], []>} : vector<8x128xf32>, vector<128x32xf32>, vector<8x32xf32> -> vector<8x32xf32>
    %136 = vector.broadcast %134 : vector<1x32xf32> to vector<8x32xf32>
    %137 = arith.addf %135, %136 : vector<8x32xf32>
    %138 = arith.addf %121, %137 : vector<8x32xf32>
    %c0_65 = arith.constant 0 : index
    %c0_66 = arith.constant 0 : index
    %c0_67 = arith.constant 0 : index
    %139 = vector.load %arg14[%c0_65, %c0_66, %c0_67] : memref<2x2x32xf32, #tpu.memory_space<vmem>>, vector<1x2x32xf32>
    %140 = vector.shape_cast %139 : vector<1x2x32xf32> to vector<2x32xf32>
    %141 = vector.extract_strided_slice %140 {offsets = [0, 0], sizes = [1, 32], strides = [1, 1]} : vector<2x32xf32> to vector<1x32xf32>
    %142 = vector.extract_strided_slice %140 {offsets = [1, 0], sizes = [1, 32], strides = [1, 1]} : vector<2x32xf32> to vector<1x32xf32>
    %cst_68 = arith.constant dense<0.000000e+00> : vector<8xf32>
    %143 = vector.multi_reduction <add>, %138, %cst_68 [1] : vector<8x32xf32> to vector<8xf32>
    %144 = vector.shape_cast %143 : vector<8xf32> to vector<8x1xf32>
    %cst_69 = arith.constant 3.200000e+01 : f32
    %145 = vector.broadcast %cst_69 : f32 to vector<8x1xf32>
    %146 = arith.divf %144, %145 : vector<8x1xf32>
    %147 = vector.broadcast %146 : vector<8x1xf32> to vector<8x32xf32>
    %148 = arith.subf %138, %147 : vector<8x32xf32>
    %149 = arith.mulf %148, %148 : vector<8x32xf32>
    %cst_70 = arith.constant dense<0.000000e+00> : vector<8xf32>
    %150 = vector.multi_reduction <add>, %149, %cst_70 [1] : vector<8x32xf32> to vector<8xf32>
    %151 = vector.shape_cast %150 : vector<8xf32> to vector<8x1xf32>
    %cst_71 = arith.constant 3.200000e+01 : f32
    %152 = vector.broadcast %cst_71 : f32 to vector<8x1xf32>
    %153 = arith.divf %151, %152 : vector<8x1xf32>
    %154 = vector.broadcast %146 : vector<8x1xf32> to vector<8x32xf32>
    %155 = arith.subf %138, %154 : vector<8x32xf32>
    %cst_72 = arith.constant 9.99999974E-6 : f32
    %156 = vector.broadcast %cst_72 : f32 to vector<8x1xf32>
    %157 = arith.addf %153, %156 : vector<8x1xf32>
    %158 = math.rsqrt %157 : vector<8x1xf32>
    %159 = vector.broadcast %158 : vector<8x1xf32> to vector<8x32xf32>
    %160 = arith.mulf %155, %159 : vector<8x32xf32>
    %161 = vector.broadcast %141 : vector<1x32xf32> to vector<8x32xf32>
    %162 = arith.mulf %160, %161 : vector<8x32xf32>
    %163 = vector.broadcast %142 : vector<1x32xf32> to vector<8x32xf32>
    %164 = arith.addf %162, %163 : vector<8x32xf32>
    %c1 = arith.constant 1 : index
    %c0_73 = arith.constant 0 : index
    %c0_74 = arith.constant 0 : index
    %165 = vector.load %arg5[%c1, %c0_73, %c0_74] : memref<2x32x96xf32, #tpu.memory_space<vmem>>, vector<1x32x96xf32>
    %166 = vector.shape_cast %165 : vector<1x32x96xf32> to vector<32x96xf32>
    %c1_75 = arith.constant 1 : index
    %c0_76 = arith.constant 0 : index
    %c0_77 = arith.constant 0 : index
    %167 = vector.load %arg6[%c1_75, %c0_76, %c0_77] : memref<2x1x96xf32, #tpu.memory_space<vmem>>, vector<1x1x96xf32>
    %168 = vector.shape_cast %167 : vector<1x1x96xf32> to vector<1x96xf32>
    %cst_78 = arith.constant dense<0.000000e+00> : vector<8x96xf32>
    %169 = tpu.matmul %164, %166, %cst_78 {dimension_numbers = #tpu.dot_dimension_numbers<[1], [0], [0], [1], [0, 0, 1, 1], [], []>} : vector<8x32xf32>, vector<32x96xf32>, vector<8x96xf32> -> vector<8x96xf32>
    %170 = vector.broadcast %168 : vector<1x96xf32> to vector<8x96xf32>
    %171 = arith.addf %169, %170 : vector<8x96xf32>
    %172 = vector.extract_strided_slice %171 {offsets = [0, 0], sizes = [8, 32], strides = [1, 1]} : vector<8x96xf32> to vector<8x32xf32>
    %173 = vector.extract_strided_slice %171 {offsets = [0, 32], sizes = [8, 32], strides = [1, 1]} : vector<8x96xf32> to vector<8x32xf32>
    %174 = vector.extract_strided_slice %171 {offsets = [0, 64], sizes = [8, 32], strides = [1, 1]} : vector<8x96xf32> to vector<8x32xf32>
    %175 = vector.extract_strided_slice %172 {offsets = [0, 0], sizes = [8, 8], strides = [1, 1]} : vector<8x32xf32> to vector<8x8xf32>
    %176 = vector.extract_strided_slice %173 {offsets = [0, 0], sizes = [8, 8], strides = [1, 1]} : vector<8x32xf32> to vector<8x8xf32>
    %177 = vector.extract_strided_slice %174 {offsets = [0, 0], sizes = [8, 8], strides = [1, 1]} : vector<8x32xf32> to vector<8x8xf32>
    %cst_79 = arith.constant dense<0.000000e+00> : vector<8x8xf32>
    %178 = tpu.matmul %175, %176, %cst_79 {dimension_numbers = #tpu.dot_dimension_numbers<[1], [1], [0], [0], [0, 0, 1, 0], [], []>} : vector<8x8xf32>, vector<8x8xf32>, vector<8x8xf32> -> vector<8x8xf32>
    %cst_80 = arith.constant 0.353553385 : f32
    %179 = vector.broadcast %cst_80 : f32 to vector<8x8xf32>
    %180 = arith.mulf %178, %179 : vector<8x8xf32>
    %cst_81 = arith.constant dense<0xFF800000> : vector<8xf32>
    %181 = vector.multi_reduction <maximumf>, %180, %cst_81 [1] : vector<8x8xf32> to vector<8xf32>
    %182 = vector.shape_cast %181 : vector<8xf32> to vector<8x1xf32>
    %183 = vector.broadcast %182 : vector<8x1xf32> to vector<8x8xf32>
    %184 = arith.subf %180, %183 : vector<8x8xf32>
    %185 = math.exp %184 : vector<8x8xf32>
    %cst_82 = arith.constant dense<0.000000e+00> : vector<8xf32>
    %186 = vector.multi_reduction <add>, %185, %cst_82 [1] : vector<8x8xf32> to vector<8xf32>
    %187 = vector.shape_cast %186 : vector<8xf32> to vector<8x1xf32>
    %188 = tpu.reciprocal %187 {approx = true} : vector<8x1xf32> -> vector<8x1xf32>
    %189 = vector.broadcast %188 : vector<8x1xf32> to vector<8x8xf32>
    %190 = arith.mulf %185, %189 : vector<8x8xf32>
    %cst_83 = arith.constant dense<0.000000e+00> : vector<8x8xf32>
    %191 = tpu.matmul %190, %177, %cst_83 {dimension_numbers = #tpu.dot_dimension_numbers<[1], [0], [0], [1], [0, 0, 1, 1], [], []>} : vector<8x8xf32>, vector<8x8xf32>, vector<8x8xf32> -> vector<8x8xf32>
    %192 = vector.extract_strided_slice %172 {offsets = [0, 8], sizes = [8, 8], strides = [1, 1]} : vector<8x32xf32> to vector<8x8xf32>
    %193 = vector.extract_strided_slice %173 {offsets = [0, 8], sizes = [8, 8], strides = [1, 1]} : vector<8x32xf32> to vector<8x8xf32>
    %194 = vector.extract_strided_slice %174 {offsets = [0, 8], sizes = [8, 8], strides = [1, 1]} : vector<8x32xf32> to vector<8x8xf32>
    %cst_84 = arith.constant dense<0.000000e+00> : vector<8x8xf32>
    %195 = tpu.matmul %192, %193, %cst_84 {dimension_numbers = #tpu.dot_dimension_numbers<[1], [1], [0], [0], [0, 0, 1, 0], [], []>} : vector<8x8xf32>, vector<8x8xf32>, vector<8x8xf32> -> vector<8x8xf32>
    %cst_85 = arith.constant 0.353553385 : f32
    %196 = vector.broadcast %cst_85 : f32 to vector<8x8xf32>
    %197 = arith.mulf %195, %196 : vector<8x8xf32>
    %cst_86 = arith.constant dense<0xFF800000> : vector<8xf32>
    %198 = vector.multi_reduction <maximumf>, %197, %cst_86 [1] : vector<8x8xf32> to vector<8xf32>
    %199 = vector.shape_cast %198 : vector<8xf32> to vector<8x1xf32>
    %200 = vector.broadcast %199 : vector<8x1xf32> to vector<8x8xf32>
    %201 = arith.subf %197, %200 : vector<8x8xf32>
    %202 = math.exp %201 : vector<8x8xf32>
    %cst_87 = arith.constant dense<0.000000e+00> : vector<8xf32>
    %203 = vector.multi_reduction <add>, %202, %cst_87 [1] : vector<8x8xf32> to vector<8xf32>
    %204 = vector.shape_cast %203 : vector<8xf32> to vector<8x1xf32>
    %205 = tpu.reciprocal %204 {approx = true} : vector<8x1xf32> -> vector<8x1xf32>
    %206 = vector.broadcast %205 : vector<8x1xf32> to vector<8x8xf32>
    %207 = arith.mulf %202, %206 : vector<8x8xf32>
    %cst_88 = arith.constant dense<0.000000e+00> : vector<8x8xf32>
    %208 = tpu.matmul %207, %194, %cst_88 {dimension_numbers = #tpu.dot_dimension_numbers<[1], [0], [0], [1], [0, 0, 1, 1], [], []>} : vector<8x8xf32>, vector<8x8xf32>, vector<8x8xf32> -> vector<8x8xf32>
    %209 = vector.extract_strided_slice %172 {offsets = [0, 16], sizes = [8, 8], strides = [1, 1]} : vector<8x32xf32> to vector<8x8xf32>
    %210 = vector.extract_strided_slice %173 {offsets = [0, 16], sizes = [8, 8], strides = [1, 1]} : vector<8x32xf32> to vector<8x8xf32>
    %211 = vector.extract_strided_slice %174 {offsets = [0, 16], sizes = [8, 8], strides = [1, 1]} : vector<8x32xf32> to vector<8x8xf32>
    %cst_89 = arith.constant dense<0.000000e+00> : vector<8x8xf32>
    %212 = tpu.matmul %209, %210, %cst_89 {dimension_numbers = #tpu.dot_dimension_numbers<[1], [1], [0], [0], [0, 0, 1, 0], [], []>} : vector<8x8xf32>, vector<8x8xf32>, vector<8x8xf32> -> vector<8x8xf32>
    %cst_90 = arith.constant 0.353553385 : f32
    %213 = vector.broadcast %cst_90 : f32 to vector<8x8xf32>
    %214 = arith.mulf %212, %213 : vector<8x8xf32>
    %cst_91 = arith.constant dense<0xFF800000> : vector<8xf32>
    %215 = vector.multi_reduction <maximumf>, %214, %cst_91 [1] : vector<8x8xf32> to vector<8xf32>
    %216 = vector.shape_cast %215 : vector<8xf32> to vector<8x1xf32>
    %217 = vector.broadcast %216 : vector<8x1xf32> to vector<8x8xf32>
    %218 = arith.subf %214, %217 : vector<8x8xf32>
    %219 = math.exp %218 : vector<8x8xf32>
    %cst_92 = arith.constant dense<0.000000e+00> : vector<8xf32>
    %220 = vector.multi_reduction <add>, %219, %cst_92 [1] : vector<8x8xf32> to vector<8xf32>
    %221 = vector.shape_cast %220 : vector<8xf32> to vector<8x1xf32>
    %222 = tpu.reciprocal %221 {approx = true} : vector<8x1xf32> -> vector<8x1xf32>
    %223 = vector.broadcast %222 : vector<8x1xf32> to vector<8x8xf32>
    %224 = arith.mulf %219, %223 : vector<8x8xf32>
    %cst_93 = arith.constant dense<0.000000e+00> : vector<8x8xf32>
    %225 = tpu.matmul %224, %211, %cst_93 {dimension_numbers = #tpu.dot_dimension_numbers<[1], [0], [0], [1], [0, 0, 1, 1], [], []>} : vector<8x8xf32>, vector<8x8xf32>, vector<8x8xf32> -> vector<8x8xf32>
    %226 = vector.extract_strided_slice %172 {offsets = [0, 24], sizes = [8, 8], strides = [1, 1]} : vector<8x32xf32> to vector<8x8xf32>
    %227 = vector.extract_strided_slice %173 {offsets = [0, 24], sizes = [8, 8], strides = [1, 1]} : vector<8x32xf32> to vector<8x8xf32>
    %228 = vector.extract_strided_slice %174 {offsets = [0, 24], sizes = [8, 8], strides = [1, 1]} : vector<8x32xf32> to vector<8x8xf32>
    %cst_94 = arith.constant dense<0.000000e+00> : vector<8x8xf32>
    %229 = tpu.matmul %226, %227, %cst_94 {dimension_numbers = #tpu.dot_dimension_numbers<[1], [1], [0], [0], [0, 0, 1, 0], [], []>} : vector<8x8xf32>, vector<8x8xf32>, vector<8x8xf32> -> vector<8x8xf32>
    %cst_95 = arith.constant 0.353553385 : f32
    %230 = vector.broadcast %cst_95 : f32 to vector<8x8xf32>
    %231 = arith.mulf %229, %230 : vector<8x8xf32>
    %cst_96 = arith.constant dense<0xFF800000> : vector<8xf32>
    %232 = vector.multi_reduction <maximumf>, %231, %cst_96 [1] : vector<8x8xf32> to vector<8xf32>
    %233 = vector.shape_cast %232 : vector<8xf32> to vector<8x1xf32>
    %234 = vector.broadcast %233 : vector<8x1xf32> to vector<8x8xf32>
    %235 = arith.subf %231, %234 : vector<8x8xf32>
    %236 = math.exp %235 : vector<8x8xf32>
    %cst_97 = arith.constant dense<0.000000e+00> : vector<8xf32>
    %237 = vector.multi_reduction <add>, %236, %cst_97 [1] : vector<8x8xf32> to vector<8xf32>
    %238 = vector.shape_cast %237 : vector<8xf32> to vector<8x1xf32>
    %239 = tpu.reciprocal %238 {approx = true} : vector<8x1xf32> -> vector<8x1xf32>
    %240 = vector.broadcast %239 : vector<8x1xf32> to vector<8x8xf32>
    %241 = arith.mulf %236, %240 : vector<8x8xf32>
    %cst_98 = arith.constant dense<0.000000e+00> : vector<8x8xf32>
    %242 = tpu.matmul %241, %228, %cst_98 {dimension_numbers = #tpu.dot_dimension_numbers<[1], [0], [0], [1], [0, 0, 1, 1], [], []>} : vector<8x8xf32>, vector<8x8xf32>, vector<8x8xf32> -> vector<8x8xf32>
    %243 = tpu.concatenate %191, %208, %225, %242 in 1 : vector<8x8xf32>, vector<8x8xf32>, vector<8x8xf32>, vector<8x8xf32> -> vector<8x32xf32>
    %c1_99 = arith.constant 1 : index
    %c0_100 = arith.constant 0 : index
    %c0_101 = arith.constant 0 : index
    %244 = vector.load %arg7[%c1_99, %c0_100, %c0_101] : memref<2x32x32xf32, #tpu.memory_space<vmem>>, vector<1x32x32xf32>
    %245 = vector.shape_cast %244 : vector<1x32x32xf32> to vector<32x32xf32>
    %c1_102 = arith.constant 1 : index
    %c0_103 = arith.constant 0 : index
    %c0_104 = arith.constant 0 : index
    %246 = vector.load %arg8[%c1_102, %c0_103, %c0_104] : memref<2x1x32xf32, #tpu.memory_space<vmem>>, vector<1x1x32xf32>
    %247 = vector.shape_cast %246 : vector<1x1x32xf32> to vector<1x32xf32>
    %cst_105 = arith.constant dense<0.000000e+00> : vector<8x32xf32>
    %248 = tpu.matmul %243, %245, %cst_105 {dimension_numbers = #tpu.dot_dimension_numbers<[1], [0], [0], [1], [0, 0, 1, 1], [], []>} : vector<8x32xf32>, vector<32x32xf32>, vector<8x32xf32> -> vector<8x32xf32>
    %249 = vector.broadcast %247 : vector<1x32xf32> to vector<8x32xf32>
    %250 = arith.addf %248, %249 : vector<8x32xf32>
    %251 = arith.addf %164, %250 : vector<8x32xf32>
    %c1_106 = arith.constant 1 : index
    %c0_107 = arith.constant 0 : index
    %c0_108 = arith.constant 0 : index
    %252 = vector.load %arg9[%c1_106, %c0_107, %c0_108] : memref<2x2x32xf32, #tpu.memory_space<vmem>>, vector<1x2x32xf32>
    %253 = vector.shape_cast %252 : vector<1x2x32xf32> to vector<2x32xf32>
    %254 = vector.extract_strided_slice %253 {offsets = [0, 0], sizes = [1, 32], strides = [1, 1]} : vector<2x32xf32> to vector<1x32xf32>
    %255 = vector.extract_strided_slice %253 {offsets = [1, 0], sizes = [1, 32], strides = [1, 1]} : vector<2x32xf32> to vector<1x32xf32>
    %cst_109 = arith.constant dense<0.000000e+00> : vector<8xf32>
    %256 = vector.multi_reduction <add>, %251, %cst_109 [1] : vector<8x32xf32> to vector<8xf32>
    %257 = vector.shape_cast %256 : vector<8xf32> to vector<8x1xf32>
    %cst_110 = arith.constant 3.200000e+01 : f32
    %258 = vector.broadcast %cst_110 : f32 to vector<8x1xf32>
    %259 = arith.divf %257, %258 : vector<8x1xf32>
    %260 = vector.broadcast %259 : vector<8x1xf32> to vector<8x32xf32>
    %261 = arith.subf %251, %260 : vector<8x32xf32>
    %262 = arith.mulf %261, %261 : vector<8x32xf32>
    %cst_111 = arith.constant dense<0.000000e+00> : vector<8xf32>
    %263 = vector.multi_reduction <add>, %262, %cst_111 [1] : vector<8x32xf32> to vector<8xf32>
    %264 = vector.shape_cast %263 : vector<8xf32> to vector<8x1xf32>
    %cst_112 = arith.constant 3.200000e+01 : f32
    %265 = vector.broadcast %cst_112 : f32 to vector<8x1xf32>
    %266 = arith.divf %264, %265 : vector<8x1xf32>
    %267 = vector.broadcast %259 : vector<8x1xf32> to vector<8x32xf32>
    %268 = arith.subf %251, %267 : vector<8x32xf32>
    %cst_113 = arith.constant 9.99999974E-6 : f32
    %269 = vector.broadcast %cst_113 : f32 to vector<8x1xf32>
    %270 = arith.addf %266, %269 : vector<8x1xf32>
    %271 = math.rsqrt %270 : vector<8x1xf32>
    %272 = vector.broadcast %271 : vector<8x1xf32> to vector<8x32xf32>
    %273 = arith.mulf %268, %272 : vector<8x32xf32>
    %274 = vector.broadcast %254 : vector<1x32xf32> to vector<8x32xf32>
    %275 = arith.mulf %273, %274 : vector<8x32xf32>
    %276 = vector.broadcast %255 : vector<1x32xf32> to vector<8x32xf32>
    %277 = arith.addf %275, %276 : vector<8x32xf32>
    %c1_114 = arith.constant 1 : index
    %c0_115 = arith.constant 0 : index
    %c0_116 = arith.constant 0 : index
    %278 = vector.load %arg10[%c1_114, %c0_115, %c0_116] : memref<2x32x128xf32, #tpu.memory_space<vmem>>, vector<1x32x128xf32>
    %279 = vector.shape_cast %278 : vector<1x32x128xf32> to vector<32x128xf32>
    %c1_117 = arith.constant 1 : index
    %c0_118 = arith.constant 0 : index
    %c0_119 = arith.constant 0 : index
    %280 = vector.load %arg11[%c1_117, %c0_118, %c0_119] : memref<2x1x128xf32, #tpu.memory_space<vmem>>, vector<1x1x128xf32>
    %281 = vector.shape_cast %280 : vector<1x1x128xf32> to vector<1x128xf32>
    %cst_120 = arith.constant dense<0.000000e+00> : vector<8x128xf32>
    %282 = tpu.matmul %277, %279, %cst_120 {dimension_numbers = #tpu.dot_dimension_numbers<[1], [0], [0], [1], [0, 0, 1, 1], [], []>} : vector<8x32xf32>, vector<32x128xf32>, vector<8x128xf32> -> vector<8x128xf32>
    %283 = vector.broadcast %281 : vector<1x128xf32> to vector<8x128xf32>
    %284 = arith.addf %282, %283 : vector<8x128xf32>
    %cst_121 = arith.constant 0.000000e+00 : f32
    %285 = vector.broadcast %cst_121 : f32 to vector<8x128xf32>
    %286 = arith.maximumf %284, %285 : vector<8x128xf32>
    %c1_122 = arith.constant 1 : index
    %c0_123 = arith.constant 0 : index
    %c0_124 = arith.constant 0 : index
    %287 = vector.load %arg12[%c1_122, %c0_123, %c0_124] : memref<2x128x32xf32, #tpu.memory_space<vmem>>, vector<1x128x32xf32>
    %288 = vector.shape_cast %287 : vector<1x128x32xf32> to vector<128x32xf32>
    %c1_125 = arith.constant 1 : index
    %c0_126 = arith.constant 0 : index
    %c0_127 = arith.constant 0 : index
    %289 = vector.load %arg13[%c1_125, %c0_126, %c0_127] : memref<2x1x32xf32, #tpu.memory_space<vmem>>, vector<1x1x32xf32>
    %290 = vector.shape_cast %289 : vector<1x1x32xf32> to vector<1x32xf32>
    %cst_128 = arith.constant dense<0.000000e+00> : vector<8x32xf32>
    %291 = tpu.matmul %286, %288, %cst_128 {dimension_numbers = #tpu.dot_dimension_numbers<[1], [0], [0], [1], [0, 0, 1, 1], [], []>} : vector<8x128xf32>, vector<128x32xf32>, vector<8x32xf32> -> vector<8x32xf32>
    %292 = vector.broadcast %290 : vector<1x32xf32> to vector<8x32xf32>
    %293 = arith.addf %291, %292 : vector<8x32xf32>
    %294 = arith.addf %277, %293 : vector<8x32xf32>
    %c1_129 = arith.constant 1 : index
    %c0_130 = arith.constant 0 : index
    %c0_131 = arith.constant 0 : index
    %295 = vector.load %arg14[%c1_129, %c0_130, %c0_131] : memref<2x2x32xf32, #tpu.memory_space<vmem>>, vector<1x2x32xf32>
    %296 = vector.shape_cast %295 : vector<1x2x32xf32> to vector<2x32xf32>
    %297 = vector.extract_strided_slice %296 {offsets = [0, 0], sizes = [1, 32], strides = [1, 1]} : vector<2x32xf32> to vector<1x32xf32>
    %298 = vector.extract_strided_slice %296 {offsets = [1, 0], sizes = [1, 32], strides = [1, 1]} : vector<2x32xf32> to vector<1x32xf32>
    %cst_132 = arith.constant dense<0.000000e+00> : vector<8xf32>
    %299 = vector.multi_reduction <add>, %294, %cst_132 [1] : vector<8x32xf32> to vector<8xf32>
    %300 = vector.shape_cast %299 : vector<8xf32> to vector<8x1xf32>
    %cst_133 = arith.constant 3.200000e+01 : f32
    %301 = vector.broadcast %cst_133 : f32 to vector<8x1xf32>
    %302 = arith.divf %300, %301 : vector<8x1xf32>
    %303 = vector.broadcast %302 : vector<8x1xf32> to vector<8x32xf32>
    %304 = arith.subf %294, %303 : vector<8x32xf32>
    %305 = arith.mulf %304, %304 : vector<8x32xf32>
    %cst_134 = arith.constant dense<0.000000e+00> : vector<8xf32>
    %306 = vector.multi_reduction <add>, %305, %cst_134 [1] : vector<8x32xf32> to vector<8xf32>
    %307 = vector.shape_cast %306 : vector<8xf32> to vector<8x1xf32>
    %cst_135 = arith.constant 3.200000e+01 : f32
    %308 = vector.broadcast %cst_135 : f32 to vector<8x1xf32>
    %309 = arith.divf %307, %308 : vector<8x1xf32>
    %310 = vector.broadcast %302 : vector<8x1xf32> to vector<8x32xf32>
    %311 = arith.subf %294, %310 : vector<8x32xf32>
    %cst_136 = arith.constant 9.99999974E-6 : f32
    %312 = vector.broadcast %cst_136 : f32 to vector<8x1xf32>
    %313 = arith.addf %309, %312 : vector<8x1xf32>
    %314 = math.rsqrt %313 : vector<8x1xf32>
    %315 = vector.broadcast %314 : vector<8x1xf32> to vector<8x32xf32>
    %316 = arith.mulf %311, %315 : vector<8x32xf32>
    %317 = vector.broadcast %297 : vector<1x32xf32> to vector<8x32xf32>
    %318 = arith.mulf %316, %317 : vector<8x32xf32>
    %319 = vector.broadcast %298 : vector<1x32xf32> to vector<8x32xf32>
    %320 = arith.addf %318, %319 : vector<8x32xf32>
    %c0_137 = arith.constant 0 : index
    %c0_138 = arith.constant 0 : index
    %321 = vector.load %arg15[%c0_137, %c0_138] : memref<2x32xf32, #tpu.memory_space<vmem>>, vector<2x32xf32>
    %322 = vector.extract_strided_slice %321 {offsets = [0, 0], sizes = [1, 32], strides = [1, 1]} : vector<2x32xf32> to vector<1x32xf32>
    %323 = vector.extract_strided_slice %321 {offsets = [1, 0], sizes = [1, 32], strides = [1, 1]} : vector<2x32xf32> to vector<1x32xf32>
    %cst_139 = arith.constant dense<0.000000e+00> : vector<8xf32>
    %324 = vector.multi_reduction <add>, %320, %cst_139 [1] : vector<8x32xf32> to vector<8xf32>
    %325 = vector.shape_cast %324 : vector<8xf32> to vector<8x1xf32>
    %cst_140 = arith.constant 3.200000e+01 : f32
    %326 = vector.broadcast %cst_140 : f32 to vector<8x1xf32>
    %327 = arith.divf %325, %326 : vector<8x1xf32>
    %328 = vector.broadcast %327 : vector<8x1xf32> to vector<8x32xf32>
    %329 = arith.subf %320, %328 : vector<8x32xf32>
    %330 = arith.mulf %329, %329 : vector<8x32xf32>
    %cst_141 = arith.constant dense<0.000000e+00> : vector<8xf32>
    %331 = vector.multi_reduction <add>, %330, %cst_141 [1] : vector<8x32xf32> to vector<8xf32>
    %332 = vector.shape_cast %331 : vector<8xf32> to vector<8x1xf32>
    %cst_142 = arith.constant 3.200000e+01 : f32
    %333 = vector.broadcast %cst_142 : f32 to vector<8x1xf32>
    %334 = arith.divf %332, %333 : vector<8x1xf32>
    %335 = vector.broadcast %327 : vector<8x1xf32> to vector<8x32xf32>
    %336 = arith.subf %320, %335 : vector<8x32xf32>
    %cst_143 = arith.constant 9.99999974E-6 : f32
    %337 = vector.broadcast %cst_143 : f32 to vector<8x1xf32>
    %338 = arith.addf %334, %337 : vector<8x1xf32>
    %339 = math.rsqrt %338 : vector<8x1xf32>
    %340 = vector.broadcast %339 : vector<8x1xf32> to vector<8x32xf32>
    %341 = arith.mulf %336, %340 : vector<8x32xf32>
    %342 = vector.broadcast %322 : vector<1x32xf32> to vector<8x32xf32>
    %343 = arith.mulf %341, %342 : vector<8x32xf32>
    %344 = vector.broadcast %323 : vector<1x32xf32> to vector<8x32xf32>
    %345 = arith.addf %343, %344 : vector<8x32xf32>
    %c0_144 = arith.constant 0 : index
    %c0_145 = arith.constant 0 : index
    %c0_146 = arith.constant 0 : index
    %346 = vector.load %arg16[%c0_144, %c0_145, %c0_146] : memref<2x32x96xf32, #tpu.memory_space<vmem>>, vector<1x32x96xf32>
    %347 = vector.shape_cast %346 : vector<1x32x96xf32> to vector<32x96xf32>
    %c0_147 = arith.constant 0 : index
    %c0_148 = arith.constant 0 : index
    %c0_149 = arith.constant 0 : index
    %348 = vector.load %arg17[%c0_147, %c0_148, %c0_149] : memref<2x1x96xf32, #tpu.memory_space<vmem>>, vector<1x1x96xf32>
    %349 = vector.shape_cast %348 : vector<1x1x96xf32> to vector<1x96xf32>
    %cst_150 = arith.constant dense<0.000000e+00> : vector<8x96xf32>
    %350 = tpu.matmul %8, %347, %cst_150 {dimension_numbers = #tpu.dot_dimension_numbers<[1], [0], [0], [1], [0, 0, 1, 1], [], []>} : vector<8x32xf32>, vector<32x96xf32>, vector<8x96xf32> -> vector<8x96xf32>
    %351 = vector.broadcast %349 : vector<1x96xf32> to vector<8x96xf32>
    %352 = arith.addf %350, %351 : vector<8x96xf32>
    %353 = vector.extract_strided_slice %352 {offsets = [0, 0], sizes = [8, 32], strides = [1, 1]} : vector<8x96xf32> to vector<8x32xf32>
    %354 = vector.extract_strided_slice %352 {offsets = [0, 32], sizes = [8, 32], strides = [1, 1]} : vector<8x96xf32> to vector<8x32xf32>
    %355 = vector.extract_strided_slice %352 {offsets = [0, 64], sizes = [8, 32], strides = [1, 1]} : vector<8x96xf32> to vector<8x32xf32>
    %356 = vector.extract_strided_slice %353 {offsets = [0, 0], sizes = [8, 8], strides = [1, 1]} : vector<8x32xf32> to vector<8x8xf32>
    %357 = vector.extract_strided_slice %354 {offsets = [0, 0], sizes = [8, 8], strides = [1, 1]} : vector<8x32xf32> to vector<8x8xf32>
    %358 = vector.extract_strided_slice %355 {offsets = [0, 0], sizes = [8, 8], strides = [1, 1]} : vector<8x32xf32> to vector<8x8xf32>
    %cst_151 = arith.constant dense<0.000000e+00> : vector<8x8xf32>
    %359 = tpu.matmul %356, %357, %cst_151 {dimension_numbers = #tpu.dot_dimension_numbers<[1], [1], [0], [0], [0, 0, 1, 0], [], []>} : vector<8x8xf32>, vector<8x8xf32>, vector<8x8xf32> -> vector<8x8xf32>
    %cst_152 = arith.constant 0.353553385 : f32
    %360 = vector.broadcast %cst_152 : f32 to vector<8x8xf32>
    %361 = arith.mulf %359, %360 : vector<8x8xf32>
    %cst_153 = arith.constant dense<0xFF800000> : vector<8xf32>
    %362 = vector.multi_reduction <maximumf>, %361, %cst_153 [1] : vector<8x8xf32> to vector<8xf32>
    %363 = vector.shape_cast %362 : vector<8xf32> to vector<8x1xf32>
    %364 = vector.broadcast %363 : vector<8x1xf32> to vector<8x8xf32>
    %365 = arith.subf %361, %364 : vector<8x8xf32>
    %366 = math.exp %365 : vector<8x8xf32>
    %cst_154 = arith.constant dense<0.000000e+00> : vector<8xf32>
    %367 = vector.multi_reduction <add>, %366, %cst_154 [1] : vector<8x8xf32> to vector<8xf32>
    %368 = vector.shape_cast %367 : vector<8xf32> to vector<8x1xf32>
    %369 = tpu.reciprocal %368 {approx = true} : vector<8x1xf32> -> vector<8x1xf32>
    %370 = vector.broadcast %369 : vector<8x1xf32> to vector<8x8xf32>
    %371 = arith.mulf %366, %370 : vector<8x8xf32>
    %cst_155 = arith.constant dense<0.000000e+00> : vector<8x8xf32>
    %372 = tpu.matmul %371, %358, %cst_155 {dimension_numbers = #tpu.dot_dimension_numbers<[1], [0], [0], [1], [0, 0, 1, 1], [], []>} : vector<8x8xf32>, vector<8x8xf32>, vector<8x8xf32> -> vector<8x8xf32>
    %373 = vector.extract_strided_slice %353 {offsets = [0, 8], sizes = [8, 8], strides = [1, 1]} : vector<8x32xf32> to vector<8x8xf32>
    %374 = vector.extract_strided_slice %354 {offsets = [0, 8], sizes = [8, 8], strides = [1, 1]} : vector<8x32xf32> to vector<8x8xf32>
    %375 = vector.extract_strided_slice %355 {offsets = [0, 8], sizes = [8, 8], strides = [1, 1]} : vector<8x32xf32> to vector<8x8xf32>
    %cst_156 = arith.constant dense<0.000000e+00> : vector<8x8xf32>
    %376 = tpu.matmul %373, %374, %cst_156 {dimension_numbers = #tpu.dot_dimension_numbers<[1], [1], [0], [0], [0, 0, 1, 0], [], []>} : vector<8x8xf32>, vector<8x8xf32>, vector<8x8xf32> -> vector<8x8xf32>
    %cst_157 = arith.constant 0.353553385 : f32
    %377 = vector.broadcast %cst_157 : f32 to vector<8x8xf32>
    %378 = arith.mulf %376, %377 : vector<8x8xf32>
    %cst_158 = arith.constant dense<0xFF800000> : vector<8xf32>
    %379 = vector.multi_reduction <maximumf>, %378, %cst_158 [1] : vector<8x8xf32> to vector<8xf32>
    %380 = vector.shape_cast %379 : vector<8xf32> to vector<8x1xf32>
    %381 = vector.broadcast %380 : vector<8x1xf32> to vector<8x8xf32>
    %382 = arith.subf %378, %381 : vector<8x8xf32>
    %383 = math.exp %382 : vector<8x8xf32>
    %cst_159 = arith.constant dense<0.000000e+00> : vector<8xf32>
    %384 = vector.multi_reduction <add>, %383, %cst_159 [1] : vector<8x8xf32> to vector<8xf32>
    %385 = vector.shape_cast %384 : vector<8xf32> to vector<8x1xf32>
    %386 = tpu.reciprocal %385 {approx = true} : vector<8x1xf32> -> vector<8x1xf32>
    %387 = vector.broadcast %386 : vector<8x1xf32> to vector<8x8xf32>
    %388 = arith.mulf %383, %387 : vector<8x8xf32>
    %cst_160 = arith.constant dense<0.000000e+00> : vector<8x8xf32>
    %389 = tpu.matmul %388, %375, %cst_160 {dimension_numbers = #tpu.dot_dimension_numbers<[1], [0], [0], [1], [0, 0, 1, 1], [], []>} : vector<8x8xf32>, vector<8x8xf32>, vector<8x8xf32> -> vector<8x8xf32>
    %390 = vector.extract_strided_slice %353 {offsets = [0, 16], sizes = [8, 8], strides = [1, 1]} : vector<8x32xf32> to vector<8x8xf32>
    %391 = vector.extract_strided_slice %354 {offsets = [0, 16], sizes = [8, 8], strides = [1, 1]} : vector<8x32xf32> to vector<8x8xf32>
    %392 = vector.extract_strided_slice %355 {offsets = [0, 16], sizes = [8, 8], strides = [1, 1]} : vector<8x32xf32> to vector<8x8xf32>
    %cst_161 = arith.constant dense<0.000000e+00> : vector<8x8xf32>
    %393 = tpu.matmul %390, %391, %cst_161 {dimension_numbers = #tpu.dot_dimension_numbers<[1], [1], [0], [0], [0, 0, 1, 0], [], []>} : vector<8x8xf32>, vector<8x8xf32>, vector<8x8xf32> -> vector<8x8xf32>
    %cst_162 = arith.constant 0.353553385 : f32
    %394 = vector.broadcast %cst_162 : f32 to vector<8x8xf32>
    %395 = arith.mulf %393, %394 : vector<8x8xf32>
    %cst_163 = arith.constant dense<0xFF800000> : vector<8xf32>
    %396 = vector.multi_reduction <maximumf>, %395, %cst_163 [1] : vector<8x8xf32> to vector<8xf32>
    %397 = vector.shape_cast %396 : vector<8xf32> to vector<8x1xf32>
    %398 = vector.broadcast %397 : vector<8x1xf32> to vector<8x8xf32>
    %399 = arith.subf %395, %398 : vector<8x8xf32>
    %400 = math.exp %399 : vector<8x8xf32>
    %cst_164 = arith.constant dense<0.000000e+00> : vector<8xf32>
    %401 = vector.multi_reduction <add>, %400, %cst_164 [1] : vector<8x8xf32> to vector<8xf32>
    %402 = vector.shape_cast %401 : vector<8xf32> to vector<8x1xf32>
    %403 = tpu.reciprocal %402 {approx = true} : vector<8x1xf32> -> vector<8x1xf32>
    %404 = vector.broadcast %403 : vector<8x1xf32> to vector<8x8xf32>
    %405 = arith.mulf %400, %404 : vector<8x8xf32>
    %cst_165 = arith.constant dense<0.000000e+00> : vector<8x8xf32>
    %406 = tpu.matmul %405, %392, %cst_165 {dimension_numbers = #tpu.dot_dimension_numbers<[1], [0], [0], [1], [0, 0, 1, 1], [], []>} : vector<8x8xf32>, vector<8x8xf32>, vector<8x8xf32> -> vector<8x8xf32>
    %407 = vector.extract_strided_slice %353 {offsets = [0, 24], sizes = [8, 8], strides = [1, 1]} : vector<8x32xf32> to vector<8x8xf32>
    %408 = vector.extract_strided_slice %354 {offsets = [0, 24], sizes = [8, 8], strides = [1, 1]} : vector<8x32xf32> to vector<8x8xf32>
    %409 = vector.extract_strided_slice %355 {offsets = [0, 24], sizes = [8, 8], strides = [1, 1]} : vector<8x32xf32> to vector<8x8xf32>
    %cst_166 = arith.constant dense<0.000000e+00> : vector<8x8xf32>
    %410 = tpu.matmul %407, %408, %cst_166 {dimension_numbers = #tpu.dot_dimension_numbers<[1], [1], [0], [0], [0, 0, 1, 0], [], []>} : vector<8x8xf32>, vector<8x8xf32>, vector<8x8xf32> -> vector<8x8xf32>
    %cst_167 = arith.constant 0.353553385 : f32
    %411 = vector.broadcast %cst_167 : f32 to vector<8x8xf32>
    %412 = arith.mulf %410, %411 : vector<8x8xf32>
    %cst_168 = arith.constant dense<0xFF800000> : vector<8xf32>
    %413 = vector.multi_reduction <maximumf>, %412, %cst_168 [1] : vector<8x8xf32> to vector<8xf32>
    %414 = vector.shape_cast %413 : vector<8xf32> to vector<8x1xf32>
    %415 = vector.broadcast %414 : vector<8x1xf32> to vector<8x8xf32>
    %416 = arith.subf %412, %415 : vector<8x8xf32>
    %417 = math.exp %416 : vector<8x8xf32>
    %cst_169 = arith.constant dense<0.000000e+00> : vector<8xf32>
    %418 = vector.multi_reduction <add>, %417, %cst_169 [1] : vector<8x8xf32> to vector<8xf32>
    %419 = vector.shape_cast %418 : vector<8xf32> to vector<8x1xf32>
    %420 = tpu.reciprocal %419 {approx = true} : vector<8x1xf32> -> vector<8x1xf32>
    %421 = vector.broadcast %420 : vector<8x1xf32> to vector<8x8xf32>
    %422 = arith.mulf %417, %421 : vector<8x8xf32>
    %cst_170 = arith.constant dense<0.000000e+00> : vector<8x8xf32>
    %423 = tpu.matmul %422, %409, %cst_170 {dimension_numbers = #tpu.dot_dimension_numbers<[1], [0], [0], [1], [0, 0, 1, 1], [], []>} : vector<8x8xf32>, vector<8x8xf32>, vector<8x8xf32> -> vector<8x8xf32>
    %424 = tpu.concatenate %372, %389, %406, %423 in 1 : vector<8x8xf32>, vector<8x8xf32>, vector<8x8xf32>, vector<8x8xf32> -> vector<8x32xf32>
    %c0_171 = arith.constant 0 : index
    %c0_172 = arith.constant 0 : index
    %c0_173 = arith.constant 0 : index
    %425 = vector.load %arg18[%c0_171, %c0_172, %c0_173] : memref<2x32x32xf32, #tpu.memory_space<vmem>>, vector<1x32x32xf32>
    %426 = vector.shape_cast %425 : vector<1x32x32xf32> to vector<32x32xf32>
    %c0_174 = arith.constant 0 : index
    %c0_175 = arith.constant 0 : index
    %c0_176 = arith.constant 0 : index
    %427 = vector.load %arg19[%c0_174, %c0_175, %c0_176] : memref<2x1x32xf32, #tpu.memory_space<vmem>>, vector<1x1x32xf32>
    %428 = vector.shape_cast %427 : vector<1x1x32xf32> to vector<1x32xf32>
    %cst_177 = arith.constant dense<0.000000e+00> : vector<8x32xf32>
    %429 = tpu.matmul %424, %426, %cst_177 {dimension_numbers = #tpu.dot_dimension_numbers<[1], [0], [0], [1], [0, 0, 1, 1], [], []>} : vector<8x32xf32>, vector<32x32xf32>, vector<8x32xf32> -> vector<8x32xf32>
    %430 = vector.broadcast %428 : vector<1x32xf32> to vector<8x32xf32>
    %431 = arith.addf %429, %430 : vector<8x32xf32>
    %432 = arith.addf %8, %431 : vector<8x32xf32>
    %c0_178 = arith.constant 0 : index
    %c0_179 = arith.constant 0 : index
    %c0_180 = arith.constant 0 : index
    %433 = vector.load %arg20[%c0_178, %c0_179, %c0_180] : memref<2x2x32xf32, #tpu.memory_space<vmem>>, vector<1x2x32xf32>
    %434 = vector.shape_cast %433 : vector<1x2x32xf32> to vector<2x32xf32>
    %435 = vector.extract_strided_slice %434 {offsets = [0, 0], sizes = [1, 32], strides = [1, 1]} : vector<2x32xf32> to vector<1x32xf32>
    %436 = vector.extract_strided_slice %434 {offsets = [1, 0], sizes = [1, 32], strides = [1, 1]} : vector<2x32xf32> to vector<1x32xf32>
    %cst_181 = arith.constant dense<0.000000e+00> : vector<8xf32>
    %437 = vector.multi_reduction <add>, %432, %cst_181 [1] : vector<8x32xf32> to vector<8xf32>
    %438 = vector.shape_cast %437 : vector<8xf32> to vector<8x1xf32>
    %cst_182 = arith.constant 3.200000e+01 : f32
    %439 = vector.broadcast %cst_182 : f32 to vector<8x1xf32>
    %440 = arith.divf %438, %439 : vector<8x1xf32>
    %441 = vector.broadcast %440 : vector<8x1xf32> to vector<8x32xf32>
    %442 = arith.subf %432, %441 : vector<8x32xf32>
    %443 = arith.mulf %442, %442 : vector<8x32xf32>
    %cst_183 = arith.constant dense<0.000000e+00> : vector<8xf32>
    %444 = vector.multi_reduction <add>, %443, %cst_183 [1] : vector<8x32xf32> to vector<8xf32>
    %445 = vector.shape_cast %444 : vector<8xf32> to vector<8x1xf32>
    %cst_184 = arith.constant 3.200000e+01 : f32
    %446 = vector.broadcast %cst_184 : f32 to vector<8x1xf32>
    %447 = arith.divf %445, %446 : vector<8x1xf32>
    %448 = vector.broadcast %440 : vector<8x1xf32> to vector<8x32xf32>
    %449 = arith.subf %432, %448 : vector<8x32xf32>
    %cst_185 = arith.constant 9.99999974E-6 : f32
    %450 = vector.broadcast %cst_185 : f32 to vector<8x1xf32>
    %451 = arith.addf %447, %450 : vector<8x1xf32>
    %452 = math.rsqrt %451 : vector<8x1xf32>
    %453 = vector.broadcast %452 : vector<8x1xf32> to vector<8x32xf32>
    %454 = arith.mulf %449, %453 : vector<8x32xf32>
    %455 = vector.broadcast %435 : vector<1x32xf32> to vector<8x32xf32>
    %456 = arith.mulf %454, %455 : vector<8x32xf32>
    %457 = vector.broadcast %436 : vector<1x32xf32> to vector<8x32xf32>
    %458 = arith.addf %456, %457 : vector<8x32xf32>
    %c0_186 = arith.constant 0 : index
    %c0_187 = arith.constant 0 : index
    %c0_188 = arith.constant 0 : index
    %459 = vector.load %arg21[%c0_186, %c0_187, %c0_188] : memref<2x32x32xf32, #tpu.memory_space<vmem>>, vector<1x32x32xf32>
    %460 = vector.shape_cast %459 : vector<1x32x32xf32> to vector<32x32xf32>
    %c0_189 = arith.constant 0 : index
    %c0_190 = arith.constant 0 : index
    %c0_191 = arith.constant 0 : index
    %461 = vector.load %arg22[%c0_189, %c0_190, %c0_191] : memref<2x1x32xf32, #tpu.memory_space<vmem>>, vector<1x1x32xf32>
    %462 = vector.shape_cast %461 : vector<1x1x32xf32> to vector<1x32xf32>
    %cst_192 = arith.constant dense<0.000000e+00> : vector<8x32xf32>
    %463 = tpu.matmul %458, %460, %cst_192 {dimension_numbers = #tpu.dot_dimension_numbers<[1], [0], [0], [1], [0, 0, 1, 1], [], []>} : vector<8x32xf32>, vector<32x32xf32>, vector<8x32xf32> -> vector<8x32xf32>
    %464 = vector.broadcast %462 : vector<1x32xf32> to vector<8x32xf32>
    %465 = arith.addf %463, %464 : vector<8x32xf32>
    %c0_193 = arith.constant 0 : index
    %c0_194 = arith.constant 0 : index
    %c0_195 = arith.constant 0 : index
    %466 = vector.load %arg23[%c0_193, %c0_194, %c0_195] : memref<2x32x64xf32, #tpu.memory_space<vmem>>, vector<1x32x64xf32>
    %467 = vector.shape_cast %466 : vector<1x32x64xf32> to vector<32x64xf32>
    %c0_196 = arith.constant 0 : index
    %c0_197 = arith.constant 0 : index
    %c0_198 = arith.constant 0 : index
    %468 = vector.load %arg24[%c0_196, %c0_197, %c0_198] : memref<2x1x64xf32, #tpu.memory_space<vmem>>, vector<1x1x64xf32>
    %469 = vector.shape_cast %468 : vector<1x1x64xf32> to vector<1x64xf32>
    %cst_199 = arith.constant dense<0.000000e+00> : vector<8x64xf32>
    %470 = tpu.matmul %345, %467, %cst_199 {dimension_numbers = #tpu.dot_dimension_numbers<[1], [0], [0], [1], [0, 0, 1, 1], [], []>} : vector<8x32xf32>, vector<32x64xf32>, vector<8x64xf32> -> vector<8x64xf32>
    %471 = vector.broadcast %469 : vector<1x64xf32> to vector<8x64xf32>
    %472 = arith.addf %470, %471 : vector<8x64xf32>
    %473 = vector.extract_strided_slice %472 {offsets = [0, 0], sizes = [8, 32], strides = [1, 1]} : vector<8x64xf32> to vector<8x32xf32>
    %474 = vector.extract_strided_slice %472 {offsets = [0, 32], sizes = [8, 32], strides = [1, 1]} : vector<8x64xf32> to vector<8x32xf32>
    %475 = vector.extract_strided_slice %465 {offsets = [0, 0], sizes = [8, 8], strides = [1, 1]} : vector<8x32xf32> to vector<8x8xf32>
    %476 = vector.extract_strided_slice %473 {offsets = [0, 0], sizes = [8, 8], strides = [1, 1]} : vector<8x32xf32> to vector<8x8xf32>
    %477 = vector.extract_strided_slice %474 {offsets = [0, 0], sizes = [8, 8], strides = [1, 1]} : vector<8x32xf32> to vector<8x8xf32>
    %cst_200 = arith.constant dense<0.000000e+00> : vector<8x8xf32>
    %478 = tpu.matmul %475, %476, %cst_200 {dimension_numbers = #tpu.dot_dimension_numbers<[1], [1], [0], [0], [0, 0, 1, 0], [], []>} : vector<8x8xf32>, vector<8x8xf32>, vector<8x8xf32> -> vector<8x8xf32>
    %cst_201 = arith.constant 0.353553385 : f32
    %479 = vector.broadcast %cst_201 : f32 to vector<8x8xf32>
    %480 = arith.mulf %478, %479 : vector<8x8xf32>
    %cst_202 = arith.constant dense<0xFF800000> : vector<8xf32>
    %481 = vector.multi_reduction <maximumf>, %480, %cst_202 [1] : vector<8x8xf32> to vector<8xf32>
    %482 = vector.shape_cast %481 : vector<8xf32> to vector<8x1xf32>
    %483 = vector.broadcast %482 : vector<8x1xf32> to vector<8x8xf32>
    %484 = arith.subf %480, %483 : vector<8x8xf32>
    %485 = math.exp %484 : vector<8x8xf32>
    %cst_203 = arith.constant dense<0.000000e+00> : vector<8xf32>
    %486 = vector.multi_reduction <add>, %485, %cst_203 [1] : vector<8x8xf32> to vector<8xf32>
    %487 = vector.shape_cast %486 : vector<8xf32> to vector<8x1xf32>
    %488 = tpu.reciprocal %487 {approx = true} : vector<8x1xf32> -> vector<8x1xf32>
    %489 = vector.broadcast %488 : vector<8x1xf32> to vector<8x8xf32>
    %490 = arith.mulf %485, %489 : vector<8x8xf32>
    %cst_204 = arith.constant dense<0.000000e+00> : vector<8x8xf32>
    %491 = tpu.matmul %490, %477, %cst_204 {dimension_numbers = #tpu.dot_dimension_numbers<[1], [0], [0], [1], [0, 0, 1, 1], [], []>} : vector<8x8xf32>, vector<8x8xf32>, vector<8x8xf32> -> vector<8x8xf32>
    %492 = vector.extract_strided_slice %465 {offsets = [0, 8], sizes = [8, 8], strides = [1, 1]} : vector<8x32xf32> to vector<8x8xf32>
    %493 = vector.extract_strided_slice %473 {offsets = [0, 8], sizes = [8, 8], strides = [1, 1]} : vector<8x32xf32> to vector<8x8xf32>
    %494 = vector.extract_strided_slice %474 {offsets = [0, 8], sizes = [8, 8], strides = [1, 1]} : vector<8x32xf32> to vector<8x8xf32>
    %cst_205 = arith.constant dense<0.000000e+00> : vector<8x8xf32>
    %495 = tpu.matmul %492, %493, %cst_205 {dimension_numbers = #tpu.dot_dimension_numbers<[1], [1], [0], [0], [0, 0, 1, 0], [], []>} : vector<8x8xf32>, vector<8x8xf32>, vector<8x8xf32> -> vector<8x8xf32>
    %cst_206 = arith.constant 0.353553385 : f32
    %496 = vector.broadcast %cst_206 : f32 to vector<8x8xf32>
    %497 = arith.mulf %495, %496 : vector<8x8xf32>
    %cst_207 = arith.constant dense<0xFF800000> : vector<8xf32>
    %498 = vector.multi_reduction <maximumf>, %497, %cst_207 [1] : vector<8x8xf32> to vector<8xf32>
    %499 = vector.shape_cast %498 : vector<8xf32> to vector<8x1xf32>
    %500 = vector.broadcast %499 : vector<8x1xf32> to vector<8x8xf32>
    %501 = arith.subf %497, %500 : vector<8x8xf32>
    %502 = math.exp %501 : vector<8x8xf32>
    %cst_208 = arith.constant dense<0.000000e+00> : vector<8xf32>
    %503 = vector.multi_reduction <add>, %502, %cst_208 [1] : vector<8x8xf32> to vector<8xf32>
    %504 = vector.shape_cast %503 : vector<8xf32> to vector<8x1xf32>
    %505 = tpu.reciprocal %504 {approx = true} : vector<8x1xf32> -> vector<8x1xf32>
    %506 = vector.broadcast %505 : vector<8x1xf32> to vector<8x8xf32>
    %507 = arith.mulf %502, %506 : vector<8x8xf32>
    %cst_209 = arith.constant dense<0.000000e+00> : vector<8x8xf32>
    %508 = tpu.matmul %507, %494, %cst_209 {dimension_numbers = #tpu.dot_dimension_numbers<[1], [0], [0], [1], [0, 0, 1, 1], [], []>} : vector<8x8xf32>, vector<8x8xf32>, vector<8x8xf32> -> vector<8x8xf32>
    %509 = vector.extract_strided_slice %465 {offsets = [0, 16], sizes = [8, 8], strides = [1, 1]} : vector<8x32xf32> to vector<8x8xf32>
    %510 = vector.extract_strided_slice %473 {offsets = [0, 16], sizes = [8, 8], strides = [1, 1]} : vector<8x32xf32> to vector<8x8xf32>
    %511 = vector.extract_strided_slice %474 {offsets = [0, 16], sizes = [8, 8], strides = [1, 1]} : vector<8x32xf32> to vector<8x8xf32>
    %cst_210 = arith.constant dense<0.000000e+00> : vector<8x8xf32>
    %512 = tpu.matmul %509, %510, %cst_210 {dimension_numbers = #tpu.dot_dimension_numbers<[1], [1], [0], [0], [0, 0, 1, 0], [], []>} : vector<8x8xf32>, vector<8x8xf32>, vector<8x8xf32> -> vector<8x8xf32>
    %cst_211 = arith.constant 0.353553385 : f32
    %513 = vector.broadcast %cst_211 : f32 to vector<8x8xf32>
    %514 = arith.mulf %512, %513 : vector<8x8xf32>
    %cst_212 = arith.constant dense<0xFF800000> : vector<8xf32>
    %515 = vector.multi_reduction <maximumf>, %514, %cst_212 [1] : vector<8x8xf32> to vector<8xf32>
    %516 = vector.shape_cast %515 : vector<8xf32> to vector<8x1xf32>
    %517 = vector.broadcast %516 : vector<8x1xf32> to vector<8x8xf32>
    %518 = arith.subf %514, %517 : vector<8x8xf32>
    %519 = math.exp %518 : vector<8x8xf32>
    %cst_213 = arith.constant dense<0.000000e+00> : vector<8xf32>
    %520 = vector.multi_reduction <add>, %519, %cst_213 [1] : vector<8x8xf32> to vector<8xf32>
    %521 = vector.shape_cast %520 : vector<8xf32> to vector<8x1xf32>
    %522 = tpu.reciprocal %521 {approx = true} : vector<8x1xf32> -> vector<8x1xf32>
    %523 = vector.broadcast %522 : vector<8x1xf32> to vector<8x8xf32>
    %524 = arith.mulf %519, %523 : vector<8x8xf32>
    %cst_214 = arith.constant dense<0.000000e+00> : vector<8x8xf32>
    %525 = tpu.matmul %524, %511, %cst_214 {dimension_numbers = #tpu.dot_dimension_numbers<[1], [0], [0], [1], [0, 0, 1, 1], [], []>} : vector<8x8xf32>, vector<8x8xf32>, vector<8x8xf32> -> vector<8x8xf32>
    %526 = vector.extract_strided_slice %465 {offsets = [0, 24], sizes = [8, 8], strides = [1, 1]} : vector<8x32xf32> to vector<8x8xf32>
    %527 = vector.extract_strided_slice %473 {offsets = [0, 24], sizes = [8, 8], strides = [1, 1]} : vector<8x32xf32> to vector<8x8xf32>
    %528 = vector.extract_strided_slice %474 {offsets = [0, 24], sizes = [8, 8], strides = [1, 1]} : vector<8x32xf32> to vector<8x8xf32>
    %cst_215 = arith.constant dense<0.000000e+00> : vector<8x8xf32>
    %529 = tpu.matmul %526, %527, %cst_215 {dimension_numbers = #tpu.dot_dimension_numbers<[1], [1], [0], [0], [0, 0, 1, 0], [], []>} : vector<8x8xf32>, vector<8x8xf32>, vector<8x8xf32> -> vector<8x8xf32>
    %cst_216 = arith.constant 0.353553385 : f32
    %530 = vector.broadcast %cst_216 : f32 to vector<8x8xf32>
    %531 = arith.mulf %529, %530 : vector<8x8xf32>
    %cst_217 = arith.constant dense<0xFF800000> : vector<8xf32>
    %532 = vector.multi_reduction <maximumf>, %531, %cst_217 [1] : vector<8x8xf32> to vector<8xf32>
    %533 = vector.shape_cast %532 : vector<8xf32> to vector<8x1xf32>
    %534 = vector.broadcast %533 : vector<8x1xf32> to vector<8x8xf32>
    %535 = arith.subf %531, %534 : vector<8x8xf32>
    %536 = math.exp %535 : vector<8x8xf32>
    %cst_218 = arith.constant dense<0.000000e+00> : vector<8xf32>
    %537 = vector.multi_reduction <add>, %536, %cst_218 [1] : vector<8x8xf32> to vector<8xf32>
    %538 = vector.shape_cast %537 : vector<8xf32> to vector<8x1xf32>
    %539 = tpu.reciprocal %538 {approx = true} : vector<8x1xf32> -> vector<8x1xf32>
    %540 = vector.broadcast %539 : vector<8x1xf32> to vector<8x8xf32>
    %541 = arith.mulf %536, %540 : vector<8x8xf32>
    %cst_219 = arith.constant dense<0.000000e+00> : vector<8x8xf32>
    %542 = tpu.matmul %541, %528, %cst_219 {dimension_numbers = #tpu.dot_dimension_numbers<[1], [0], [0], [1], [0, 0, 1, 1], [], []>} : vector<8x8xf32>, vector<8x8xf32>, vector<8x8xf32> -> vector<8x8xf32>
    %543 = tpu.concatenate %491, %508, %525, %542 in 1 : vector<8x8xf32>, vector<8x8xf32>, vector<8x8xf32>, vector<8x8xf32> -> vector<8x32xf32>
    %c0_220 = arith.constant 0 : index
    %c0_221 = arith.constant 0 : index
    %c0_222 = arith.constant 0 : index
    %544 = vector.load %arg25[%c0_220, %c0_221, %c0_222] : memref<2x32x32xf32, #tpu.memory_space<vmem>>, vector<1x32x32xf32>
    %545 = vector.shape_cast %544 : vector<1x32x32xf32> to vector<32x32xf32>
    %c0_223 = arith.constant 0 : index
    %c0_224 = arith.constant 0 : index
    %c0_225 = arith.constant 0 : index
    %546 = vector.load %arg26[%c0_223, %c0_224, %c0_225] : memref<2x1x32xf32, #tpu.memory_space<vmem>>, vector<1x1x32xf32>
    %547 = vector.shape_cast %546 : vector<1x1x32xf32> to vector<1x32xf32>
    %cst_226 = arith.constant dense<0.000000e+00> : vector<8x32xf32>
    %548 = tpu.matmul %543, %545, %cst_226 {dimension_numbers = #tpu.dot_dimension_numbers<[1], [0], [0], [1], [0, 0, 1, 1], [], []>} : vector<8x32xf32>, vector<32x32xf32>, vector<8x32xf32> -> vector<8x32xf32>
    %549 = vector.broadcast %547 : vector<1x32xf32> to vector<8x32xf32>
    %550 = arith.addf %548, %549 : vector<8x32xf32>
    %551 = arith.addf %458, %550 : vector<8x32xf32>
    %c0_227 = arith.constant 0 : index
    %c0_228 = arith.constant 0 : index
    %c0_229 = arith.constant 0 : index
    %552 = vector.load %arg27[%c0_227, %c0_228, %c0_229] : memref<2x2x32xf32, #tpu.memory_space<vmem>>, vector<1x2x32xf32>
    %553 = vector.shape_cast %552 : vector<1x2x32xf32> to vector<2x32xf32>
    %554 = vector.extract_strided_slice %553 {offsets = [0, 0], sizes = [1, 32], strides = [1, 1]} : vector<2x32xf32> to vector<1x32xf32>
    %555 = vector.extract_strided_slice %553 {offsets = [1, 0], sizes = [1, 32], strides = [1, 1]} : vector<2x32xf32> to vector<1x32xf32>
    %cst_230 = arith.constant dense<0.000000e+00> : vector<8xf32>
    %556 = vector.multi_reduction <add>, %551, %cst_230 [1] : vector<8x32xf32> to vector<8xf32>
    %557 = vector.shape_cast %556 : vector<8xf32> to vector<8x1xf32>
    %cst_231 = arith.constant 3.200000e+01 : f32
    %558 = vector.broadcast %cst_231 : f32 to vector<8x1xf32>
    %559 = arith.divf %557, %558 : vector<8x1xf32>
    %560 = vector.broadcast %559 : vector<8x1xf32> to vector<8x32xf32>
    %561 = arith.subf %551, %560 : vector<8x32xf32>
    %562 = arith.mulf %561, %561 : vector<8x32xf32>
    %cst_232 = arith.constant dense<0.000000e+00> : vector<8xf32>
    %563 = vector.multi_reduction <add>, %562, %cst_232 [1] : vector<8x32xf32> to vector<8xf32>
    %564 = vector.shape_cast %563 : vector<8xf32> to vector<8x1xf32>
    %cst_233 = arith.constant 3.200000e+01 : f32
    %565 = vector.broadcast %cst_233 : f32 to vector<8x1xf32>
    %566 = arith.divf %564, %565 : vector<8x1xf32>
    %567 = vector.broadcast %559 : vector<8x1xf32> to vector<8x32xf32>
    %568 = arith.subf %551, %567 : vector<8x32xf32>
    %cst_234 = arith.constant 9.99999974E-6 : f32
    %569 = vector.broadcast %cst_234 : f32 to vector<8x1xf32>
    %570 = arith.addf %566, %569 : vector<8x1xf32>
    %571 = math.rsqrt %570 : vector<8x1xf32>
    %572 = vector.broadcast %571 : vector<8x1xf32> to vector<8x32xf32>
    %573 = arith.mulf %568, %572 : vector<8x32xf32>
    %574 = vector.broadcast %554 : vector<1x32xf32> to vector<8x32xf32>
    %575 = arith.mulf %573, %574 : vector<8x32xf32>
    %576 = vector.broadcast %555 : vector<1x32xf32> to vector<8x32xf32>
    %577 = arith.addf %575, %576 : vector<8x32xf32>
    %c0_235 = arith.constant 0 : index
    %c0_236 = arith.constant 0 : index
    %c0_237 = arith.constant 0 : index
    %578 = vector.load %arg28[%c0_235, %c0_236, %c0_237] : memref<2x32x128xf32, #tpu.memory_space<vmem>>, vector<1x32x128xf32>
    %579 = vector.shape_cast %578 : vector<1x32x128xf32> to vector<32x128xf32>
    %c0_238 = arith.constant 0 : index
    %c0_239 = arith.constant 0 : index
    %c0_240 = arith.constant 0 : index
    %580 = vector.load %arg29[%c0_238, %c0_239, %c0_240] : memref<2x1x128xf32, #tpu.memory_space<vmem>>, vector<1x1x128xf32>
    %581 = vector.shape_cast %580 : vector<1x1x128xf32> to vector<1x128xf32>
    %cst_241 = arith.constant dense<0.000000e+00> : vector<8x128xf32>
    %582 = tpu.matmul %577, %579, %cst_241 {dimension_numbers = #tpu.dot_dimension_numbers<[1], [0], [0], [1], [0, 0, 1, 1], [], []>} : vector<8x32xf32>, vector<32x128xf32>, vector<8x128xf32> -> vector<8x128xf32>
    %583 = vector.broadcast %581 : vector<1x128xf32> to vector<8x128xf32>
    %584 = arith.addf %582, %583 : vector<8x128xf32>
    %cst_242 = arith.constant 0.000000e+00 : f32
    %585 = vector.broadcast %cst_242 : f32 to vector<8x128xf32>
    %586 = arith.maximumf %584, %585 : vector<8x128xf32>
    %c0_243 = arith.constant 0 : index
    %c0_244 = arith.constant 0 : index
    %c0_245 = arith.constant 0 : index
    %587 = vector.load %arg30[%c0_243, %c0_244, %c0_245] : memref<2x128x32xf32, #tpu.memory_space<vmem>>, vector<1x128x32xf32>
    %588 = vector.shape_cast %587 : vector<1x128x32xf32> to vector<128x32xf32>
    %c0_246 = arith.constant 0 : index
    %c0_247 = arith.constant 0 : index
    %c0_248 = arith.constant 0 : index
    %589 = vector.load %arg31[%c0_246, %c0_247, %c0_248] : memref<2x1x32xf32, #tpu.memory_space<vmem>>, vector<1x1x32xf32>
    %590 = vector.shape_cast %589 : vector<1x1x32xf32> to vector<1x32xf32>
    %cst_249 = arith.constant dense<0.000000e+00> : vector<8x32xf32>
    %591 = tpu.matmul %586, %588, %cst_249 {dimension_numbers = #tpu.dot_dimension_numbers<[1], [0], [0], [1], [0, 0, 1, 1], [], []>} : vector<8x128xf32>, vector<128x32xf32>, vector<8x32xf32> -> vector<8x32xf32>
    %592 = vector.broadcast %590 : vector<1x32xf32> to vector<8x32xf32>
    %593 = arith.addf %591, %592 : vector<8x32xf32>
    %594 = arith.addf %577, %593 : vector<8x32xf32>
    %c0_250 = arith.constant 0 : index
    %c0_251 = arith.constant 0 : index
    %c0_252 = arith.constant 0 : index
    %595 = vector.load %arg32[%c0_250, %c0_251, %c0_252] : memref<2x2x32xf32, #tpu.memory_space<vmem>>, vector<1x2x32xf32>
    %596 = vector.shape_cast %595 : vector<1x2x32xf32> to vector<2x32xf32>
    %597 = vector.extract_strided_slice %596 {offsets = [0, 0], sizes = [1, 32], strides = [1, 1]} : vector<2x32xf32> to vector<1x32xf32>
    %598 = vector.extract_strided_slice %596 {offsets = [1, 0], sizes = [1, 32], strides = [1, 1]} : vector<2x32xf32> to vector<1x32xf32>
    %cst_253 = arith.constant dense<0.000000e+00> : vector<8xf32>
    %599 = vector.multi_reduction <add>, %594, %cst_253 [1] : vector<8x32xf32> to vector<8xf32>
    %600 = vector.shape_cast %599 : vector<8xf32> to vector<8x1xf32>
    %cst_254 = arith.constant 3.200000e+01 : f32
    %601 = vector.broadcast %cst_254 : f32 to vector<8x1xf32>
    %602 = arith.divf %600, %601 : vector<8x1xf32>
    %603 = vector.broadcast %602 : vector<8x1xf32> to vector<8x32xf32>
    %604 = arith.subf %594, %603 : vector<8x32xf32>
    %605 = arith.mulf %604, %604 : vector<8x32xf32>
    %cst_255 = arith.constant dense<0.000000e+00> : vector<8xf32>
    %606 = vector.multi_reduction <add>, %605, %cst_255 [1] : vector<8x32xf32> to vector<8xf32>
    %607 = vector.shape_cast %606 : vector<8xf32> to vector<8x1xf32>
    %cst_256 = arith.constant 3.200000e+01 : f32
    %608 = vector.broadcast %cst_256 : f32 to vector<8x1xf32>
    %609 = arith.divf %607, %608 : vector<8x1xf32>
    %610 = vector.broadcast %602 : vector<8x1xf32> to vector<8x32xf32>
    %611 = arith.subf %594, %610 : vector<8x32xf32>
    %cst_257 = arith.constant 9.99999974E-6 : f32
    %612 = vector.broadcast %cst_257 : f32 to vector<8x1xf32>
    %613 = arith.addf %609, %612 : vector<8x1xf32>
    %614 = math.rsqrt %613 : vector<8x1xf32>
    %615 = vector.broadcast %614 : vector<8x1xf32> to vector<8x32xf32>
    %616 = arith.mulf %611, %615 : vector<8x32xf32>
    %617 = vector.broadcast %597 : vector<1x32xf32> to vector<8x32xf32>
    %618 = arith.mulf %616, %617 : vector<8x32xf32>
    %619 = vector.broadcast %598 : vector<1x32xf32> to vector<8x32xf32>
    %620 = arith.addf %618, %619 : vector<8x32xf32>
    %c1_258 = arith.constant 1 : index
    %c0_259 = arith.constant 0 : index
    %c0_260 = arith.constant 0 : index
    %621 = vector.load %arg16[%c1_258, %c0_259, %c0_260] : memref<2x32x96xf32, #tpu.memory_space<vmem>>, vector<1x32x96xf32>
    %622 = vector.shape_cast %621 : vector<1x32x96xf32> to vector<32x96xf32>
    %c1_261 = arith.constant 1 : index
    %c0_262 = arith.constant 0 : index
    %c0_263 = arith.constant 0 : index
    %623 = vector.load %arg17[%c1_261, %c0_262, %c0_263] : memref<2x1x96xf32, #tpu.memory_space<vmem>>, vector<1x1x96xf32>
    %624 = vector.shape_cast %623 : vector<1x1x96xf32> to vector<1x96xf32>
    %cst_264 = arith.constant dense<0.000000e+00> : vector<8x96xf32>
    %625 = tpu.matmul %620, %622, %cst_264 {dimension_numbers = #tpu.dot_dimension_numbers<[1], [0], [0], [1], [0, 0, 1, 1], [], []>} : vector<8x32xf32>, vector<32x96xf32>, vector<8x96xf32> -> vector<8x96xf32>
    %626 = vector.broadcast %624 : vector<1x96xf32> to vector<8x96xf32>
    %627 = arith.addf %625, %626 : vector<8x96xf32>
    %628 = vector.extract_strided_slice %627 {offsets = [0, 0], sizes = [8, 32], strides = [1, 1]} : vector<8x96xf32> to vector<8x32xf32>
    %629 = vector.extract_strided_slice %627 {offsets = [0, 32], sizes = [8, 32], strides = [1, 1]} : vector<8x96xf32> to vector<8x32xf32>
    %630 = vector.extract_strided_slice %627 {offsets = [0, 64], sizes = [8, 32], strides = [1, 1]} : vector<8x96xf32> to vector<8x32xf32>
    %631 = vector.extract_strided_slice %628 {offsets = [0, 0], sizes = [8, 8], strides = [1, 1]} : vector<8x32xf32> to vector<8x8xf32>
    %632 = vector.extract_strided_slice %629 {offsets = [0, 0], sizes = [8, 8], strides = [1, 1]} : vector<8x32xf32> to vector<8x8xf32>
    %633 = vector.extract_strided_slice %630 {offsets = [0, 0], sizes = [8, 8], strides = [1, 1]} : vector<8x32xf32> to vector<8x8xf32>
    %cst_265 = arith.constant dense<0.000000e+00> : vector<8x8xf32>
    %634 = tpu.matmul %631, %632, %cst_265 {dimension_numbers = #tpu.dot_dimension_numbers<[1], [1], [0], [0], [0, 0, 1, 0], [], []>} : vector<8x8xf32>, vector<8x8xf32>, vector<8x8xf32> -> vector<8x8xf32>
    %cst_266 = arith.constant 0.353553385 : f32
    %635 = vector.broadcast %cst_266 : f32 to vector<8x8xf32>
    %636 = arith.mulf %634, %635 : vector<8x8xf32>
    %cst_267 = arith.constant dense<0xFF800000> : vector<8xf32>
    %637 = vector.multi_reduction <maximumf>, %636, %cst_267 [1] : vector<8x8xf32> to vector<8xf32>
    %638 = vector.shape_cast %637 : vector<8xf32> to vector<8x1xf32>
    %639 = vector.broadcast %638 : vector<8x1xf32> to vector<8x8xf32>
    %640 = arith.subf %636, %639 : vector<8x8xf32>
    %641 = math.exp %640 : vector<8x8xf32>
    %cst_268 = arith.constant dense<0.000000e+00> : vector<8xf32>
    %642 = vector.multi_reduction <add>, %641, %cst_268 [1] : vector<8x8xf32> to vector<8xf32>
    %643 = vector.shape_cast %642 : vector<8xf32> to vector<8x1xf32>
    %644 = tpu.reciprocal %643 {approx = true} : vector<8x1xf32> -> vector<8x1xf32>
    %645 = vector.broadcast %644 : vector<8x1xf32> to vector<8x8xf32>
    %646 = arith.mulf %641, %645 : vector<8x8xf32>
    %cst_269 = arith.constant dense<0.000000e+00> : vector<8x8xf32>
    %647 = tpu.matmul %646, %633, %cst_269 {dimension_numbers = #tpu.dot_dimension_numbers<[1], [0], [0], [1], [0, 0, 1, 1], [], []>} : vector<8x8xf32>, vector<8x8xf32>, vector<8x8xf32> -> vector<8x8xf32>
    %648 = vector.extract_strided_slice %628 {offsets = [0, 8], sizes = [8, 8], strides = [1, 1]} : vector<8x32xf32> to vector<8x8xf32>
    %649 = vector.extract_strided_slice %629 {offsets = [0, 8], sizes = [8, 8], strides = [1, 1]} : vector<8x32xf32> to vector<8x8xf32>
    %650 = vector.extract_strided_slice %630 {offsets = [0, 8], sizes = [8, 8], strides = [1, 1]} : vector<8x32xf32> to vector<8x8xf32>
    %cst_270 = arith.constant dense<0.000000e+00> : vector<8x8xf32>
    %651 = tpu.matmul %648, %649, %cst_270 {dimension_numbers = #tpu.dot_dimension_numbers<[1], [1], [0], [0], [0, 0, 1, 0], [], []>} : vector<8x8xf32>, vector<8x8xf32>, vector<8x8xf32> -> vector<8x8xf32>
    %cst_271 = arith.constant 0.353553385 : f32
    %652 = vector.broadcast %cst_271 : f32 to vector<8x8xf32>
    %653 = arith.mulf %651, %652 : vector<8x8xf32>
    %cst_272 = arith.constant dense<0xFF800000> : vector<8xf32>
    %654 = vector.multi_reduction <maximumf>, %653, %cst_272 [1] : vector<8x8xf32> to vector<8xf32>
    %655 = vector.shape_cast %654 : vector<8xf32> to vector<8x1xf32>
    %656 = vector.broadcast %655 : vector<8x1xf32> to vector<8x8xf32>
    %657 = arith.subf %653, %656 : vector<8x8xf32>
    %658 = math.exp %657 : vector<8x8xf32>
    %cst_273 = arith.constant dense<0.000000e+00> : vector<8xf32>
    %659 = vector.multi_reduction <add>, %658, %cst_273 [1] : vector<8x8xf32> to vector<8xf32>
    %660 = vector.shape_cast %659 : vector<8xf32> to vector<8x1xf32>
    %661 = tpu.reciprocal %660 {approx = true} : vector<8x1xf32> -> vector<8x1xf32>
    %662 = vector.broadcast %661 : vector<8x1xf32> to vector<8x8xf32>
    %663 = arith.mulf %658, %662 : vector<8x8xf32>
    %cst_274 = arith.constant dense<0.000000e+00> : vector<8x8xf32>
    %664 = tpu.matmul %663, %650, %cst_274 {dimension_numbers = #tpu.dot_dimension_numbers<[1], [0], [0], [1], [0, 0, 1, 1], [], []>} : vector<8x8xf32>, vector<8x8xf32>, vector<8x8xf32> -> vector<8x8xf32>
    %665 = vector.extract_strided_slice %628 {offsets = [0, 16], sizes = [8, 8], strides = [1, 1]} : vector<8x32xf32> to vector<8x8xf32>
    %666 = vector.extract_strided_slice %629 {offsets = [0, 16], sizes = [8, 8], strides = [1, 1]} : vector<8x32xf32> to vector<8x8xf32>
    %667 = vector.extract_strided_slice %630 {offsets = [0, 16], sizes = [8, 8], strides = [1, 1]} : vector<8x32xf32> to vector<8x8xf32>
    %cst_275 = arith.constant dense<0.000000e+00> : vector<8x8xf32>
    %668 = tpu.matmul %665, %666, %cst_275 {dimension_numbers = #tpu.dot_dimension_numbers<[1], [1], [0], [0], [0, 0, 1, 0], [], []>} : vector<8x8xf32>, vector<8x8xf32>, vector<8x8xf32> -> vector<8x8xf32>
    %cst_276 = arith.constant 0.353553385 : f32
    %669 = vector.broadcast %cst_276 : f32 to vector<8x8xf32>
    %670 = arith.mulf %668, %669 : vector<8x8xf32>
    %cst_277 = arith.constant dense<0xFF800000> : vector<8xf32>
    %671 = vector.multi_reduction <maximumf>, %670, %cst_277 [1] : vector<8x8xf32> to vector<8xf32>
    %672 = vector.shape_cast %671 : vector<8xf32> to vector<8x1xf32>
    %673 = vector.broadcast %672 : vector<8x1xf32> to vector<8x8xf32>
    %674 = arith.subf %670, %673 : vector<8x8xf32>
    %675 = math.exp %674 : vector<8x8xf32>
    %cst_278 = arith.constant dense<0.000000e+00> : vector<8xf32>
    %676 = vector.multi_reduction <add>, %675, %cst_278 [1] : vector<8x8xf32> to vector<8xf32>
    %677 = vector.shape_cast %676 : vector<8xf32> to vector<8x1xf32>
    %678 = tpu.reciprocal %677 {approx = true} : vector<8x1xf32> -> vector<8x1xf32>
    %679 = vector.broadcast %678 : vector<8x1xf32> to vector<8x8xf32>
    %680 = arith.mulf %675, %679 : vector<8x8xf32>
    %cst_279 = arith.constant dense<0.000000e+00> : vector<8x8xf32>
    %681 = tpu.matmul %680, %667, %cst_279 {dimension_numbers = #tpu.dot_dimension_numbers<[1], [0], [0], [1], [0, 0, 1, 1], [], []>} : vector<8x8xf32>, vector<8x8xf32>, vector<8x8xf32> -> vector<8x8xf32>
    %682 = vector.extract_strided_slice %628 {offsets = [0, 24], sizes = [8, 8], strides = [1, 1]} : vector<8x32xf32> to vector<8x8xf32>
    %683 = vector.extract_strided_slice %629 {offsets = [0, 24], sizes = [8, 8], strides = [1, 1]} : vector<8x32xf32> to vector<8x8xf32>
    %684 = vector.extract_strided_slice %630 {offsets = [0, 24], sizes = [8, 8], strides = [1, 1]} : vector<8x32xf32> to vector<8x8xf32>
    %cst_280 = arith.constant dense<0.000000e+00> : vector<8x8xf32>
    %685 = tpu.matmul %682, %683, %cst_280 {dimension_numbers = #tpu.dot_dimension_numbers<[1], [1], [0], [0], [0, 0, 1, 0], [], []>} : vector<8x8xf32>, vector<8x8xf32>, vector<8x8xf32> -> vector<8x8xf32>
    %cst_281 = arith.constant 0.353553385 : f32
    %686 = vector.broadcast %cst_281 : f32 to vector<8x8xf32>
    %687 = arith.mulf %685, %686 : vector<8x8xf32>
    %cst_282 = arith.constant dense<0xFF800000> : vector<8xf32>
    %688 = vector.multi_reduction <maximumf>, %687, %cst_282 [1] : vector<8x8xf32> to vector<8xf32>
    %689 = vector.shape_cast %688 : vector<8xf32> to vector<8x1xf32>
    %690 = vector.broadcast %689 : vector<8x1xf32> to vector<8x8xf32>
    %691 = arith.subf %687, %690 : vector<8x8xf32>
    %692 = math.exp %691 : vector<8x8xf32>
    %cst_283 = arith.constant dense<0.000000e+00> : vector<8xf32>
    %693 = vector.multi_reduction <add>, %692, %cst_283 [1] : vector<8x8xf32> to vector<8xf32>
    %694 = vector.shape_cast %693 : vector<8xf32> to vector<8x1xf32>
    %695 = tpu.reciprocal %694 {approx = true} : vector<8x1xf32> -> vector<8x1xf32>
    %696 = vector.broadcast %695 : vector<8x1xf32> to vector<8x8xf32>
    %697 = arith.mulf %692, %696 : vector<8x8xf32>
    %cst_284 = arith.constant dense<0.000000e+00> : vector<8x8xf32>
    %698 = tpu.matmul %697, %684, %cst_284 {dimension_numbers = #tpu.dot_dimension_numbers<[1], [0], [0], [1], [0, 0, 1, 1], [], []>} : vector<8x8xf32>, vector<8x8xf32>, vector<8x8xf32> -> vector<8x8xf32>
    %699 = tpu.concatenate %647, %664, %681, %698 in 1 : vector<8x8xf32>, vector<8x8xf32>, vector<8x8xf32>, vector<8x8xf32> -> vector<8x32xf32>
    %c1_285 = arith.constant 1 : index
    %c0_286 = arith.constant 0 : index
    %c0_287 = arith.constant 0 : index
    %700 = vector.load %arg18[%c1_285, %c0_286, %c0_287] : memref<2x32x32xf32, #tpu.memory_space<vmem>>, vector<1x32x32xf32>
    %701 = vector.shape_cast %700 : vector<1x32x32xf32> to vector<32x32xf32>
    %c1_288 = arith.constant 1 : index
    %c0_289 = arith.constant 0 : index
    %c0_290 = arith.constant 0 : index
    %702 = vector.load %arg19[%c1_288, %c0_289, %c0_290] : memref<2x1x32xf32, #tpu.memory_space<vmem>>, vector<1x1x32xf32>
    %703 = vector.shape_cast %702 : vector<1x1x32xf32> to vector<1x32xf32>
    %cst_291 = arith.constant dense<0.000000e+00> : vector<8x32xf32>
    %704 = tpu.matmul %699, %701, %cst_291 {dimension_numbers = #tpu.dot_dimension_numbers<[1], [0], [0], [1], [0, 0, 1, 1], [], []>} : vector<8x32xf32>, vector<32x32xf32>, vector<8x32xf32> -> vector<8x32xf32>
    %705 = vector.broadcast %703 : vector<1x32xf32> to vector<8x32xf32>
    %706 = arith.addf %704, %705 : vector<8x32xf32>
    %707 = arith.addf %620, %706 : vector<8x32xf32>
    %c1_292 = arith.constant 1 : index
    %c0_293 = arith.constant 0 : index
    %c0_294 = arith.constant 0 : index
    %708 = vector.load %arg20[%c1_292, %c0_293, %c0_294] : memref<2x2x32xf32, #tpu.memory_space<vmem>>, vector<1x2x32xf32>
    %709 = vector.shape_cast %708 : vector<1x2x32xf32> to vector<2x32xf32>
    %710 = vector.extract_strided_slice %709 {offsets = [0, 0], sizes = [1, 32], strides = [1, 1]} : vector<2x32xf32> to vector<1x32xf32>
    %711 = vector.extract_strided_slice %709 {offsets = [1, 0], sizes = [1, 32], strides = [1, 1]} : vector<2x32xf32> to vector<1x32xf32>
    %cst_295 = arith.constant dense<0.000000e+00> : vector<8xf32>
    %712 = vector.multi_reduction <add>, %707, %cst_295 [1] : vector<8x32xf32> to vector<8xf32>
    %713 = vector.shape_cast %712 : vector<8xf32> to vector<8x1xf32>
    %cst_296 = arith.constant 3.200000e+01 : f32
    %714 = vector.broadcast %cst_296 : f32 to vector<8x1xf32>
    %715 = arith.divf %713, %714 : vector<8x1xf32>
    %716 = vector.broadcast %715 : vector<8x1xf32> to vector<8x32xf32>
    %717 = arith.subf %707, %716 : vector<8x32xf32>
    %718 = arith.mulf %717, %717 : vector<8x32xf32>
    %cst_297 = arith.constant dense<0.000000e+00> : vector<8xf32>
    %719 = vector.multi_reduction <add>, %718, %cst_297 [1] : vector<8x32xf32> to vector<8xf32>
    %720 = vector.shape_cast %719 : vector<8xf32> to vector<8x1xf32>
    %cst_298 = arith.constant 3.200000e+01 : f32
    %721 = vector.broadcast %cst_298 : f32 to vector<8x1xf32>
    %722 = arith.divf %720, %721 : vector<8x1xf32>
    %723 = vector.broadcast %715 : vector<8x1xf32> to vector<8x32xf32>
    %724 = arith.subf %707, %723 : vector<8x32xf32>
    %cst_299 = arith.constant 9.99999974E-6 : f32
    %725 = vector.broadcast %cst_299 : f32 to vector<8x1xf32>
    %726 = arith.addf %722, %725 : vector<8x1xf32>
    %727 = math.rsqrt %726 : vector<8x1xf32>
    %728 = vector.broadcast %727 : vector<8x1xf32> to vector<8x32xf32>
    %729 = arith.mulf %724, %728 : vector<8x32xf32>
    %730 = vector.broadcast %710 : vector<1x32xf32> to vector<8x32xf32>
    %731 = arith.mulf %729, %730 : vector<8x32xf32>
    %732 = vector.broadcast %711 : vector<1x32xf32> to vector<8x32xf32>
    %733 = arith.addf %731, %732 : vector<8x32xf32>
    %c1_300 = arith.constant 1 : index
    %c0_301 = arith.constant 0 : index
    %c0_302 = arith.constant 0 : index
    %734 = vector.load %arg21[%c1_300, %c0_301, %c0_302] : memref<2x32x32xf32, #tpu.memory_space<vmem>>, vector<1x32x32xf32>
    %735 = vector.shape_cast %734 : vector<1x32x32xf32> to vector<32x32xf32>
    %c1_303 = arith.constant 1 : index
    %c0_304 = arith.constant 0 : index
    %c0_305 = arith.constant 0 : index
    %736 = vector.load %arg22[%c1_303, %c0_304, %c0_305] : memref<2x1x32xf32, #tpu.memory_space<vmem>>, vector<1x1x32xf32>
    %737 = vector.shape_cast %736 : vector<1x1x32xf32> to vector<1x32xf32>
    %cst_306 = arith.constant dense<0.000000e+00> : vector<8x32xf32>
    %738 = tpu.matmul %733, %735, %cst_306 {dimension_numbers = #tpu.dot_dimension_numbers<[1], [0], [0], [1], [0, 0, 1, 1], [], []>} : vector<8x32xf32>, vector<32x32xf32>, vector<8x32xf32> -> vector<8x32xf32>
    %739 = vector.broadcast %737 : vector<1x32xf32> to vector<8x32xf32>
    %740 = arith.addf %738, %739 : vector<8x32xf32>
    %c1_307 = arith.constant 1 : index
    %c0_308 = arith.constant 0 : index
    %c0_309 = arith.constant 0 : index
    %741 = vector.load %arg23[%c1_307, %c0_308, %c0_309] : memref<2x32x64xf32, #tpu.memory_space<vmem>>, vector<1x32x64xf32>
    %742 = vector.shape_cast %741 : vector<1x32x64xf32> to vector<32x64xf32>
    %c1_310 = arith.constant 1 : index
    %c0_311 = arith.constant 0 : index
    %c0_312 = arith.constant 0 : index
    %743 = vector.load %arg24[%c1_310, %c0_311, %c0_312] : memref<2x1x64xf32, #tpu.memory_space<vmem>>, vector<1x1x64xf32>
    %744 = vector.shape_cast %743 : vector<1x1x64xf32> to vector<1x64xf32>
    %cst_313 = arith.constant dense<0.000000e+00> : vector<8x64xf32>
    %745 = tpu.matmul %345, %742, %cst_313 {dimension_numbers = #tpu.dot_dimension_numbers<[1], [0], [0], [1], [0, 0, 1, 1], [], []>} : vector<8x32xf32>, vector<32x64xf32>, vector<8x64xf32> -> vector<8x64xf32>
    %746 = vector.broadcast %744 : vector<1x64xf32> to vector<8x64xf32>
    %747 = arith.addf %745, %746 : vector<8x64xf32>
    %748 = vector.extract_strided_slice %747 {offsets = [0, 0], sizes = [8, 32], strides = [1, 1]} : vector<8x64xf32> to vector<8x32xf32>
    %749 = vector.extract_strided_slice %747 {offsets = [0, 32], sizes = [8, 32], strides = [1, 1]} : vector<8x64xf32> to vector<8x32xf32>
    %750 = vector.extract_strided_slice %740 {offsets = [0, 0], sizes = [8, 8], strides = [1, 1]} : vector<8x32xf32> to vector<8x8xf32>
    %751 = vector.extract_strided_slice %748 {offsets = [0, 0], sizes = [8, 8], strides = [1, 1]} : vector<8x32xf32> to vector<8x8xf32>
    %752 = vector.extract_strided_slice %749 {offsets = [0, 0], sizes = [8, 8], strides = [1, 1]} : vector<8x32xf32> to vector<8x8xf32>
    %cst_314 = arith.constant dense<0.000000e+00> : vector<8x8xf32>
    %753 = tpu.matmul %750, %751, %cst_314 {dimension_numbers = #tpu.dot_dimension_numbers<[1], [1], [0], [0], [0, 0, 1, 0], [], []>} : vector<8x8xf32>, vector<8x8xf32>, vector<8x8xf32> -> vector<8x8xf32>
    %cst_315 = arith.constant 0.353553385 : f32
    %754 = vector.broadcast %cst_315 : f32 to vector<8x8xf32>
    %755 = arith.mulf %753, %754 : vector<8x8xf32>
    %cst_316 = arith.constant dense<0xFF800000> : vector<8xf32>
    %756 = vector.multi_reduction <maximumf>, %755, %cst_316 [1] : vector<8x8xf32> to vector<8xf32>
    %757 = vector.shape_cast %756 : vector<8xf32> to vector<8x1xf32>
    %758 = vector.broadcast %757 : vector<8x1xf32> to vector<8x8xf32>
    %759 = arith.subf %755, %758 : vector<8x8xf32>
    %760 = math.exp %759 : vector<8x8xf32>
    %cst_317 = arith.constant dense<0.000000e+00> : vector<8xf32>
    %761 = vector.multi_reduction <add>, %760, %cst_317 [1] : vector<8x8xf32> to vector<8xf32>
    %762 = vector.shape_cast %761 : vector<8xf32> to vector<8x1xf32>
    %763 = tpu.reciprocal %762 {approx = true} : vector<8x1xf32> -> vector<8x1xf32>
    %764 = vector.broadcast %763 : vector<8x1xf32> to vector<8x8xf32>
    %765 = arith.mulf %760, %764 : vector<8x8xf32>
    %cst_318 = arith.constant dense<0.000000e+00> : vector<8x8xf32>
    %766 = tpu.matmul %765, %752, %cst_318 {dimension_numbers = #tpu.dot_dimension_numbers<[1], [0], [0], [1], [0, 0, 1, 1], [], []>} : vector<8x8xf32>, vector<8x8xf32>, vector<8x8xf32> -> vector<8x8xf32>
    %767 = vector.extract_strided_slice %740 {offsets = [0, 8], sizes = [8, 8], strides = [1, 1]} : vector<8x32xf32> to vector<8x8xf32>
    %768 = vector.extract_strided_slice %748 {offsets = [0, 8], sizes = [8, 8], strides = [1, 1]} : vector<8x32xf32> to vector<8x8xf32>
    %769 = vector.extract_strided_slice %749 {offsets = [0, 8], sizes = [8, 8], strides = [1, 1]} : vector<8x32xf32> to vector<8x8xf32>
    %cst_319 = arith.constant dense<0.000000e+00> : vector<8x8xf32>
    %770 = tpu.matmul %767, %768, %cst_319 {dimension_numbers = #tpu.dot_dimension_numbers<[1], [1], [0], [0], [0, 0, 1, 0], [], []>} : vector<8x8xf32>, vector<8x8xf32>, vector<8x8xf32> -> vector<8x8xf32>
    %cst_320 = arith.constant 0.353553385 : f32
    %771 = vector.broadcast %cst_320 : f32 to vector<8x8xf32>
    %772 = arith.mulf %770, %771 : vector<8x8xf32>
    %cst_321 = arith.constant dense<0xFF800000> : vector<8xf32>
    %773 = vector.multi_reduction <maximumf>, %772, %cst_321 [1] : vector<8x8xf32> to vector<8xf32>
    %774 = vector.shape_cast %773 : vector<8xf32> to vector<8x1xf32>
    %775 = vector.broadcast %774 : vector<8x1xf32> to vector<8x8xf32>
    %776 = arith.subf %772, %775 : vector<8x8xf32>
    %777 = math.exp %776 : vector<8x8xf32>
    %cst_322 = arith.constant dense<0.000000e+00> : vector<8xf32>
    %778 = vector.multi_reduction <add>, %777, %cst_322 [1] : vector<8x8xf32> to vector<8xf32>
    %779 = vector.shape_cast %778 : vector<8xf32> to vector<8x1xf32>
    %780 = tpu.reciprocal %779 {approx = true} : vector<8x1xf32> -> vector<8x1xf32>
    %781 = vector.broadcast %780 : vector<8x1xf32> to vector<8x8xf32>
    %782 = arith.mulf %777, %781 : vector<8x8xf32>
    %cst_323 = arith.constant dense<0.000000e+00> : vector<8x8xf32>
    %783 = tpu.matmul %782, %769, %cst_323 {dimension_numbers = #tpu.dot_dimension_numbers<[1], [0], [0], [1], [0, 0, 1, 1], [], []>} : vector<8x8xf32>, vector<8x8xf32>, vector<8x8xf32> -> vector<8x8xf32>
    %784 = vector.extract_strided_slice %740 {offsets = [0, 16], sizes = [8, 8], strides = [1, 1]} : vector<8x32xf32> to vector<8x8xf32>
    %785 = vector.extract_strided_slice %748 {offsets = [0, 16], sizes = [8, 8], strides = [1, 1]} : vector<8x32xf32> to vector<8x8xf32>
    %786 = vector.extract_strided_slice %749 {offsets = [0, 16], sizes = [8, 8], strides = [1, 1]} : vector<8x32xf32> to vector<8x8xf32>
    %cst_324 = arith.constant dense<0.000000e+00> : vector<8x8xf32>
    %787 = tpu.matmul %784, %785, %cst_324 {dimension_numbers = #tpu.dot_dimension_numbers<[1], [1], [0], [0], [0, 0, 1, 0], [], []>} : vector<8x8xf32>, vector<8x8xf32>, vector<8x8xf32> -> vector<8x8xf32>
    %cst_325 = arith.constant 0.353553385 : f32
    %788 = vector.broadcast %cst_325 : f32 to vector<8x8xf32>
    %789 = arith.mulf %787, %788 : vector<8x8xf32>
    %cst_326 = arith.constant dense<0xFF800000> : vector<8xf32>
    %790 = vector.multi_reduction <maximumf>, %789, %cst_326 [1] : vector<8x8xf32> to vector<8xf32>
    %791 = vector.shape_cast %790 : vector<8xf32> to vector<8x1xf32>
    %792 = vector.broadcast %791 : vector<8x1xf32> to vector<8x8xf32>
    %793 = arith.subf %789, %792 : vector<8x8xf32>
    %794 = math.exp %793 : vector<8x8xf32>
    %cst_327 = arith.constant dense<0.000000e+00> : vector<8xf32>
    %795 = vector.multi_reduction <add>, %794, %cst_327 [1] : vector<8x8xf32> to vector<8xf32>
    %796 = vector.shape_cast %795 : vector<8xf32> to vector<8x1xf32>
    %797 = tpu.reciprocal %796 {approx = true} : vector<8x1xf32> -> vector<8x1xf32>
    %798 = vector.broadcast %797 : vector<8x1xf32> to vector<8x8xf32>
    %799 = arith.mulf %794, %798 : vector<8x8xf32>
    %cst_328 = arith.constant dense<0.000000e+00> : vector<8x8xf32>
    %800 = tpu.matmul %799, %786, %cst_328 {dimension_numbers = #tpu.dot_dimension_numbers<[1], [0], [0], [1], [0, 0, 1, 1], [], []>} : vector<8x8xf32>, vector<8x8xf32>, vector<8x8xf32> -> vector<8x8xf32>
    %801 = vector.extract_strided_slice %740 {offsets = [0, 24], sizes = [8, 8], strides = [1, 1]} : vector<8x32xf32> to vector<8x8xf32>
    %802 = vector.extract_strided_slice %748 {offsets = [0, 24], sizes = [8, 8], strides = [1, 1]} : vector<8x32xf32> to vector<8x8xf32>
    %803 = vector.extract_strided_slice %749 {offsets = [0, 24], sizes = [8, 8], strides = [1, 1]} : vector<8x32xf32> to vector<8x8xf32>
    %cst_329 = arith.constant dense<0.000000e+00> : vector<8x8xf32>
    %804 = tpu.matmul %801, %802, %cst_329 {dimension_numbers = #tpu.dot_dimension_numbers<[1], [1], [0], [0], [0, 0, 1, 0], [], []>} : vector<8x8xf32>, vector<8x8xf32>, vector<8x8xf32> -> vector<8x8xf32>
    %cst_330 = arith.constant 0.353553385 : f32
    %805 = vector.broadcast %cst_330 : f32 to vector<8x8xf32>
    %806 = arith.mulf %804, %805 : vector<8x8xf32>
    %cst_331 = arith.constant dense<0xFF800000> : vector<8xf32>
    %807 = vector.multi_reduction <maximumf>, %806, %cst_331 [1] : vector<8x8xf32> to vector<8xf32>
    %808 = vector.shape_cast %807 : vector<8xf32> to vector<8x1xf32>
    %809 = vector.broadcast %808 : vector<8x1xf32> to vector<8x8xf32>
    %810 = arith.subf %806, %809 : vector<8x8xf32>
    %811 = math.exp %810 : vector<8x8xf32>
    %cst_332 = arith.constant dense<0.000000e+00> : vector<8xf32>
    %812 = vector.multi_reduction <add>, %811, %cst_332 [1] : vector<8x8xf32> to vector<8xf32>
    %813 = vector.shape_cast %812 : vector<8xf32> to vector<8x1xf32>
    %814 = tpu.reciprocal %813 {approx = true} : vector<8x1xf32> -> vector<8x1xf32>
    %815 = vector.broadcast %814 : vector<8x1xf32> to vector<8x8xf32>
    %816 = arith.mulf %811, %815 : vector<8x8xf32>
    %cst_333 = arith.constant dense<0.000000e+00> : vector<8x8xf32>
    %817 = tpu.matmul %816, %803, %cst_333 {dimension_numbers = #tpu.dot_dimension_numbers<[1], [0], [0], [1], [0, 0, 1, 1], [], []>} : vector<8x8xf32>, vector<8x8xf32>, vector<8x8xf32> -> vector<8x8xf32>
    %818 = tpu.concatenate %766, %783, %800, %817 in 1 : vector<8x8xf32>, vector<8x8xf32>, vector<8x8xf32>, vector<8x8xf32> -> vector<8x32xf32>
    %c1_334 = arith.constant 1 : index
    %c0_335 = arith.constant 0 : index
    %c0_336 = arith.constant 0 : index
    %819 = vector.load %arg25[%c1_334, %c0_335, %c0_336] : memref<2x32x32xf32, #tpu.memory_space<vmem>>, vector<1x32x32xf32>
    %820 = vector.shape_cast %819 : vector<1x32x32xf32> to vector<32x32xf32>
    %c1_337 = arith.constant 1 : index
    %c0_338 = arith.constant 0 : index
    %c0_339 = arith.constant 0 : index
    %821 = vector.load %arg26[%c1_337, %c0_338, %c0_339] : memref<2x1x32xf32, #tpu.memory_space<vmem>>, vector<1x1x32xf32>
    %822 = vector.shape_cast %821 : vector<1x1x32xf32> to vector<1x32xf32>
    %cst_340 = arith.constant dense<0.000000e+00> : vector<8x32xf32>
    %823 = tpu.matmul %818, %820, %cst_340 {dimension_numbers = #tpu.dot_dimension_numbers<[1], [0], [0], [1], [0, 0, 1, 1], [], []>} : vector<8x32xf32>, vector<32x32xf32>, vector<8x32xf32> -> vector<8x32xf32>
    %824 = vector.broadcast %822 : vector<1x32xf32> to vector<8x32xf32>
    %825 = arith.addf %823, %824 : vector<8x32xf32>
    %826 = arith.addf %733, %825 : vector<8x32xf32>
    %c1_341 = arith.constant 1 : index
    %c0_342 = arith.constant 0 : index
    %c0_343 = arith.constant 0 : index
    %827 = vector.load %arg27[%c1_341, %c0_342, %c0_343] : memref<2x2x32xf32, #tpu.memory_space<vmem>>, vector<1x2x32xf32>
    %828 = vector.shape_cast %827 : vector<1x2x32xf32> to vector<2x32xf32>
    %829 = vector.extract_strided_slice %828 {offsets = [0, 0], sizes = [1, 32], strides = [1, 1]} : vector<2x32xf32> to vector<1x32xf32>
    %830 = vector.extract_strided_slice %828 {offsets = [1, 0], sizes = [1, 32], strides = [1, 1]} : vector<2x32xf32> to vector<1x32xf32>
    %cst_344 = arith.constant dense<0.000000e+00> : vector<8xf32>
    %831 = vector.multi_reduction <add>, %826, %cst_344 [1] : vector<8x32xf32> to vector<8xf32>
    %832 = vector.shape_cast %831 : vector<8xf32> to vector<8x1xf32>
    %cst_345 = arith.constant 3.200000e+01 : f32
    %833 = vector.broadcast %cst_345 : f32 to vector<8x1xf32>
    %834 = arith.divf %832, %833 : vector<8x1xf32>
    %835 = vector.broadcast %834 : vector<8x1xf32> to vector<8x32xf32>
    %836 = arith.subf %826, %835 : vector<8x32xf32>
    %837 = arith.mulf %836, %836 : vector<8x32xf32>
    %cst_346 = arith.constant dense<0.000000e+00> : vector<8xf32>
    %838 = vector.multi_reduction <add>, %837, %cst_346 [1] : vector<8x32xf32> to vector<8xf32>
    %839 = vector.shape_cast %838 : vector<8xf32> to vector<8x1xf32>
    %cst_347 = arith.constant 3.200000e+01 : f32
    %840 = vector.broadcast %cst_347 : f32 to vector<8x1xf32>
    %841 = arith.divf %839, %840 : vector<8x1xf32>
    %842 = vector.broadcast %834 : vector<8x1xf32> to vector<8x32xf32>
    %843 = arith.subf %826, %842 : vector<8x32xf32>
    %cst_348 = arith.constant 9.99999974E-6 : f32
    %844 = vector.broadcast %cst_348 : f32 to vector<8x1xf32>
    %845 = arith.addf %841, %844 : vector<8x1xf32>
    %846 = math.rsqrt %845 : vector<8x1xf32>
    %847 = vector.broadcast %846 : vector<8x1xf32> to vector<8x32xf32>
    %848 = arith.mulf %843, %847 : vector<8x32xf32>
    %849 = vector.broadcast %829 : vector<1x32xf32> to vector<8x32xf32>
    %850 = arith.mulf %848, %849 : vector<8x32xf32>
    %851 = vector.broadcast %830 : vector<1x32xf32> to vector<8x32xf32>
    %852 = arith.addf %850, %851 : vector<8x32xf32>
    %c1_349 = arith.constant 1 : index
    %c0_350 = arith.constant 0 : index
    %c0_351 = arith.constant 0 : index
    %853 = vector.load %arg28[%c1_349, %c0_350, %c0_351] : memref<2x32x128xf32, #tpu.memory_space<vmem>>, vector<1x32x128xf32>
    %854 = vector.shape_cast %853 : vector<1x32x128xf32> to vector<32x128xf32>
    %c1_352 = arith.constant 1 : index
    %c0_353 = arith.constant 0 : index
    %c0_354 = arith.constant 0 : index
    %855 = vector.load %arg29[%c1_352, %c0_353, %c0_354] : memref<2x1x128xf32, #tpu.memory_space<vmem>>, vector<1x1x128xf32>
    %856 = vector.shape_cast %855 : vector<1x1x128xf32> to vector<1x128xf32>
    %cst_355 = arith.constant dense<0.000000e+00> : vector<8x128xf32>
    %857 = tpu.matmul %852, %854, %cst_355 {dimension_numbers = #tpu.dot_dimension_numbers<[1], [0], [0], [1], [0, 0, 1, 1], [], []>} : vector<8x32xf32>, vector<32x128xf32>, vector<8x128xf32> -> vector<8x128xf32>
    %858 = vector.broadcast %856 : vector<1x128xf32> to vector<8x128xf32>
    %859 = arith.addf %857, %858 : vector<8x128xf32>
    %cst_356 = arith.constant 0.000000e+00 : f32
    %860 = vector.broadcast %cst_356 : f32 to vector<8x128xf32>
    %861 = arith.maximumf %859, %860 : vector<8x128xf32>
    %c1_357 = arith.constant 1 : index
    %c0_358 = arith.constant 0 : index
    %c0_359 = arith.constant 0 : index
    %862 = vector.load %arg30[%c1_357, %c0_358, %c0_359] : memref<2x128x32xf32, #tpu.memory_space<vmem>>, vector<1x128x32xf32>
    %863 = vector.shape_cast %862 : vector<1x128x32xf32> to vector<128x32xf32>
    %c1_360 = arith.constant 1 : index
    %c0_361 = arith.constant 0 : index
    %c0_362 = arith.constant 0 : index
    %864 = vector.load %arg31[%c1_360, %c0_361, %c0_362] : memref<2x1x32xf32, #tpu.memory_space<vmem>>, vector<1x1x32xf32>
    %865 = vector.shape_cast %864 : vector<1x1x32xf32> to vector<1x32xf32>
    %cst_363 = arith.constant dense<0.000000e+00> : vector<8x32xf32>
    %866 = tpu.matmul %861, %863, %cst_363 {dimension_numbers = #tpu.dot_dimension_numbers<[1], [0], [0], [1], [0, 0, 1, 1], [], []>} : vector<8x128xf32>, vector<128x32xf32>, vector<8x32xf32> -> vector<8x32xf32>
    %867 = vector.broadcast %865 : vector<1x32xf32> to vector<8x32xf32>
    %868 = arith.addf %866, %867 : vector<8x32xf32>
    %869 = arith.addf %852, %868 : vector<8x32xf32>
    %c1_364 = arith.constant 1 : index
    %c0_365 = arith.constant 0 : index
    %c0_366 = arith.constant 0 : index
    %870 = vector.load %arg32[%c1_364, %c0_365, %c0_366] : memref<2x2x32xf32, #tpu.memory_space<vmem>>, vector<1x2x32xf32>
    %871 = vector.shape_cast %870 : vector<1x2x32xf32> to vector<2x32xf32>
    %872 = vector.extract_strided_slice %871 {offsets = [0, 0], sizes = [1, 32], strides = [1, 1]} : vector<2x32xf32> to vector<1x32xf32>
    %873 = vector.extract_strided_slice %871 {offsets = [1, 0], sizes = [1, 32], strides = [1, 1]} : vector<2x32xf32> to vector<1x32xf32>
    %cst_367 = arith.constant dense<0.000000e+00> : vector<8xf32>
    %874 = vector.multi_reduction <add>, %869, %cst_367 [1] : vector<8x32xf32> to vector<8xf32>
    %875 = vector.shape_cast %874 : vector<8xf32> to vector<8x1xf32>
    %cst_368 = arith.constant 3.200000e+01 : f32
    %876 = vector.broadcast %cst_368 : f32 to vector<8x1xf32>
    %877 = arith.divf %875, %876 : vector<8x1xf32>
    %878 = vector.broadcast %877 : vector<8x1xf32> to vector<8x32xf32>
    %879 = arith.subf %869, %878 : vector<8x32xf32>
    %880 = arith.mulf %879, %879 : vector<8x32xf32>
    %cst_369 = arith.constant dense<0.000000e+00> : vector<8xf32>
    %881 = vector.multi_reduction <add>, %880, %cst_369 [1] : vector<8x32xf32> to vector<8xf32>
    %882 = vector.shape_cast %881 : vector<8xf32> to vector<8x1xf32>
    %cst_370 = arith.constant 3.200000e+01 : f32
    %883 = vector.broadcast %cst_370 : f32 to vector<8x1xf32>
    %884 = arith.divf %882, %883 : vector<8x1xf32>
    %885 = vector.broadcast %877 : vector<8x1xf32> to vector<8x32xf32>
    %886 = arith.subf %869, %885 : vector<8x32xf32>
    %cst_371 = arith.constant 9.99999974E-6 : f32
    %887 = vector.broadcast %cst_371 : f32 to vector<8x1xf32>
    %888 = arith.addf %884, %887 : vector<8x1xf32>
    %889 = math.rsqrt %888 : vector<8x1xf32>
    %890 = vector.broadcast %889 : vector<8x1xf32> to vector<8x32xf32>
    %891 = arith.mulf %886, %890 : vector<8x32xf32>
    %892 = vector.broadcast %872 : vector<1x32xf32> to vector<8x32xf32>
    %893 = arith.mulf %891, %892 : vector<8x32xf32>
    %894 = vector.broadcast %873 : vector<1x32xf32> to vector<8x32xf32>
    %895 = arith.addf %893, %894 : vector<8x32xf32>
    %c0_372 = arith.constant 0 : index
    %c0_373 = arith.constant 0 : index
    %896 = vector.load %arg33[%c0_372, %c0_373] : memref<2x32xf32, #tpu.memory_space<vmem>>, vector<2x32xf32>
    %897 = vector.extract_strided_slice %896 {offsets = [0, 0], sizes = [1, 32], strides = [1, 1]} : vector<2x32xf32> to vector<1x32xf32>
    %898 = vector.extract_strided_slice %896 {offsets = [1, 0], sizes = [1, 32], strides = [1, 1]} : vector<2x32xf32> to vector<1x32xf32>
    %cst_374 = arith.constant dense<0.000000e+00> : vector<8xf32>
    %899 = vector.multi_reduction <add>, %895, %cst_374 [1] : vector<8x32xf32> to vector<8xf32>
    %900 = vector.shape_cast %899 : vector<8xf32> to vector<8x1xf32>
    %cst_375 = arith.constant 3.200000e+01 : f32
    %901 = vector.broadcast %cst_375 : f32 to vector<8x1xf32>
    %902 = arith.divf %900, %901 : vector<8x1xf32>
    %903 = vector.broadcast %902 : vector<8x1xf32> to vector<8x32xf32>
    %904 = arith.subf %895, %903 : vector<8x32xf32>
    %905 = arith.mulf %904, %904 : vector<8x32xf32>
    %cst_376 = arith.constant dense<0.000000e+00> : vector<8xf32>
    %906 = vector.multi_reduction <add>, %905, %cst_376 [1] : vector<8x32xf32> to vector<8xf32>
    %907 = vector.shape_cast %906 : vector<8xf32> to vector<8x1xf32>
    %cst_377 = arith.constant 3.200000e+01 : f32
    %908 = vector.broadcast %cst_377 : f32 to vector<8x1xf32>
    %909 = arith.divf %907, %908 : vector<8x1xf32>
    %910 = vector.broadcast %902 : vector<8x1xf32> to vector<8x32xf32>
    %911 = arith.subf %895, %910 : vector<8x32xf32>
    %cst_378 = arith.constant 9.99999974E-6 : f32
    %912 = vector.broadcast %cst_378 : f32 to vector<8x1xf32>
    %913 = arith.addf %909, %912 : vector<8x1xf32>
    %914 = math.rsqrt %913 : vector<8x1xf32>
    %915 = vector.broadcast %914 : vector<8x1xf32> to vector<8x32xf32>
    %916 = arith.mulf %911, %915 : vector<8x32xf32>
    %917 = vector.broadcast %897 : vector<1x32xf32> to vector<8x32xf32>
    %918 = arith.mulf %916, %917 : vector<8x32xf32>
    %919 = vector.broadcast %898 : vector<1x32xf32> to vector<8x32xf32>
    %920 = arith.addf %918, %919 : vector<8x32xf32>
    %921 = vector.extract_strided_slice %920 {offsets = [7, 0], sizes = [1, 32], strides = [1, 1]} : vector<8x32xf32> to vector<1x32xf32>
    %c0_379 = arith.constant 0 : index
    %c0_380 = arith.constant 0 : index
    %922 = vector.load %arg34[%c0_379, %c0_380] : memref<32x4xf32, #tpu.memory_space<vmem>>, vector<32x4xf32>
    %c0_381 = arith.constant 0 : index
    %c0_382 = arith.constant 0 : index
    %923 = vector.load %arg35[%c0_381, %c0_382] : memref<1x4xf32, #tpu.memory_space<vmem>>, vector<1x4xf32>
    %cst_383 = arith.constant dense<0.000000e+00> : vector<1x4xf32>
    %924 = tpu.matmul %921, %922, %cst_383 {dimension_numbers = #tpu.dot_dimension_numbers<[1], [0], [0], [1], [0, 0, 1, 1], [], []>} : vector<1x32xf32>, vector<32x4xf32>, vector<1x4xf32> -> vector<1x4xf32>
    %925 = arith.addf %924, %923 : vector<1x4xf32>
    %c0_384 = arith.constant 0 : index
    %c0_385 = arith.constant 0 : index
    %c0_386 = arith.constant 0 : index
    %926 = vector.load %arg36[%c0_384, %c0_385, %c0_386] : memref<1x1x4xf32, #tpu.memory_space<vmem>>, vector<1x1x4xf32>
    %927 = vector.shape_cast %926 : vector<1x1x4xf32> to vector<1x4xf32>
    %928 = vector.shape_cast %925 : vector<1x4xf32> to vector<1x1x4xf32>
    tpu.vector_store %arg36[%c0_384, %c0_385, %c0_386], %928 {strides = array<i32>} : memref<1x1x4xf32, #tpu.memory_space<vmem>>, vector<1x1x4xf32>,
    return
  }
  func.func @transform_0(%arg0: i32) -> (i32, i32, i32) {
    %c0_i32 = arith.constant 0 : i32
    %c0_i32_0 = arith.constant 0 : i32
    %c0_i32_1 = arith.constant 0 : i32
    return %arg0, %c0_i32, %c0_i32_0 : i32, i32, i32
  }
  func.func @transform_1(%arg0: i32) -> (i32, i32) {
    %c0_i32 = arith.constant 0 : i32
    %c0_i32_0 = arith.constant 0 : i32
    %c0_i32_1 = arith.constant 0 : i32
    return %c0_i32, %c0_i32_0 : i32, i32
  }
  func.func @transform_2(%arg0: i32) -> (i32, i32) {
    %c0_i32 = arith.constant 0 : i32
    %c0_i32_0 = arith.constant 0 : i32
    %c0_i32_1 = arith.constant 0 : i32
    return %c0_i32, %c0_i32_0 : i32, i32
  }
  func.func @transform_3(%arg0: i32) -> (i32, i32) {
    %c0_i32 = arith.constant 0 : i32
    %c0_i32_0 = arith.constant 0 : i32
    %c0_i32_1 = arith.constant 0 : i32
    return %c0_i32, %c0_i32_0 : i32, i32
  }
  func.func @transform_4(%arg0: i32) -> (i32, i32, i32) {
    %c0_i32 = arith.constant 0 : i32
    %c0_i32_0 = arith.constant 0 : i32
    %c0_i32_1 = arith.constant 0 : i32
    %c0_i32_2 = arith.constant 0 : i32
    return %c0_i32, %c0_i32_0, %c0_i32_1 : i32, i32, i32
  }
  func.func @transform_5(%arg0: i32) -> (i32, i32, i32) {
    %c0_i32 = arith.constant 0 : i32
    %c0_i32_0 = arith.constant 0 : i32
    %c0_i32_1 = arith.constant 0 : i32
    %c0_i32_2 = arith.constant 0 : i32
    return %c0_i32, %c0_i32_0, %c0_i32_1 : i32, i32, i32
  }
  func.func @transform_6(%arg0: i32) -> (i32, i32, i32) {
    %c0_i32 = arith.constant 0 : i32
    %c0_i32_0 = arith.constant 0 : i32
    %c0_i32_1 = arith.constant 0 : i32
    %c0_i32_2 = arith.constant 0 : i32
    return %c0_i32, %c0_i32_0, %c0_i32_1 : i32, i32, i32
  }
  func.func @transform_7(%arg0: i32) -> (i32, i32, i32) {
    %c0_i32 = arith.constant 0 : i32
    %c0_i32_0 = arith.constant 0 : i32
    %c0_i32_1 = arith.constant 0 : i32
    %c0_i32_2 = arith.constant 0 : i32
    return %c0_i32, %c0_i32_0, %c0_i32_1 : i32, i32, i32
  }
  func.func @transform_8(%arg0: i32) -> (i32, i32, i32) {
    %c0_i32 = arith.constant 0 : i32
    %c0_i32_0 = arith.constant 0 : i32
    %c0_i32_1 = arith.constant 0 : i32
    %c0_i32_2 = arith.constant 0 : i32
    return %c0_i32, %c0_i32_0, %c0_i32_1 : i32, i32, i32
  }
  func.func @transform_9(%arg0: i32) -> (i32, i32, i32) {
    %c0_i32 = arith.constant 0 : i32
    %c0_i32_0 = arith.constant 0 : i32
    %c0_i32_1 = arith.constant 0 : i32
    %c0_i32_2 = arith.constant 0 : i32
    return %c0_i32, %c0_i32_0, %c0_i32_1 : i32, i32, i32
  }
  func.func @transform_10(%arg0: i32) -> (i32, i32, i32) {
    %c0_i32 = arith.constant 0 : i32
    %c0_i32_0 = arith.constant 0 : i32
    %c0_i32_1 = arith.constant 0 : i32
    %c0_i32_2 = arith.constant 0 : i32
    return %c0_i32, %c0_i32_0, %c0_i32_1 : i32, i32, i32
  }
  func.func @transform_11(%arg0: i32) -> (i32, i32, i32) {
    %c0_i32 = arith.constant 0 : i32
    %c0_i32_0 = arith.constant 0 : i32
    %c0_i32_1 = arith.constant 0 : i32
    %c0_i32_2 = arith.constant 0 : i32
    return %c0_i32, %c0_i32_0, %c0_i32_1 : i32, i32, i32
  }
  func.func @transform_12(%arg0: i32) -> (i32, i32, i32) {
    %c0_i32 = arith.constant 0 : i32
    %c0_i32_0 = arith.constant 0 : i32
    %c0_i32_1 = arith.constant 0 : i32
    %c0_i32_2 = arith.constant 0 : i32
    return %c0_i32, %c0_i32_0, %c0_i32_1 : i32, i32, i32
  }
  func.func @transform_13(%arg0: i32) -> (i32, i32, i32) {
    %c0_i32 = arith.constant 0 : i32
    %c0_i32_0 = arith.constant 0 : i32
    %c0_i32_1 = arith.constant 0 : i32
    %c0_i32_2 = arith.constant 0 : i32
    return %c0_i32, %c0_i32_0, %c0_i32_1 : i32, i32, i32
  }
  func.func @transform_14(%arg0: i32) -> (i32, i32) {
    %c0_i32 = arith.constant 0 : i32
    %c0_i32_0 = arith.constant 0 : i32
    %c0_i32_1 = arith.constant 0 : i32
    return %c0_i32, %c0_i32_0 : i32, i32
  }
  func.func @transform_15(%arg0: i32) -> (i32, i32, i32) {
    %c0_i32 = arith.constant 0 : i32
    %c0_i32_0 = arith.constant 0 : i32
    %c0_i32_1 = arith.constant 0 : i32
    %c0_i32_2 = arith.constant 0 : i32
    return %c0_i32, %c0_i32_0, %c0_i32_1 : i32, i32, i32
  }
  func.func @transform_16(%arg0: i32) -> (i32, i32, i32) {
    %c0_i32 = arith.constant 0 : i32
    %c0_i32_0 = arith.constant 0 : i32
    %c0_i32_1 = arith.constant 0 : i32
    %c0_i32_2 = arith.constant 0 : i32
    return %c0_i32, %c0_i32_0, %c0_i32_1 : i32, i32, i32
  }
  func.func @transform_17(%arg0: i32) -> (i32, i32, i32) {
    %c0_i32 = arith.constant 0 : i32
    %c0_i32_0 = arith.constant 0 : i32
    %c0_i32_1 = arith.constant 0 : i32
    %c0_i32_2 = arith.constant 0 : i32
    return %c0_i32, %c0_i32_0, %c0_i32_1 : i32, i32, i32
  }
  func.func @transform_18(%arg0: i32) -> (i32, i32, i32) {
    %c0_i32 = arith.constant 0 : i32
    %c0_i32_0 = arith.constant 0 : i32
    %c0_i32_1 = arith.constant 0 : i32
    %c0_i32_2 = arith.constant 0 : i32
    return %c0_i32, %c0_i32_0, %c0_i32_1 : i32, i32, i32
  }
  func.func @transform_19(%arg0: i32) -> (i32, i32, i32) {
    %c0_i32 = arith.constant 0 : i32
    %c0_i32_0 = arith.constant 0 : i32
    %c0_i32_1 = arith.constant 0 : i32
    %c0_i32_2 = arith.constant 0 : i32
    return %c0_i32, %c0_i32_0, %c0_i32_1 : i32, i32, i32
  }
  func.func @transform_20(%arg0: i32) -> (i32, i32, i32) {
    %c0_i32 = arith.constant 0 : i32
    %c0_i32_0 = arith.constant 0 : i32
    %c0_i32_1 = arith.constant 0 : i32
    %c0_i32_2 = arith.constant 0 : i32
    return %c0_i32, %c0_i32_0, %c0_i32_1 : i32, i32, i32
  }
  func.func @transform_21(%arg0: i32) -> (i32, i32, i32) {
    %c0_i32 = arith.constant 0 : i32
    %c0_i32_0 = arith.constant 0 : i32
    %c0_i32_1 = arith.constant 0 : i32
    %c0_i32_2 = arith.constant 0 : i32
    return %c0_i32, %c0_i32_0, %c0_i32_1 : i32, i32, i32
  }
  func.func @transform_22(%arg0: i32) -> (i32, i32, i32) {
    %c0_i32 = arith.constant 0 : i32
    %c0_i32_0 = arith.constant 0 : i32
    %c0_i32_1 = arith.constant 0 : i32
    %c0_i32_2 = arith.constant 0 : i32
    return %c0_i32, %c0_i32_0, %c0_i32_1 : i32, i32, i32
  }
  func.func @transform_23(%arg0: i32) -> (i32, i32, i32) {
    %c0_i32 = arith.constant 0 : i32
    %c0_i32_0 = arith.constant 0 : i32
    %c0_i32_1 = arith.constant 0 : i32
    %c0_i32_2 = arith.constant 0 : i32
    return %c0_i32, %c0_i32_0, %c0_i32_1 : i32, i32, i32
  }
  func.func @transform_24(%arg0: i32) -> (i32, i32, i32) {
    %c0_i32 = arith.constant 0 : i32
    %c0_i32_0 = arith.constant 0 : i32
    %c0_i32_1 = arith.constant 0 : i32
    %c0_i32_2 = arith.constant 0 : i32
    return %c0_i32, %c0_i32_0, %c0_i32_1 : i32, i32, i32
  }
  func.func @transform_25(%arg0: i32) -> (i32, i32, i32) {
    %c0_i32 = arith.constant 0 : i32
    %c0_i32_0 = arith.constant 0 : i32
    %c0_i32_1 = arith.constant 0 : i32
    %c0_i32_2 = arith.constant 0 : i32
    return %c0_i32, %c0_i32_0, %c0_i32_1 : i32, i32, i32
  }
  func.func @transform_26(%arg0: i32) -> (i32, i32, i32) {
    %c0_i32 = arith.constant 0 : i32
    %c0_i32_0 = arith.constant 0 : i32
    %c0_i32_1 = arith.constant 0 : i32
    %c0_i32_2 = arith.constant 0 : i32
    return %c0_i32, %c0_i32_0, %c0_i32_1 : i32, i32, i32
  }
  func.func @transform_27(%arg0: i32) -> (i32, i32, i32) {
    %c0_i32 = arith.constant 0 : i32
    %c0_i32_0 = arith.constant 0 : i32
    %c0_i32_1 = arith.constant 0 : i32
    %c0_i32_2 = arith.constant 0 : i32
    return %c0_i32, %c0_i32_0, %c0_i32_1 : i32, i32, i32
  }
  func.func @transform_28(%arg0: i32) -> (i32, i32, i32) {
    %c0_i32 = arith.constant 0 : i32
    %c0_i32_0 = arith.constant 0 : i32
    %c0_i32_1 = arith.constant 0 : i32
    %c0_i32_2 = arith.constant 0 : i32
    return %c0_i32, %c0_i32_0, %c0_i32_1 : i32, i32, i32
  }
  func.func @transform_29(%arg0: i32) -> (i32, i32, i32) {
    %c0_i32 = arith.constant 0 : i32
    %c0_i32_0 = arith.constant 0 : i32
    %c0_i32_1 = arith.constant 0 : i32
    %c0_i32_2 = arith.constant 0 : i32
    return %c0_i32, %c0_i32_0, %c0_i32_1 : i32, i32, i32
  }
  func.func @transform_30(%arg0: i32) -> (i32, i32, i32) {
    %c0_i32 = arith.constant 0 : i32
    %c0_i32_0 = arith.constant 0 : i32
    %c0_i32_1 = arith.constant 0 : i32
    %c0_i32_2 = arith.constant 0 : i32
    return %c0_i32, %c0_i32_0, %c0_i32_1 : i32, i32, i32
  }
  func.func @transform_31(%arg0: i32) -> (i32, i32, i32) {
    %c0_i32 = arith.constant 0 : i32
    %c0_i32_0 = arith.constant 0 : i32
    %c0_i32_1 = arith.constant 0 : i32
    %c0_i32_2 = arith.constant 0 : i32
    return %c0_i32, %c0_i32_0, %c0_i32_1 : i32, i32, i32
  }
  func.func @transform_32(%arg0: i32) -> (i32, i32) {
    %c0_i32 = arith.constant 0 : i32
    %c0_i32_0 = arith.constant 0 : i32
    %c0_i32_1 = arith.constant 0 : i32
    return %c0_i32, %c0_i32_0 : i32, i32
  }
  func.func @transform_33(%arg0: i32) -> (i32, i32) {
    %c0_i32 = arith.constant 0 : i32
    %c0_i32_0 = arith.constant 0 : i32
    %c0_i32_1 = arith.constant 0 : i32
    return %c0_i32, %c0_i32_0 : i32, i32
  }
  func.func @transform_34(%arg0: i32) -> (i32, i32) {
    %c0_i32 = arith.constant 0 : i32
    %c0_i32_0 = arith.constant 0 : i32
    %c0_i32_1 = arith.constant 0 : i32
    return %c0_i32, %c0_i32_0 : i32, i32
  }
  func.func @transform_35(%arg0: i32) -> (i32, i32, i32) {
    %c0_i32 = arith.constant 0 : i32
    %c0_i32_0 = arith.constant 0 : i32
    %c0_i32_1 = arith.constant 0 : i32
    return %arg0, %c0_i32, %c0_i32_0 : i32, i32, i32
  }
}

</mosaic_0001>

<bundles_post_ra>
// kernel: tst_forward.1
= control target key start
LH: loop header
LB: loop body
LE: loop exit
PB: predicated region body
PF: predicated region fallthrough
CT: control target
= control target key end

     0   :  { %s5723_s6 = smov 1   ;;  %s5724_s10 = smov 2   ;;  %s6902_s0 = inlined_call_operand.smem [shape: u32[36], index: -1, kind: input, shape index: {}] }
   0x1   :  { %s5803_s5 = sld [smem:[%s6902_s0]]   ;;  %s5725_s14 = smov 3  }
   0x2   :  { %s5808_s9 = sld [smem:[%s6902_s0 + %s5723_s6]]   ;;  %s5726_s18 = smov 4  }
   0x3   :  { %s5813_s13 = sld [smem:[%s6902_s0 + %s5724_s10]]   ;;  %s5727_s22 = smov 5  }
   0x4   :  { %s5818_s17 = sld [smem:[%s6902_s0 + %s5725_s14]]   ;;  %s5728_s26 = smov 6  }
   0x5   :  { %s5823_s21 = sld [smem:[%s6902_s0 + %s5726_s18]]   ;;  %s5729_s30 = smov 7  }
   0x6   :  { %s5828_s25 = sld [smem:[%s6902_s0 + %s5727_s22]]   ;;  %s5730_s4 = smov 8  }
   0x7   :  { %6975 = sst [smem:[#allocation43_spill]] %s5803_s5  ;;  %s5731_s10 = smov 9  }
   0x8   :  { %6976 = sst [smem:[#allocation44_spill]] %s5808_s9  ;;  %s5732_s15 = smov 10  }
   0x9   :  { %6977 = sst [smem:[#allocation45_spill]] %s5813_s13  ;;  %s5733_s20 = smov 11  }
   0xa   :  { %6978 = sst [smem:[#allocation46_spill]] %s5818_s17  ;;  %s5735_s1 = smov 13  }
   0xb   :  { %6979 = sst [smem:[#allocation47_spill]] %s5823_s21  ;;  %s5736_s7 = smov 14  }
   0xc   :  { %6980 = sst [smem:[#allocation48_spill]] %s5828_s25  ;;  %s5738_s22 = smov 16  }
   0xd   :  { %s5833_s29 = sld [smem:[%s6902_s0 + %s5728_s26]]   ;;  %s5734_s26 = smov 12  }
   0xe   :  { %s5838_s3 = sld [smem:[%s6902_s0 + %s5729_s30]]   ;;  %s5739_s28 = smov 17  }
   0xf   :  { %s5843_s8 = sld [smem:[%s6902_s0 + %s5730_s4]]  }
  0x10   :  { %s5848_s14 = sld [smem:[%s6902_s0 + %s5731_s10]]  }
  0x11   :  { %s5853_s19 = sld [smem:[%s6902_s0 + %s5732_s15]]   ;;  %s5737_s15 = smov 15  }
  0x12   :  { %s5858_s24 = sld [smem:[%s6902_s0 + %s5733_s20]]  }
  0x13   :  { %6981 = sst [smem:[#allocation49_spill]] %s5833_s29 }
  0x14   :  { %6982 = sst [smem:[#allocation50_spill]] %s5838_s3 }
  0x15   :  { %6983 = sst [smem:[#allocation51_spill]] %s5843_s8 }
  0x16   :  { %6984 = sst [smem:[#allocation52_spill]] %s5848_s14 }
  0x17   :  { %s5863_s30 = sld [smem:[%s6902_s0 + %s5734_s26]]  }
  0x18   :  { %6985 = sst [smem:[#allocation53_spill]] %s5858_s24 }
  0x19   :  { %s5868_s6 = sld [smem:[%s6902_s0 + %s5735_s1]]  }
  0x1a   :  { %s5873_s12 = sld [smem:[%s6902_s0 + %s5736_s7]]   ;;  %s5740_s7 = smov 18  }
  0x1b   :  { %s5878_s20 = sld [smem:[%s6902_s0 + %s5737_s15]]   ;;  %s5741_s15 = smov 19  }
  0x1c   :  { %s5883_s27 = sld [smem:[%s6902_s0 + %s5738_s22]]   ;;  %s5742_s22 = smov 20  }
  0x1d   :  { %s5888_s4 = sld [smem:[%s6902_s0 + %s5739_s28]]   ;;  %s5743_s28 = smov 21  }
  0x1e   :  { %s5893_s24 = sld [smem:[%s6902_s0 + %s5740_s7]]   ;;  %s5744_s7 = smov 22  }
  0x1f   :  { %6986 = sst [smem:[#allocation54_spill]] %s5868_s6 }
  0x20   :  { %6987 = sst [smem:[#allocation55_spill]] %s5873_s12 }
  0x21   :  { %6988 = sst [smem:[#allocation56_spill]] %s5878_s20 }
  0x22   :  { %s5898_s20 = sld [smem:[%s6902_s0 + %s5741_s15]]   ;;  %s5745_s15 = smov 23  }
  0x23   :  { %6989 = sst [smem:[#allocation57_spill]] %s5888_s4 }
  0x24   :  { %s5903_s14 = sld [smem:[%s6902_s0 + %s5742_s22]]   ;;  %s5746_s22 = smov 24  }
  0x25   :  { %s5908_s4 = sld [smem:[%s6902_s0 + %s5743_s28]]   ;;  %s5747_s28 = smov 25  }
  0x26   :  { %s5913_s29 = sld [smem:[%s6902_s0 + %s5744_s7]]   ;;  %s5748_s7 = smov 26  }
  0x27   :  { %s5918_s25 = sld [smem:[%s6902_s0 + %s5745_s15]]   ;;  %s5749_s15 = smov 27  }
  0x28   :  { %s5928_s17 = sld [smem:[%s6902_s0 + %s5747_s28]]   ;;  %s5751_s28 = smov 29  }
  0x29   :  { %s5938_s13 = sld [smem:[%s6902_s0 + %s5749_s15]]   ;;  %s5753_s15 = smov 31  }
  0x2a   :  { %6990 = sst [smem:[#allocation58_spill]] %s5903_s14 }
  0x2b   :  { %6991 = sst [smem:[#allocation59_spill]] %s5908_s4 }
  0x2c   :  { %6992 = sst [smem:[#allocation60_spill]] %s5913_s29 }
  0x2d   :  { %s5923_s14 = sld [smem:[%s6902_s0 + %s5746_s22]]   ;;  %s5750_s22 = smov 28  }
  0x2e   :  { %s5933_s29 = sld [smem:[%s6902_s0 + %s5748_s7]]   ;;  %s5752_s7 = smov 30  }
  0x2f   :  { %6995 = sst [smem:[#allocation63_spill]] %s5938_s13 }
  0x30   :  { %s5948_s21 = sld [smem:[%s6902_s0 + %s5751_s28]]   ;;  %s5755_s28 = smov 33  }
  0x31   :  { %s5953_s9 = sld [smem:[%s6902_s0 + %s5752_s7]]   ;;  %s5756_s7 = smov 34  }
  0x32   :  { %s5958_s13 = sld [smem:[%s6902_s0 + %s5753_s15]]   ;;  %s5757_s15 = smov 35  }
  0x33   :  { %6993 = sst [smem:[#allocation61_spill]] %s5923_s14 }
  0x34   :  { %6994 = sst [smem:[#allocation62_spill]] %s5933_s29 }
  0x35   :  { %s5943_s14 = sld [smem:[%s6902_s0 + %s5750_s22]]   ;;  %s5754_s22 = smov 32  }
  0x36   :  { %6997 = sst [smem:[#allocation65_spill]] %s5948_s21 }
  0x37   :  { %6998 = sst [smem:[#allocation66_spill]] %s5953_s9 }
  0x38   :  { %6999 = sst [smem:[#allocation67_spill]] %s5958_s13 }
  0x39   :  { %s5963_s5 = sld [smem:[%s6902_s0 + %s5754_s22]]  }
  0x3a   :  { %s5968_s21 = sld [smem:[%s6902_s0 + %s5755_s28]]  }
  0x3b   :  { %6996 = sst [smem:[#allocation64_spill]] %s5943_s14 }
  0x3c   :  { %s5973_s9 = sld [smem:[%s6902_s0 + %s5756_s7]]  }
  0x3d   :  { %s5978_s29 = sld [smem:[%s6902_s0 + %s5757_s15]]  }
  0x3f   :  { %7000 = sst [smem:[#allocation68_spill]] %s5963_s5 }
  0x42   :  { %7001 = sst [smem:[#allocation69_spill]] %s5973_s9 }
  0x43   :  { %7002 = sst [smem:[#allocation70_spill]] %s5978_s29 }
  0x44   :  { %76 = vsyncpa [#allocation3], 0 }
  0x45   :  { %77 = vsyncpa [#allocation6], 0 }
  0x46   :  { %78 = vsyncpa [#allocation9], 0 }
  0x47   :  { %79 = vsyncpa [#allocation12], 0 }
  0x48   :  { %80 = vsyncpa [#allocation15], 0 }
  0x49   :  { %81 = vsyncpa [#allocation18], 0 }
  0x4a   :  { %82 = vsyncpa [#allocation21], 0 }
  0x4b   :  { %83 = vsyncpa [#allocation24], 0 }
  0x4c   :  { %84 = vsyncpa [#allocation27], 0 }
  0x4d   :  { %85 = vsyncpa [#allocation30], 0 }
  0x4e   :  { %86 = vsyncpa [#allocation4], 0 }
  0x4f   :  { %88 = vsyncpa [#allocation4 + $0x1], 0  ;;  %s5980_s22 = smov 0   ;;  %s5982_s23 = smov 0  }
  0x50   :  { %s5984_s26 = smov 0   ;;  %s5986_s0 = smov 0  }
  0x51 LB: > { %s7003_s14 = sld [smem:[#allocation64_spill]]  ;;  %s6001_s28 = sadd.s32 4294967295, %s5721_s0   ;;  %s5709_s22 = sphi %s5980_s22, %s7069_s22   ;;  %s5721_s0 = sphi %s5986_s0, %s7068_s0   ;;  %s5717_s26 = sphi %s5984_s26, %s7071_s26   ;;  %s5713_s23 = sphi %s5982_s23, %s7070_s23  }
  0x52   : > { %s7004_s9 = sld [smem:[#allocation69_spill]]  ;;  %s4455_s1 = sadd.s32 4294967294, %s5721_s0  }
  0x53   : > { %s7005_s5 = sld [smem:[#allocation68_spill]]  ;;  %s6005_s2 = sadd.s32 1, %s5721_s0  }
  0x54   : > { %s7006_s13 = sld [smem:[#allocation67_spill]]  ;;  %s841_s7 = sadd.s32 1, %s5717_s26 }
  0x55   : > { %s7007_s6 = sld [smem:[#allocation54_spill]]  ;;  %s838_s10 = ssub.s32 %s5721_s0, %s6005_s2 }
  0x56   : > { %s7008_s3 = sld [smem:[#allocation50_spill]]  ;;  %p851_p0 = scmp.ne.s32.totalorder %s5717_s26, %s5713_s23 }
  0x57   : > { %s7009_s12 = sld [smem:[#allocation55_spill]]  ;;  %p839_p1 = scmp.eq.s32.totalorder %s838_s10, 0 }
  0x58   : > { %s7010_s4 = sld [smem:[#allocation59_spill]]  ;;  %p852_p2 = scmp.eq.s32.totalorder %s6001_s28, 1 }
  0x59   : > { %s7011_s8 = sld [smem:[#allocation51_spill]]  ;;  %p857_p3 = scmp.ne.s32.totalorder %s5713_s23, %s5709_s22 }
  0x5a   : > { %7012 = sst [smem:[#allocation71_spill]] %s5709_s22  ;;  %p858_p4 = scmp.eq.s32.totalorder %s4455_s1, 1 }
  0x5b   : > { %7013 = sst [smem:[#allocation72_spill]] %s5713_s23  ;;  %p6018_p5 = por %p852_p2, %p851_p0 }
  0x5c   : > { %7014 = sst [smem:[#allocation73_spill]] %s5717_s26  ;;  %p6022_p6 = por %p858_p4, %p857_p3 }
  0x5d   : > { %7015 = sst [smem:[#allocation74_spill]] %s5721_s0  ;;  %p4456_p7 = scmp.ge.s32.totalorder %s5721_s0, 1 }
  0x5e   : > { %7016 = sst [smem:[#allocation75_spill]] %s6005_s2  ;;  %p865_p8 = scmp.lt.s32.totalorder %s5721_s0, 3 }
  0x5f   : > { %s6016_s11 = scalar_select %p839_p1, %s5717_s26, %s841_s7  }
  0x60   : > { %s7018_s15 = scalar_select %p6018_p5, 1, 0 }
  0x61   : > { %7017 = sst [smem:[#allocation76_spill]] %s6016_s11  ;;  %p4793_p9 = scmp.eq.s32.totalorder %s6001_s28, 0 }
  0x62   : > { %7019 = sst [smem:[#allocation77_spill]] %s7018_s15  ;;  %p6029_p10 = pnand %p4456_p7, %p865_p8 }
  0x63   : > { %s7020_s16 = scalar_select %p6022_p6, 1, 0 }
  0x64   : > { %s908_s1 = sshll.u32 %s7011_s8, 4  ;;  %p4734_p11 = pneg %p6029_p10  ;;  %s909_s1 = int_to_ptr.hbm [resolvable:$true] %s908_s1 }
  0x65   : > { %7021 = sst [smem:[#allocation78_spill]] %s7020_s16  ;;  %s5758_s7 = smov [#allocation5]  }
  0x66   : > { %s910_s10 = sshll.u32 %s5758_s7, 4  ;;  %p6038_p12 = pnand %p4793_p9, %p4734_p11  ;;  %s911_s10 = int_to_ptr.vmem [resolvable:$true] %s910_s10 }
  0x67   : > { %s942_s26 = sshll.u32 %s5863_s30, 4  ;;  %s5079_s2 = sshra.s32 %s909_s1, 4  ;;  %s5080_s2 = int_to_ptr.hbm [resolvable:$true] %s5079_s2  ;;  %s943_s26 = int_to_ptr.hbm [resolvable:$true] %s942_s26 }
  0x68   : > { %s5081_s16 = scalar_lea.hbm %s5080_s2, 4  ;;  %p6045_p0 = pneg %p6038_p12 }
  0x69   : > { %p5082_p13 = scmp.ne.s32.totalorder %s5080_s2, %s5081_s16  ;;  %s5086_s7 = scalar_lea.hbm %s7011_s8, 4 }
  0x6a   : > { %p5087_p3 = scmp.lt.s32.totalorder %s5080_s2, %s7011_s8  ;;  %p5088_p4 = scmp.lt.s32.totalorder %s5086_s7, %s5081_s16 }
  0x6b   : > { %p5084_p1 = pnand %p6045_p0, %p5082_p13 }
  0x6c   : > { %p5089_p7 = por %p5088_p4, %p5087_p3 }
  0x6d   : > { %p5085_p2 = pneg %p5084_p1 }
  0x6f   : > { %p5090_p8 = pnand %p5089_p7, %p5085_p2 }
  0x71   : > { %5093 = shalt.err (!%p5090_p8)
}
  0x72   : > { %s6928_s0 = smov 32   ;;  %s6930_s15 = smov 2  }
  0x73   : > { %4740 = dma.hbm_to_vmem [thread:$0]  (!%p6038_p12), %s909_s1, 64, %s911_s10, [#allocation6], %s6928_s0, %s6928_s0, %s6930_s15  }
  0x74   : > { %s5761_s29 = smov [#allocation8]   ;;  %s971_s2 = sshll.u32 %s7009_s12, 4  ;;  %s6059_s2 = int_to_ptr.hbm [resolvable:$true] %s971_s2 }
  0x75   : > { %s944_s23 = sshll.u32 %s5761_s29, 4  ;;  %s5109_s16 = sshra.s32 %s943_s26, 4  ;;  %s945_s23 = int_to_ptr.vmem [resolvable:$true] %s944_s23  ;;  %s5110_s16 = int_to_ptr.hbm [resolvable:$true] %s5109_s16 }
  0x76   : > { %s5111_s7 = scalar_lea.hbm %s5110_s16, 2  ;;  %s5116_s8 = scalar_lea.hbm %s5863_s30, 2 }
  0x77   : > { %p5112_p11 = scmp.ne.s32.totalorder %s5110_s16, %s5111_s7  ;;  %p5117_p2 = scmp.lt.s32.totalorder %s5110_s16, %s5863_s30 }
  0x78   : > { %p5118_p3 = scmp.lt.s32.totalorder %s5116_s8, %s5111_s7 }
  0x79   : > { %p5114_p13 = pnand %p5112_p11, %p6045_p0 }
  0x7a   : > { %p5119_p4 = por %p5118_p3, %p5117_p2 }
  0x7b   : > { %p5115_p1 = pneg %p5114_p13 }
  0x7d   : > { %p5120_p7 = pnand %p5119_p4, %p5115_p1 }
  0x7f   : > { %5123 = shalt.err (!%p5120_p7)
}
  0x80   : > { %s6932_s1 = smov 16   ;;  %s6934_s29 = smov 1  }
  0x81   : > { %4746 = dma.hbm_to_vmem [thread:$0]  (!%p6038_p12), %s943_s26, 32, %s945_s23, [#allocation9], %s6932_s1, %s6932_s1, %s6934_s29  }
  0x82   : > { %s1002_s10 = sshll.u32 %s5893_s24, 4  ;;  %s5764_s0 = smov [#allocation11]   ;;  %s6071_s10 = int_to_ptr.hbm [resolvable:$true] %s1002_s10 }
  0x83   : > { %s973_s16 = sshll.u32 %s5764_s0, 4  ;;  %s5139_s8 = sshra.s32 %s6059_s2, 4  ;;  %s974_s16 = int_to_ptr.vmem [resolvable:$true] %s973_s16  ;;  %s5140_s8 = int_to_ptr.hbm [resolvable:$true] %s5139_s8 }
  0x84   : > { %s5141_s7 = scalar_lea.hbm %s5140_s8, 2  ;;  %s5146_s15 = scalar_lea.hbm %s7009_s12, 2 }
  0x85   : > { %p5142_p8 = scmp.ne.s32.totalorder %s5140_s8, %s5141_s7  ;;  %p5147_p1 = scmp.lt.s32.totalorder %s5140_s8, %s7009_s12 }
  0x86   : > { %p5148_p2 = scmp.lt.s32.totalorder %s5146_s15, %s5141_s7 }
  0x87   : > { %p5144_p11 = pnand %p5142_p8, %p6045_p0 }
  0x88   : > { %p5149_p3 = por %p5148_p2, %p5147_p1 }
  0x89   : > { %p5145_p13 = pneg %p5144_p11 }
  0x8b   : > { %p5150_p4 = pnand %p5149_p3, %p5145_p13 }
  0x8d   : > { %5153 = shalt.err (!%p5150_p4)
}
  0x8e   : > { %4752 = dma.hbm_to_vmem [thread:$0]  (!%p6038_p12), %s6059_s2, 32, %s974_s16, [#allocation12]  }
  0x8f   : > { %s5765_s23 = smov [#allocation14]   ;;  %s1033_s0 = sshll.u32 %s7010_s4, 4  ;;  %s6082_s0 = int_to_ptr.hbm [resolvable:$true] %s1033_s0 }
  0x90   : > { %s1004_s26 = sshll.u32 %s5765_s23, 4  ;;  %s5169_s8 = sshra.s32 %s6071_s10, 4  ;;  %s1005_s26 = int_to_ptr.vmem [resolvable:$true] %s1004_s26  ;;  %s5170_s8 = int_to_ptr.hbm [resolvable:$true] %s5169_s8 }
  0x91   : > { %s5171_s15 = scalar_lea.hbm %s5170_s8, 2  ;;  %s5176_s7 = scalar_lea.hbm %s5893_s24, 2 }
  0x92   : > { %p5172_p7 = scmp.ne.s32.totalorder %s5170_s8, %s5171_s15  ;;  %p5177_p13 = scmp.lt.s32.totalorder %s5170_s8, %s5893_s24 }
  0x93   : > { %p5178_p1 = scmp.lt.s32.totalorder %s5176_s7, %s5171_s15 }
  0x94   : > { %p5174_p8 = pnand %p5172_p7, %p6045_p0 }
  0x95   : > { %p5179_p2 = por %p5178_p1, %p5177_p13 }
  0x96   : > { %p5175_p11 = pneg %p5174_p8 }
  0x98   : > { %p5180_p3 = pnand %p5179_p2, %p5175_p11 }
  0x9a   : > { %5183 = shalt.err (!%p5180_p3)
}
  0x9b   : > { %4758 = dma.hbm_to_vmem [thread:$0]  (!%p6038_p12), %s6071_s10, 32, %s1005_s26, [#allocation15], %s6932_s1, %s6932_s1, %s6934_s29  }
  0x9c   : > { %s1067_s2 = sshll.u32 %s5928_s17, 4  ;;  %s5766_s16 = smov [#allocation17]   ;;  %s6096_s2 = int_to_ptr.hbm [resolvable:$true] %s1067_s2 }
  0x9d   : > { %s1035_s23 = sshll.u32 %s5766_s16, 4  ;;  %s5199_s8 = sshra.s32 %s6082_s0, 4  ;;  %s1036_s23 = int_to_ptr.vmem [resolvable:$true] %s1035_s23  ;;  %s5200_s8 = int_to_ptr.hbm [resolvable:$true] %s5199_s8 }
  0x9e   : > { %s5201_s15 = scalar_lea.hbm %s5200_s8, 2  ;;  %s5206_s7 = scalar_lea.hbm %s7010_s4, 2 }
  0x9f   : > { %p5202_p4 = scmp.ne.s32.totalorder %s5200_s8, %s5201_s15  ;;  %p5207_p11 = scmp.lt.s32.totalorder %s5200_s8, %s7010_s4 }
  0xa0   : > { %p5208_p13 = scmp.lt.s32.totalorder %s5206_s7, %s5201_s15 }
  0xa1   : > { %p5204_p7 = pnand %p5202_p4, %p6045_p0 }
  0xa2   : > { %p5209_p1 = por %p5208_p13, %p5207_p11 }
  0xa3   : > { %p5205_p8 = pneg %p5204_p7 }
  0xa5   : > { %p5210_p2 = pnand %p5209_p1, %p5205_p8 }
  0xa7   : > { %5213 = shalt.err (!%p5210_p2)
}
  0xa8   : > { %4764 = dma.hbm_to_vmem [thread:$0]  (!%p6038_p12), %s6082_s0, 32, %s1036_s23, [#allocation18], %s6932_s1, %s6932_s1, %s6934_s29  }
  0xa9   : > { %s5767_s10 = smov [#allocation20]   ;;  %s1098_s16 = sshll.u32 %s7003_s14, 4  ;;  %s6110_s16 = int_to_ptr.hbm [resolvable:$true] %s1098_s16 }
  0xaa   : > { %s1069_s26 = sshll.u32 %s5767_s10, 4  ;;  %s5229_s8 = sshra.s32 %s6096_s2, 4  ;;  %s1070_s26 = int_to_ptr.vmem [resolvable:$true] %s1069_s26  ;;  %s5230_s8 = int_to_ptr.hbm [resolvable:$true] %s5229_s8 }
  0xab   : > { %s5231_s15 = scalar_lea.hbm %s5230_s8, 2  ;;  %s5236_s7 = scalar_lea.hbm %s5928_s17, 2 }
  0xac   : > { %p5232_p3 = scmp.ne.s32.totalorder %s5230_s8, %s5231_s15  ;;  %p5237_p8 = scmp.lt.s32.totalorder %s5230_s8, %s5928_s17 }
  0xad   : > { %p5238_p11 = scmp.lt.s32.totalorder %s5236_s7, %s5231_s15 }
  0xae   : > { %p5234_p4 = pnand %p5232_p3, %p6045_p0 }
  0xaf   : > { %p5239_p13 = por %p5238_p11, %p5237_p8 }
  0xb0   : > { %p5235_p7 = pneg %p5234_p4 }
  0xb2   : > { %p5240_p1 = pnand %p5239_p13, %p5235_p7 }
  0xb4   : > { %5243 = shalt.err (!%p5240_p1)
}
  0xb5   : > { %4770 = dma.hbm_to_vmem [thread:$0]  (!%p6038_p12), %s6096_s2, 32, %s1070_s26, [#allocation21], %s6932_s1, %s6932_s1, %s6934_s29  }
  0xb6   : > { %s1129_s0 = sshll.u32 %s7006_s13, 4  ;;  %s5768_s23 = smov [#allocation23]   ;;  %s6124_s0 = int_to_ptr.hbm [resolvable:$true] %s1129_s0 }
  0xb7   : > { %s1100_s10 = sshll.u32 %s5768_s23, 4  ;;  %s5259_s8 = sshra.s32 %s6110_s16, 4  ;;  %s1101_s10 = int_to_ptr.vmem [resolvable:$true] %s1100_s10  ;;  %s5260_s8 = int_to_ptr.hbm [resolvable:$true] %s5259_s8 }
  0xb8   : > { %s5261_s15 = scalar_lea.hbm %s5260_s8, 2  ;;  %s5266_s7 = scalar_lea.hbm %s7003_s14, 2 }
  0xb9   : > { %p5262_p2 = scmp.ne.s32.totalorder %s5260_s8, %s5261_s15  ;;  %p5267_p7 = scmp.lt.s32.totalorder %s5260_s8, %s7003_s14 }
  0xba   : > { %p5268_p8 = scmp.lt.s32.totalorder %s5266_s7, %s5261_s15 }
  0xbb   : > { %p5264_p3 = pnand %p5262_p2, %p6045_p0 }
  0xbc   : > { %p5269_p11 = por %p5268_p8, %p5267_p7 }
  0xbd   : > { %p5265_p4 = pneg %p5264_p3 }
  0xbf   : > { %p5270_p13 = pnand %p5269_p11, %p5265_p4 }
  0xc1   : > { %5273 = shalt.err (!%p5270_p13)
}
  0xc2   : > { %4776 = dma.hbm_to_vmem [thread:$0]  (!%p6038_p12), %s6110_s16, 32, %s1101_s10, [#allocation24], %s6932_s1, %s6932_s1, %s6934_s29  }
  0xc3   : > { %s5769_s2 = smov [#allocation26]   ;;  %s894_s23 = sshll.u32 %s7008_s3, 4  ;;  %s6138_s23 = int_to_ptr.hbm [resolvable:$true] %s894_s23 }
  0xc4   : > { %s1131_s26 = sshll.u32 %s5769_s2, 4  ;;  %s5289_s8 = sshra.s32 %s6124_s0, 4  ;;  %s1132_s26 = int_to_ptr.vmem [resolvable:$true] %s1131_s26  ;;  %s5290_s8 = int_to_ptr.hbm [resolvable:$true] %s5289_s8 }
  0xc5   : > { %s5291_s15 = scalar_lea.hbm %s5290_s8, 4  ;;  %s5296_s7 = scalar_lea.hbm %s7006_s13, 4 }
  0xc6   : > { %p5292_p1 = scmp.ne.s32.totalorder %s5290_s8, %s5291_s15  ;;  %p5297_p4 = scmp.lt.s32.totalorder %s5290_s8, %s7006_s13 }
  0xc7   : > { %p5298_p7 = scmp.lt.s32.totalorder %s5296_s7, %s5291_s15 }
  0xc8   : > { %p5294_p2 = pnand %p5292_p1, %p6045_p0 }
  0xc9   : > { %p5299_p8 = por %p5298_p7, %p5297_p4 }
  0xca   : > { %p5295_p3 = pneg %p5294_p2 }
  0xcc   : > { %p5300_p11 = pnand %p5299_p8, %p5295_p3 }
  0xce   : > { %5303 = shalt.err (!%p5300_p11)
}
  0xcf   : > { %s7025_s16 = smov 2   ;;  %s7026_s10 = smov 32  }
  0xd0   : > { %4782 = dma.hbm_to_vmem [thread:$0]  (!%p6038_p12), %s6124_s0, 64, %s1132_s26, [#allocation27], %s7026_s10, %s7026_s10, %s7025_s16  }
  0xd1   : > { %s925_s2 = sshll.u32 %s5853_s19, 4  ;;  %s5770_s1 = smov [#allocation2]   ;;  %s6152_s2 = int_to_ptr.hbm [resolvable:$true] %s925_s2 }
  0xd2   : > { %s896_s29 = sshll.u32 %s5770_s1, 4  ;;  %s5319_s8 = sshra.s32 %s6138_s23, 4  ;;  %s897_s29 = int_to_ptr.vmem [resolvable:$true] %s896_s29  ;;  %s5320_s8 = int_to_ptr.hbm [resolvable:$true] %s5319_s8 }
  0xd3   : > { %s5321_s15 = scalar_lea.hbm %s5320_s8, 2  ;;  %s5326_s7 = scalar_lea.hbm %s7008_s3, 2 }
  0xd4   : > { %p5322_p13 = scmp.ne.s32.totalorder %s5320_s8, %s5321_s15  ;;  %p5327_p3 = scmp.lt.s32.totalorder %s5320_s8, %s7008_s3 }
  0xd5   : > { %p5328_p4 = scmp.lt.s32.totalorder %s5326_s7, %s5321_s15 }
  0xd6   : > { %p5324_p1 = pnand %p5322_p13, %p6045_p0 }
  0xd7   : > { %p5329_p7 = por %p5328_p4, %p5327_p3 }
  0xd8   : > { %p5325_p2 = pneg %p5324_p1 }
  0xda   : > { %p5330_p8 = pnand %p5329_p7, %p5325_p2 }
  0xdc   : > { %5333 = shalt.err (!%p5330_p8)
}
  0xdd   : > { %s7027_s0 = smov 1   ;;  %s7028_s1 = smov 16  }
  0xde   : > { %4737 = dma.hbm_to_vmem [thread:$0]  (!%p6038_p12), %s6138_s23, 32, %s897_s29, [#allocation3], %s7028_s1, %s7028_s1, %s7027_s0  }
  0xdf   : > { %s5771_s26 = smov [#allocation7]   ;;  %s956_s12 = sshll.u32 %s7007_s6, 4  ;;  %s6166_s12 = int_to_ptr.hbm [resolvable:$true] %s956_s12 }
  0xe0   : > { %s927_s4 = sshll.u32 %s5771_s26, 4  ;;  %s5349_s8 = sshra.s32 %s6152_s2, 4  ;;  %s928_s4 = int_to_ptr.vmem [resolvable:$true] %s927_s4  ;;  %s5350_s8 = int_to_ptr.hbm [resolvable:$true] %s5349_s8 }
  0xe1   : > { %s5351_s15 = scalar_lea.hbm %s5350_s8, 2  ;;  %s5356_s7 = scalar_lea.hbm %s5853_s19, 2 }
  0xe2   : > { %p5352_p11 = scmp.ne.s32.totalorder %s5350_s8, %s5351_s15  ;;  %p5357_p2 = scmp.lt.s32.totalorder %s5350_s8, %s5853_s19 }
  0xe3   : > { %p5358_p3 = scmp.lt.s32.totalorder %s5356_s7, %s5351_s15 }
  0xe4   : > { %p5354_p13 = pnand %p5352_p11, %p6045_p0 }
  0xe5   : > { %p5359_p4 = por %p5358_p3, %p5357_p2 }
  0xe6   : > { %p5355_p1 = pneg %p5354_p13 }
  0xe8   : > { %p5360_p7 = pnand %p5359_p4, %p5355_p1 }
  0xea   : > { %5363 = shalt.err (!%p5360_p7)
}
  0xeb   : > { %4743 = dma.hbm_to_vmem [thread:$0]  (!%p6038_p12), %s6152_s2, 32, %s928_s4, [#allocation6], %s7028_s1, %s7028_s1, %s7027_s0  }
  0xec   : > { %s985_s29 = sshll.u32 %s5883_s27, 4  ;;  %s5772_s23 = smov [#allocation10]   ;;  %s6180_s29 = int_to_ptr.hbm [resolvable:$true] %s985_s29 }
  0xed   : > { %s958_s26 = sshll.u32 %s5772_s23, 4  ;;  %s5379_s8 = sshra.s32 %s6166_s12, 4  ;;  %s959_s26 = int_to_ptr.vmem [resolvable:$true] %s958_s26  ;;  %s5380_s8 = int_to_ptr.hbm [resolvable:$true] %s5379_s8 }
  0xee   : > { %s5381_s15 = scalar_lea.hbm %s5380_s8, 4  ;;  %s5386_s7 = scalar_lea.hbm %s7007_s6, 4 }
  0xef   : > { %p5382_p8 = scmp.ne.s32.totalorder %s5380_s8, %s5381_s15  ;;  %p5387_p1 = scmp.lt.s32.totalorder %s5380_s8, %s7007_s6 }
  0xf0   : > { %p5388_p2 = scmp.lt.s32.totalorder %s5386_s7, %s5381_s15 }
  0xf1   : > { %p5384_p11 = pnand %p5382_p8, %p6045_p0 }
  0xf2   : > { %p5389_p3 = por %p5388_p2, %p5387_p1 }
  0xf3   : > { %p5385_p13 = pneg %p5384_p11 }
  0xf5   : > { %p5390_p4 = pnand %p5389_p3, %p5385_p13 }
  0xf7   : > { %5393 = shalt.err (!%p5390_p4)
}
  0xf8   : > { %4749 = dma.hbm_to_vmem [thread:$0]  (!%p6038_p12), %s6166_s12, 64, %s959_s26, [#allocation9], %s7026_s10, %s7026_s10, %s7025_s16  }
  0xf9   : > { %s5773_s4 = smov [#allocation13]   ;;  %s1016_s23 = sshll.u32 %s5898_s20, 4  ;;  %s6194_s23 = int_to_ptr.hbm [resolvable:$true] %s1016_s23 }
  0xfa   : > { %s987_s2 = sshll.u32 %s5773_s4, 4  ;;  %s5409_s8 = sshra.s32 %s6180_s29, 4  ;;  %s988_s2 = int_to_ptr.vmem [resolvable:$true] %s987_s2  ;;  %s5410_s8 = int_to_ptr.hbm [resolvable:$true] %s5409_s8 }
  0xfb   : > { %s5411_s15 = scalar_lea.hbm %s5410_s8, 2  ;;  %s5416_s7 = scalar_lea.hbm %s5883_s27, 2 }
  0xfc   : > { %p5412_p7 = scmp.ne.s32.totalorder %s5410_s8, %s5411_s15  ;;  %p5417_p13 = scmp.lt.s32.totalorder %s5410_s8, %s5883_s27 }
  0xfd   : > { %p5418_p1 = scmp.lt.s32.totalorder %s5416_s7, %s5411_s15 }
  0xfe   : > { %p5414_p8 = pnand %p5412_p7, %p6045_p0 }
  0xff   : > { %p5419_p2 = por %p5418_p1, %p5417_p13 }
 0x100   : > { %p5415_p11 = pneg %p5414_p8 }
 0x102   : > { %p5420_p3 = pnand %p5419_p2, %p5415_p11 }
 0x104   : > { %5423 = shalt.err (!%p5420_p3)
}
 0x105   : > { %4755 = dma.hbm_to_vmem [thread:$0]  (!%p6038_p12), %s6180_s29, 32, %s988_s2, [#allocation12], %s7028_s1, %s7028_s1, %s7027_s0  }
 0x106   : > { %s1050_s12 = sshll.u32 %s5918_s25, 4  ;;  %s5774_s26 = smov [#allocation16]   ;;  %s6208_s12 = int_to_ptr.hbm [resolvable:$true] %s1050_s12 }
 0x107   : > { %s1018_s4 = sshll.u32 %s5774_s26, 4  ;;  %s5439_s8 = sshra.s32 %s6194_s23, 4  ;;  %s1019_s4 = int_to_ptr.vmem [resolvable:$true] %s1018_s4  ;;  %s5440_s8 = int_to_ptr.hbm [resolvable:$true] %s5439_s8 }
 0x108   : > { %s5441_s15 = scalar_lea.hbm %s5440_s8, 4  ;;  %s5446_s7 = scalar_lea.hbm %s5898_s20, 4 }
 0x109   : > { %p5442_p4 = scmp.ne.s32.totalorder %s5440_s8, %s5441_s15  ;;  %p5447_p11 = scmp.lt.s32.totalorder %s5440_s8, %s5898_s20 }
 0x10a   : > { %p5448_p13 = scmp.lt.s32.totalorder %s5446_s7, %s5441_s15 }
 0x10b   : > { %p5444_p7 = pnand %p5442_p4, %p6045_p0 }
 0x10c   : > { %p5449_p1 = por %p5448_p13, %p5447_p11 }
 0x10d   : > { %p5445_p8 = pneg %p5444_p7 }
 0x10f   : > { %p5450_p2 = pnand %p5449_p1, %p5445_p8 }
 0x111   : > { %5453 = shalt.err (!%p5450_p2)
}
 0x112   : > { %s7029_s29 = sld [smem:[#allocation62_spill]]  ;;  %s5775_s2 = smov [#allocation19]  }
 0x113   : > { %4761 = dma.hbm_to_vmem [thread:$0]  (!%p6038_p12), %s6194_s23, 64, %s1019_s4, [#allocation15], %s7026_s10, %s7026_s10, %s7025_s16  }
 0x114   : > { %s1052_s26 = sshll.u32 %s5775_s2, 4  ;;  %s5469_s8 = sshra.s32 %s6208_s12, 4  ;;  %s1053_s26 = int_to_ptr.vmem [resolvable:$true] %s1052_s26  ;;  %s5470_s8 = int_to_ptr.hbm [resolvable:$true] %s5469_s8 }
 0x115   : > { %s5471_s15 = scalar_lea.hbm %s5470_s8, 2  ;;  %s5476_s7 = scalar_lea.hbm %s5918_s25, 2 }
 0x116   : > { %p5472_p3 = scmp.ne.s32.totalorder %s5470_s8, %s5471_s15  ;;  %p5477_p8 = scmp.lt.s32.totalorder %s5470_s8, %s5918_s25 }
 0x117   : > { %p5478_p11 = scmp.lt.s32.totalorder %s5476_s7, %s5471_s15 }
 0x118   : > { %s1081_s3 = sshll.u32 %s7029_s29, 4  ;;  %p5474_p4 = pnand %p5472_p3, %p6045_p0  ;;  %s6222_s3 = int_to_ptr.hbm [resolvable:$true] %s1081_s3 }
 0x119   : > { %p5479_p13 = por %p5478_p11, %p5477_p8 }
 0x11a   : > { %p5475_p7 = pneg %p5474_p4 }
 0x11c   : > { %p5480_p1 = pnand %p5479_p13, %p5475_p7 }
 0x11e   : > { %5483 = shalt.err (!%p5480_p1)
}
 0x11f   : > { %s7030_s23 = sld [smem:[#allocation66_spill]]  ;;  %s5776_s6 = smov [#allocation22]  }
 0x120   : > { %4767 = dma.hbm_to_vmem [thread:$0]  (!%p6038_p12), %s6208_s12, 32, %s1053_s26, [#allocation18], %s7028_s1, %s7028_s1, %s7027_s0  }
 0x121   : > { %s1083_s13 = sshll.u32 %s5776_s6, 4  ;;  %s5499_s8 = sshra.s32 %s6222_s3, 4  ;;  %s1084_s13 = int_to_ptr.vmem [resolvable:$true] %s1083_s13  ;;  %s5500_s8 = int_to_ptr.hbm [resolvable:$true] %s5499_s8 }
 0x122   : > { %s5501_s15 = scalar_lea.hbm %s5500_s8, 4  ;;  %s5506_s7 = scalar_lea.hbm %s7029_s29, 4 }
 0x123   : > { %p5502_p2 = scmp.ne.s32.totalorder %s5500_s8, %s5501_s15  ;;  %p5507_p7 = scmp.lt.s32.totalorder %s5500_s8, %s7029_s29 }
 0x124   : > { %p5508_p8 = scmp.lt.s32.totalorder %s5506_s7, %s5501_s15 }
 0x125   : > { %s7031_s4 = smov %s7030_s23  ;;  %s1115_s2 = sshll.u32 %s7030_s23, 4  ;;  %s6236_s2 = int_to_ptr.hbm [resolvable:$true] %s1115_s2 }
 0x126   : > { %p5504_p3 = pnand %p5502_p2, %p6045_p0  ;;  %p5509_p11 = por %p5508_p8, %p5507_p7 }
 0x128   : > { %p5505_p4 = pneg %p5504_p3 }
 0x12a   : > { %p5510_p13 = pnand %p5509_p11, %p5505_p4 }
 0x12c   : > { %5513 = shalt.err (!%p5510_p13)
}
 0x12d   : > { %4773 = dma.hbm_to_vmem [thread:$0]  (!%p6038_p12), %s6222_s3, 64, %s1084_s13, [#allocation21], %s7026_s10, %s7026_s10, %s7025_s16  }
 0x12e   : > { %s5777_s6 = smov [#allocation25]   ;;  %s1144_s26 = sshll.u32 %s7005_s5, 4  ;;  %s6250_s26 = int_to_ptr.hbm [resolvable:$true] %s1144_s26 }
 0x12f   : > { %s1117_s12 = sshll.u32 %s5777_s6, 4  ;;  %s5529_s23 = sshra.s32 %s6236_s2, 4  ;;  %s1118_s12 = int_to_ptr.vmem [resolvable:$true] %s1117_s12  ;;  %s5530_s23 = int_to_ptr.hbm [resolvable:$true] %s5529_s23 }
 0x130   : > { %s5531_s8 = scalar_lea.hbm %s5530_s23, 2  ;;  %s5536_s15 = scalar_lea.hbm %s7031_s4, 2 }
 0x131   : > { %p5532_p1 = scmp.ne.s32.totalorder %s5530_s23, %s5531_s8  ;;  %p5537_p4 = scmp.lt.s32.totalorder %s5530_s23, %s7031_s4 }
 0x132   : > { %p5538_p7 = scmp.lt.s32.totalorder %s5536_s15, %s5531_s8 }
 0x133   : > { %p5534_p2 = pnand %p5532_p1, %p6045_p0 }
 0x134   : > { %p5539_p8 = por %p5538_p7, %p5537_p4 }
 0x135   : > { %p5535_p3 = pneg %p5534_p2 }
 0x137   : > { %p5540_p11 = pnand %p5539_p8, %p5535_p3 }
 0x139   : > { %5543 = shalt.err (!%p5540_p11)
}
 0x13a   : > { %4779 = dma.hbm_to_vmem [thread:$0]  (!%p6038_p12), %s6236_s2, 32, %s1118_s12, [#allocation24], %s7028_s1, %s7028_s1, %s7027_s0  }
 0x13b   : > { %s1159_s13 = sshll.u32 %s7004_s9, 4  ;;  %s5778_s3 = smov [#allocation28]   ;;  %s6264_s13 = int_to_ptr.hbm [resolvable:$true] %s1159_s13 }
 0x13c   : > { %s1146_s16 = sshll.u32 %s5778_s3, 4  ;;  %s5559_s10 = sshra.s32 %s6250_s26, 4  ;;  %s1147_s16 = int_to_ptr.vmem [resolvable:$true] %s1146_s16  ;;  %s5560_s10 = int_to_ptr.hbm [resolvable:$true] %s5559_s10 }
 0x13d   : > { %s5561_s7 = scalar_lea.hbm %s5560_s10, 2  ;;  %s5566_s6 = scalar_lea.hbm %s7005_s5, 2 }
 0x13e   : > { %p5562_p13 = scmp.ne.s32.totalorder %s5560_s10, %s5561_s7  ;;  %p5567_p3 = scmp.lt.s32.totalorder %s5560_s10, %s7005_s5 }
 0x13f   : > { %p5568_p4 = scmp.lt.s32.totalorder %s5566_s6, %s5561_s7 }
 0x140   : > { %p5564_p1 = pnand %p5562_p13, %p6045_p0 }
 0x141   : > { %p5569_p7 = por %p5568_p4, %p5567_p3 }
 0x142   : > { %p5565_p2 = pneg %p5564_p1 }
 0x144   : > { %p5570_p8 = pnand %p5569_p7, %p5565_p2 }
 0x146   : > { %5573 = shalt.err (!%p5570_p8)
}
 0x147   : > { %4785 = dma.hbm_to_vmem [thread:$0]  (!%p6038_p12), %s6250_s26, 32, %s1147_s16, [#allocation27]  }
 0x148   : > { %s5779_s0 = smov [#allocation29]   ;;  %s5589_s2 = sshra.s32 %s6264_s13, 4  ;;  %s5590_s2 = int_to_ptr.hbm [resolvable:$true] %s5589_s2 }
 0x149   : > { %s1161_s1 = sshll.u32 %s5779_s0, 4  ;;  %s5591_s12 = scalar_lea.hbm %s5590_s2, 1  ;;  %s1162_s1 = int_to_ptr.vmem [resolvable:$true] %s1161_s1 }
 0x14a   : > { %p5592_p11 = scmp.ne.s32.totalorder %s5590_s2, %s5591_s12  ;;  %s5596_s23 = scalar_lea.hbm %s7004_s9, 1 }
 0x14b   : > { %p5597_p2 = scmp.lt.s32.totalorder %s5590_s2, %s7004_s9  ;;  %p5598_p3 = scmp.lt.s32.totalorder %s5596_s23, %s5591_s12 }
 0x14c   : > { %p5594_p13 = pnand %p5592_p11, %p6045_p0 }
 0x14d   : > { %p5599_p4 = por %p5598_p3, %p5597_p2 }
 0x14e   : > { %p5595_p1 = pneg %p5594_p13 }
 0x150   : > { %p5600_p7 = pnand %p5599_p4, %p5595_p1 }
 0x152   : > { %5603 = shalt.err (!%p5600_p7)
}
 0x153   : > { %4788 = dma.hbm_to_vmem [thread:$0]  (!%p6038_p12), %s6264_s13, 16, %s1162_s1, [#allocation30]  }
 0x154   : > { %1181 = sbr.rel (%p6029_p10) target bundleno = 10851 (0x2a63), region = 160 }
 0x159   : > { %5664 = dma.done.wait (%p4793_p9), [#allocation3], 32  }
 0x15a   : > { %5666 = vsyncadd (%p4793_p9), [#allocation3], 4294967264 }
 0x15b   : > { %5668 = dma.done.wait (%p4793_p9), [#allocation6], 96  }
 0x15c   : > { %5670 = vsyncadd (%p4793_p9), [#allocation6], 4294967200 }
 0x15d   : > { %5672 = dma.done.wait (%p4793_p9), [#allocation9], 96  }
 0x15e   : > { %5674 = vsyncadd (%p4793_p9), [#allocation9], 4294967200 }
 0x15f   : > { %5676 = dma.done.wait (%p4793_p9), [#allocation12], 64  }
 0x160   : > { %5678 = vsyncadd (%p4793_p9), [#allocation12], 4294967232 }
 0x161   : > { %5680 = dma.done.wait (%p4793_p9), [#allocation15], 96  }
 0x162   : > { %5682 = vsyncadd (%p4793_p9), [#allocation15], 4294967200 }
 0x163   : > { %5684 = dma.done.wait (%p4793_p9), [#allocation18], 64  }
 0x164   : > { %5686 = vsyncadd (%p4793_p9), [#allocation18], 4294967232 }
 0x165   : > { %5688 = dma.done.wait (%p4793_p9), [#allocation21], 96  }
 0x166   : > { %5690 = vsyncadd (%p4793_p9), [#allocation21], 4294967200 }
 0x167   : > { %5692 = dma.done.wait (%p4793_p9), [#allocation24], 64  }
 0x168   : > { %5694 = vsyncadd (%p4793_p9), [#allocation24], 4294967232 }
 0x169   : > { %5696 = dma.done.wait (%p4793_p9), [#allocation27], 96  }
 0x16a   : > { %5698 = vsyncadd (%p4793_p9), [#allocation27], 4294967200 }
 0x16b   : > { %5700 = dma.done.wait (%p4793_p9), [#allocation30], 16  }
 0x16c   : > { %5702 = vsyncadd (%p4793_p9), [#allocation30], 4294967280  ;;  %s7032_s22 = sld [smem:[#allocation43_spill]]  ;;  %p1353_p10 = scmp.lt.s32.totalorder %s6001_s28, 1  ;;  %vm1367_vm0 = vcmask 1043456   ;;  %vm1363_vm1 = vcmask 31744  }
 0x16d   : > { %s7033_s11 = sld [smem:[#allocation44_spill]]  ;;  %vm1401_vm2 = vcmask 261120   ;;  %s6955_s10 = smov 72   ;;  %vm1428_vm3 = vcmask 64512   ;;  %vm1702_vm4 = vcmask 130048   ;;  %vm1704_vm5 = vcmask 195584  }
 0x16e   : > { %s7034_s18 = sld [smem:[#allocation47_spill]]  ;;  %s6965_s7 = smov 120  }
 0x16f   : > { %s1354_s26 = scalar_select %p1353_p10, %s6001_s28, 1 }
 0x170   : > { %s7035_s15 = sld [smem:[#allocation45_spill]]  ;;  %s6959_s6 = smov 96  }
 0x171   : > { %s4495_s8 = sshll.u32 %s1354_s26, 3  ;;  %s7036_s3 = sld [smem:[#allocation46_spill]] }
 0x172   : > { %s1356_s13 = scalar_lea.vmem %s7032_s22, %s4495_s8  ;;  %s7037_s16 = sld [smem:[#allocation48_spill]] }
 0x173   : > { %v1358_v0 = vld [vmem:[%s7033_s11] sm:$0xf]  ;;  %s6963_s0 = smov 112   ;;  %s6957_s1 = smov 80  }
 0x174   : > { %v1357_v1 = vld [vmem:[%s1356_s13] sm:$0xff]  ;;  %v1396_v2 = vld [vmem:[%s7034_s18 + $0x18] sm:$0xff]  ;;  %4496 = vmatpush.msk.msra.mxu0 %vm1367_vm0, %v1358_v0  ;;  %v1395_v3 = vld [vmem:[%s7034_s18 + $0x10] sm:$0xff]  ;;  %s6949_s2 = smov 88   ;;  %s6961_s12 = smov 104  }
 0x175   : > { %1417 = vmatpush.msra.mxu3 %v1396_v2  ;;  %4497 = vmatmul.msk.f32.vlgmr.msra.gmra.mxu0 %vm1363_vm1, %v1357_v1  ;;  %v1394_v4 = vld [vmem:[%s7034_s18 + $0x8] sm:$0xff]  ;;  %v1393_v5 = vld [vmem:[%s7034_s18] sm:$0xff]  ;;  %s6953_s23 = smov 64   ;;  %s6947_s22 = smov 48  }
 0x176   : > { %v4934_v6 = vld [vmem:[%s7035_s15] ss:$0 sm:$0xff]  ;;  %s6954_s11 = smov 56   ;;  %s6951_s26 = smov 40  }
 0x177   : > { %1418 = vmatpush.msra.mxu3 %v1395_v3  ;;  %v1391_v8 = vld [vmem:[%s7036_s3] sm:$0xff]  ;;  %s7038_s8 = sld [smem:[#allocation49_spill]]  ;;  %s6945_s15 = smov 8  }
 0x178   : > { %v4935_v11 = vld [vmem:[%s7037_s16] ss:$0 sm:$0xff]  ;;  %s6941_s13 = smov 16   ;;  %s6943_s3 = smov 24  }
 0x179   : > { %1419 = vmatpush.msra.mxu3 %v1394_v4  ;;  %s7054_s4 = sld [smem:[#allocation61_spill]]  ;;  %s7057_s9 = smov 120  }
 0x17a   : > { %s7055_s5 = sld [smem:[#allocation63_spill]]  ;;  %s7059_s14 = smov 64  }
 0x17b   : > { %1420 = vmatpush.msra.mxu3 %v1393_v5 }
 0x1f2   : > { %v1388_v7 = vpop.f32.mrf.mxu0 }
 0x1f3   : > { %v1389_v9 = vadd.f32 %v4934_v6, %v1388_v7 }
 0x1f5   : > { %v6334_v10 = vadd.f32 %v1391_v8, %v1389_v9  ;;  %v1709_v9 = vld [vmem:[%s7038_s8 + $0x18] sm:$0xff] }
 0x1f7   : > { %4498 = vmatmul.msk.f32.vlgmr.msra.gmra.mxu3 %vm1401_vm2, %v6334_v10 }
 0x27a   : > { %v1422_v12 = vpop.f32.mrf.mxu3 }
 0x27b   : > { %v6339_v13 = vadd.f32 %v4935_v11, %v1422_v12  ;;  %v1708_v11 = vld [vmem:[%s7038_s8 + $0x10] sm:$0xff]  ;;  %v1707_v12 = vld [vmem:[%s7038_s8 + $0x8] sm:$0xff] }
 0x27d   : > { %1625 = vrot.lane.b32.xlu2 %v6339_v13, %s6955_s10  ;;  %1491 = vrot.lane.b32.xlu1 %v6339_v13, %s6965_s7 }
 0x27e   : > { %1426 = vrot.lane.b32.xlu0 %v6339_v13, %s6959_s6 }
 0x285   : > { %1557 = vrot.lane.b32.xlu2 %v6339_v13, %s6963_s0  ;;  %1559 = vrot.lane.b32.xlu1 %v6339_v13, %s6957_s1 }
 0x286   : > { %1493 = vrot.lane.b32.xlu0 %v6339_v13, %s6949_s2 }
 0x28e   : > { %1623 = vrot.lane.b32.xlu0 %v6339_v13, %s6961_s12 }
 0x2d7   : > { %v1626_v16 = vpop.permute.xlu2 %1625 }
 0x2df   : > { %v1558_v19 = vpop.permute.xlu2 %1557 }
 0x2ef   : > { %v1492_v14 = vpop.permute.xlu1 %1491 }
 0x2f0   : > { %v1427_v15 = vpop.permute.xlu0 %1426 }
 0x2f1   : > { %4499 = vmatpush.xpose.msk.msra.mxu2 %vm1428_vm3, %v1427_v15 }
 0x2f4   : > { %4500 = vmatmul.msk.f32.vlgmr.msra.gmra.mxu2 %vm1428_vm3, %v6339_v13 }
 0x2f7   : > { %v1560_v17 = vpop.permute.xlu1 %1559 }
 0x2f8   : > { %v1494_v18 = vpop.permute.xlu0 %1493  ;;  %4505 = vmatpush.xpose.msk.msrb.mxu2 %vm1428_vm3, %v1560_v17 }
 0x2f9   : > { %4502 = vmatpush.xpose.msk.msrb.mxu0 %vm1428_vm3, %v1494_v18 }
 0x2fc   : > { %4503 = vmatmul.msk.f32.vlgmr.msrb.gmra.mxu0 %vm1428_vm3, %v1492_v14  ;;  %4506 = vmatmul.msk.f32.vlgmr.msrb.gmra.mxu2 %vm1428_vm3, %v1558_v19 }
 0x2fd   : > { %4508 = vmatpush.xpose.msk.msra.mxu0 %vm1428_vm3, %v1626_v16  ;;  %1729 = vmatpush.msra.mxu2 %v1709_v9 }
 0x2ff   : > { %1730 = vmatpush.msra.mxu2 %v1708_v11 }
 0x300   : > { %v1624_v20 = vpop.permute.xlu0 %1623 }
 0x301   : > { %1731 = vmatpush.msra.mxu2 %v1707_v12 }
 0x304   : > { %4509 = vmatmul.msk.f32.vlgmr.msra.gmra.mxu0 %vm1428_vm3, %v1624_v20  ;;  %v4936_v20 = vld [vmem:[#allocation2] ss:$0 sm:$0xff] }
 0x377   : > { %v1450_v21 = vpop.f32.mrf.mxu2 }
 0x378   : > { %v1453_v22 = vmul.f32 0.35355338, %v1450_v21 }
 0x379   : > { %v1516_v23 = vpop.f32.mrf.mxu0 }
 0x37a   : > { %v1519_v24 = vmul.f32 0.35355338, %v1516_v23  ;;  %v1454_v25 = vsel %vm1428_vm3, %v1453_v22, -inf }
 0x37b   : > { %1455 = vmax.xlane.f32.xlu1 %v1454_v25  ;;  %v5794_v25 = vmov 32.0  }
 0x37c   : > { %v1520_v26 = vsel %vm1428_vm3, %v1519_v24, -inf }
 0x37d   : > { %1521 = vmax.xlane.f32.xlu2 %v1520_v26 }
 0x37f   : > { %v1582_v27 = vpop.f32.mrf.mxu2 }
 0x380   : > { %v1585_v28 = vmul.f32 0.35355338, %v1582_v27 }
 0x381   : > { %v1648_v29 = vpop.f32.mrf.mxu0 }
 0x382   : > { %v1651_v30 = vmul.f32 0.35355338, %v1648_v29  ;;  %v1586_v31 = vsel %vm1428_vm3, %v1585_v28, -inf }
 0x384   : > { %v1652_v32 = vsel %vm1428_vm3, %v1651_v30, -inf }
 0x385   : > { %1587 = vmax.xlane.f32.xlu2 %v1586_v31  ;;  %1653 = vmax.xlane.f32.xlu0 %v1652_v32 }
 0x399   : > { %1465 = vrot.lane.b32.xlu0 %v6339_v13, %s6953_s23 }
 0x3a1   : > { %1597 = vrot.lane.b32.xlu0 %v6339_v13, %s6947_s22 }
 0x3ee   : > { %v1456_v33 = vpop.xlane.xlu1 %1455 }
 0x3ef   : > { %v1457_v34 = vsub.f32 %v1453_v22, %v1456_v33 }
 0x3f0   : > { %v1522_v35 = vpop.xlane.xlu2 %1521 }
 0x3f1   : > { %v1458_v36 = vmul.f32 1.442695, %v1457_v34  ;;  %v1523_v37 = vsub.f32 %v1519_v24, %v1522_v35 }
 0x3f3   : > { %4957 = vpow2.f32 %v1458_v36  ;;  %v1524_v38 = vmul.f32 1.442695, %v1523_v37 }
 0x3f5   : > { %4959 = vpow2.f32 %v1524_v38 }
 0x3f8   : > { %v1654_v39 = vpop.xlane.xlu0 %1653  ;;  %v1588_v41 = vpop.xlane.xlu2 %1587 }
 0x3f9   : > { %v4958_v40 = vpop.eup %4957  ;;  %v1655_v42 = vsub.f32 %v1651_v30, %v1654_v39  ;;  %v1589_v46 = vsub.f32 %v1585_v28, %v1588_v41 }
 0x3fa   : > { %v1460_v43 = vsel %vm1428_vm3, %v4958_v40, 0.0 }
 0x3fb   : > { %v4960_v44 = vpop.eup %4959  ;;  %v1656_v45 = vmul.f32 1.442695, %v1655_v42  ;;  %1461 = vadd.xlane.f32.xlu1 %v1460_v43  ;;  %v1590_v48 = vmul.f32 1.442695, %v1589_v46 }
 0x3fc   : > { %v1526_v47 = vsel %vm1428_vm3, %v4960_v44, 0.0 }
 0x3fd   : > { %1527 = vadd.xlane.f32.xlu2 %v1526_v47  ;;  %4961 = vpow2.f32 %v1656_v45 }
 0x3fe   : > { %4963 = vpow2.f32 %v1590_v48 }
 0x403   : > { %v4962_v49 = vpop.eup %4961 }
 0x404   : > { %v1658_v50 = vsel %vm1428_vm3, %v4962_v49, 0.0  ;;  %v4964_v51 = vpop.eup %4963 }
 0x405   : > { %1659 = vadd.xlane.f32.xlu1 %v1658_v50  ;;  %v1592_v53 = vsel %vm1428_vm3, %v4964_v51, 0.0 }
 0x40b   : > { %v1466_v52 = vpop.permute.xlu0 %1465 }
 0x40c   : > { %1486 = vmatpush.msrb.mxu3 %v1466_v52 }
 0x40d   : > { %1593 = vadd.xlane.f32.xlu1 %v1592_v53 }
 0x413   : > { %v1598_v54 = vpop.permute.xlu0 %1597 }
 0x414   : > { %1618 = vmatpush.msra.mxu1 %v1598_v54 }
 0x415   : > { %1531 = vrot.lane.b32.xlu2 %v6339_v13, %s6954_s11 }
 0x426   : > { %1663 = vrot.lane.b32.xlu1 %v6339_v13, %s6951_s26  ;;  %v1706_v13 = vld [vmem:[%s7038_s8] sm:$0xff] }
 0x427   : > { %1732 = vmatpush.msra.mxu2 %v1706_v13 }
 0x46e   : > { %v1462_v55 = vpop.xlane.xlu1 %1461 }
 0x46f   : > { %4965 = vrcp.f32 %v1462_v55 }
 0x470   : > { %v1528_v56 = vpop.xlane.xlu2 %1527 }
 0x471   : > { %4967 = vrcp.f32 %v1528_v56 }
 0x475   : > { %v4966_v57 = vpop.eup %4965 }
 0x476   : > { %v1464_v58 = vmul.f32 %v4966_v57, %v4958_v40 }
 0x477   : > { %v4968_v61 = vpop.eup %4967 }
 0x478   : > { %v1532_v59 = vpop.permute.xlu2 %1531  ;;  %4501 = vmatmul.msk.f32.vlgmr.msrb.gmra.mxu3 %vm1428_vm3, %v1464_v58  ;;  %v1660_v60 = vpop.xlane.xlu1 %1659  ;;  %v1530_v62 = vmul.f32 %v4968_v61, %v4960_v44 }
 0x479   : > { %1552 = vmatpush.msra.mxu3 %v1532_v59 }
 0x480   : > { %4504 = vmatmul.msk.f32.vlgmr.msra.gmra.mxu3 %vm1428_vm3, %v1530_v62  ;;  %v1594_v63 = vpop.xlane.xlu1 %1593 }
 0x481   : > { %4969 = vrcp.f32 %v1594_v63 }
 0x482   : > { %4971 = vrcp.f32 %v1660_v60  ;;  %v1738_v60 = vld [vmem:[#allocation5] sm:$0x3] }
 0x483   : > { %4973 = vrcp.f32 %v5794_v25 }
 0x487   : > { %v4970_v0 = vpop.eup %4969 }
 0x488   : > { %v1596_v1 = vmul.f32 %v4970_v0, %v4964_v51  ;;  %v4972_v2 = vpop.eup %4971  ;;  %v1768_v0 = vperm.slane %v1738_v60, 0 }
 0x489   : > { %v1662_v3 = vmul.f32 %v4972_v2, %v4962_v49  ;;  %v4974_v26 = vpop.eup %4973 }
 0x48a   : > { %4507 = vmatmul.msk.f32.vlgmr.msra.gmra.mxu1 %vm1428_vm3, %v1596_v1  ;;  %v1743_v27 = vmul.f32 32.0, %v4974_v26  ;;  %vm1747_vm6 = vweird.f32 %v4974_v26 }
 0x48c   : > { %v1744_v28 = vsub.f32 1.0, %v1743_v27 }
 0x48e   : > { %v1745_v29 = vmul.f32 %v4974_v26, %v1744_v28  ;;  %v4516_v28 = vld [vmem:[%s7034_s18 + $0x38] sm:$0xff] }
 0x490   : > { %v1746_v30 = vadd.f32 %v4974_v26, %v1745_v29  ;;  %v4515_v29 = vld [vmem:[%s7034_s18 + $0x30] sm:$0xff] }
 0x492   : > { %v6397_v31 = vsel %vm1747_vm6, %v4974_v26, %v1746_v30  ;;  %v4514_v30 = vld [vmem:[%s7034_s18 + $0x28] sm:$0xff] }
 0x498   : > { %v1664_v4 = vpop.permute.xlu1 %1663 }
 0x499   : > { %1684 = vmatpush.msrb.mxu3 %v1664_v4 }
 0x49a   : > { %4510 = vmatmul.msk.f32.vlgmr.msrb.gmra.mxu3 %vm1428_vm3, %v1662_v3  ;;  %v1770_v3 = vperm.slane %v1738_v60, 1 }
 0x49b   : > { %1897 = vmatpush.msra.mxu3 %v4516_v28 }
 0x49d   : > { %1898 = vmatpush.msra.mxu3 %v4515_v29 }
 0x49f   : > { %1899 = vmatpush.msra.mxu3 %v4514_v30 }
 0x4fb   : > { %v1488_v5 = vpop.f32.mrf.mxu3 }
 0x503   : > { %v1554_v6 = vpop.f32.mrf.mxu3 }
 0x504   : > { %1690 = vrot.lane.b32.xlu0 %v1554_v6, %s6945_s15  ;;  %s7041_s15 = sld [smem:[#allocation56_spill]] }
 0x507   : > { %v1620_v7 = vpop.f32.mrf.mxu1 }
 0x508   : > { %1694 = vrot.lane.b32.xlu2 %v1620_v7, %s6941_s13  ;;  %s7039_s13 = sld [smem:[#allocation52_spill]] }
 0x50a   : > { %v2380_v9 = vld [vmem:[%s7041_s15 + $0x18] sm:$0xff]  ;;  %v2379_v11 = vld [vmem:[%s7041_s15 + $0x10] sm:$0xff]  ;;  %v2378_v12 = vld [vmem:[%s7041_s15 + $0x8] sm:$0xff] }
 0x50b   : > { %v2377_v13 = vld [vmem:[%s7041_s15] sm:$0xff] }
 0x50e   : > { %v1775_v37 = vld [vmem:[%s7039_s13 + $0x18] sm:$0xff]  ;;  %v1774_v38 = vld [vmem:[%s7039_s13 + $0x10] sm:$0xff]  ;;  %v1773_v39 = vld [vmem:[%s7039_s13 + $0x8] sm:$0xff] }
 0x50f   : > { %1795 = vmatpush.msrb.mxu2 %v1775_v37  ;;  %v1772_v40 = vld [vmem:[%s7039_s13] sm:$0xff] }
 0x511   : > { %1796 = vmatpush.msrb.mxu2 %v1774_v38 }
 0x513   : > { %1797 = vmatpush.msrb.mxu2 %v1773_v39 }
 0x515   : > { %1798 = vmatpush.msrb.mxu2 %v1772_v40  ;;  %v1845_v40 = vld [vmem:[#allocation10] sm:$0x3] }
 0x51d   : > { %v1686_v8 = vpop.f32.mrf.mxu3 }
 0x51e   : > { %1698 = vrot.lane.b32.xlu0 %v1686_v8, %s6943_s3  ;;  %s7040_s3 = sld [smem:[#allocation53_spill]] }
 0x524   : > { %v1819_v41 = vld [vmem:[%s7040_s3 + $0x78] sm:$0xff]  ;;  %v1818_v42 = vld [vmem:[%s7040_s3 + $0x70] sm:$0xff]  ;;  %v1817_v43 = vld [vmem:[%s7040_s3 + $0x68] sm:$0xff] }
 0x525   : > { %1824 = vmatpush.msrb.mxu0 %v1819_v41  ;;  %v1816_v46 = vld [vmem:[%s7040_s3 + $0x60] sm:$0xff]  ;;  %v1815_v48 = vld [vmem:[%s7040_s3 + $0x58] sm:$0xff]  ;;  %v1814_v49 = vld [vmem:[%s7040_s3 + $0x50] sm:$0xff] }
 0x526   : > { %v1813_v50 = vld [vmem:[%s7040_s3 + $0x48] sm:$0xff]  ;;  %v1812_v51 = vld [vmem:[%s7040_s3 + $0x40] sm:$0xff]  ;;  %v1811_v53 = vld [vmem:[%s7040_s3 + $0x38] sm:$0xff] }
 0x527   : > { %1825 = vmatpush.msrb.mxu0 %v1818_v42  ;;  %v1810_v55 = vld [vmem:[%s7040_s3 + $0x30] sm:$0xff]  ;;  %v1809_v57 = vld [vmem:[%s7040_s3 + $0x28] sm:$0xff]  ;;  %v1808_v59 = vld [vmem:[%s7040_s3 + $0x20] sm:$0xff] }
 0x528   : > { %v1807_v62 = vld [vmem:[%s7040_s3 + $0x18] sm:$0xff]  ;;  %v1806_v6 = vld [vmem:[%s7040_s3 + $0x10] sm:$0xff]  ;;  %v1805_v7 = vld [vmem:[%s7040_s3 + $0x8] sm:$0xff] }
 0x529   : > { %1826 = vmatpush.msrb.mxu0 %v1817_v43  ;;  %v1804_v8 = vld [vmem:[%s7040_s3] sm:$0xff]  ;;  %v1868_v43 = vperm.slane %v1845_v40, 0 }
 0x52b   : > { %1827 = vmatpush.msrb.mxu0 %v1816_v46  ;;  %v1870_v46 = vperm.slane %v1845_v40, 1  ;;  %v4939_v40 = vld [vmem:[#allocation13] ss:$0 sm:$0xff] }
 0x52d   : > { %1828 = vmatpush.msrb.mxu0 %v1815_v48 }
 0x52f   : > { %1829 = vmatpush.msrb.mxu0 %v1814_v49  ;;  %v4940_v49 = vld [vmem:[%s7037_s16 + $0x1] ss:$0 sm:$0xff] }
 0x531   : > { %1830 = vmatpush.msrb.mxu0 %v1813_v50 }
 0x533   : > { %1831 = vmatpush.msrb.mxu0 %v1812_v51 }
 0x535   : > { %1832 = vmatpush.msrb.mxu0 %v1811_v53 }
 0x537   : > { %1833 = vmatpush.msrb.mxu0 %v1810_v55 }
 0x539   : > { %1834 = vmatpush.msrb.mxu0 %v1809_v57 }
 0x53b   : > { %1835 = vmatpush.msrb.mxu0 %v1808_v59 }
 0x53d   : > { %1836 = vmatpush.msrb.mxu0 %v1807_v62 }
 0x53f   : > { %1837 = vmatpush.msrb.mxu0 %v1806_v6 }
 0x541   : > { %1838 = vmatpush.msrb.mxu0 %v1805_v7 }
 0x543   : > { %1839 = vmatpush.msrb.mxu0 %v1804_v8 }
 0x545   : > { %2397 = vmatpush.msra.mxu0 %v2380_v9 }
 0x547   : > { %2398 = vmatpush.msra.mxu0 %v2379_v11 }
 0x549   : > { %2399 = vmatpush.msra.mxu0 %v2378_v12 }
 0x54b   : > { %2400 = vmatpush.msra.mxu0 %v2377_v13 }
 0x562   : > { %v1695_v16 = vpop.permute.xlu2 %1694 }
 0x576   : > { %v1691_v14 = vpop.permute.xlu0 %1690 }
 0x577   : > { %v1701_v15 = vsel %vm1428_vm3, %v1488_v5, %v1691_v14  ;;  %v4937_v14 = vld [vmem:[#allocation7] ss:$0 sm:$0xff] }
 0x578   : > { %v1703_v17 = vsel %vm1702_vm4, %v1701_v15, %v1695_v16 }
 0x590   : > { %v1699_v18 = vpop.permute.xlu0 %1698 }
 0x591   : > { %v1705_v19 = vsel %vm1704_vm5, %v1703_v17, %v1699_v18  ;;  %v4938_v18 = vld [vmem:[#allocation8] ss:$0 sm:$0xff] }
 0x592   : > { %4511 = vmatmul.msk.f32.vlgmr.msra.gmra.mxu2 %vm1401_vm2, %v1705_v19 }
 0x615   : > { %v1734_v21 = vpop.f32.mrf.mxu2 }
 0x616   : > { %v1735_v22 = vadd.f32 %v4936_v20, %v1734_v21 }
 0x618   : > { %v1737_v23 = vadd.f32 %v1735_v22, %v6334_v10 }
 0x61a   : > { %v1739_v24 = vsel %vm1401_vm2, %v1737_v23, 0.0 }
 0x61b   : > { %1740 = vadd.xlane.f32.xlu2 %v1739_v24 }
 0x68e   : > { %v1741_v32 = vpop.xlane.xlu2 %1740 }
 0x68f   : > { %v1749_v33 = vmul.f32 %v6397_v31, %v1741_v32  ;;  %v4513_v32 = vld [vmem:[%s7034_s18 + $0x20] sm:$0xff] }
 0x690   : > { %1900 = vmatpush.msra.mxu3 %v4513_v32 }
 0x691   : > { %v1750_v34 = vsub.f32 %v1737_v23, %v1749_v33 }
 0x693   : > { %v1751_v35 = vmul.f32 %v1750_v34, %v1750_v34 }
 0x695   : > { %v1752_v36 = vsel %vm1401_vm2, %v1751_v35, 0.0 }
 0x696   : > { %1753 = vadd.xlane.f32.xlu1 %v1752_v36 }
 0x709   : > { %v1754_v44 = vpop.xlane.xlu1 %1753 }
 0x70a   : > { %v1755_v45 = vmul.f32 %v1754_v44, %v6397_v31 }
 0x70c   : > { %v1756_v47 = vadd.f32 1e-05, %v1755_v45 }
 0x70e   : > { %4975 = vrsqrt.f32 %v1756_v47  ;;  %vm1763_vm8 = vweird.f32 %v1756_v47 }
 0x714   : > { %v4976_v52 = vpop.eup %4975 }
 0x715   : > { %v1758_v54 = vmul.f32 %v4976_v52, %v1756_v47  ;;  %vm1764_vm7 = vweird.f32 %v4976_v52 }
 0x716   : > { %vm1765_vm9 = vmor %vm1763_vm8, %vm1764_vm7 }
 0x717   : > { %v1759_v56 = vmul.f32 %v4976_v52, %v1758_v54 }
 0x719   : > { %v1760_v58 = vmul.f32 0.5, %v1759_v56 }
 0x71b   : > { %v1761_v61 = vsub.f32 1.5, %v1760_v58 }
 0x71d   : > { %v1762_v63 = vmul.f32 %v4976_v52, %v1761_v61 }
 0x71f   : > { %v1766_v1 = vsel %vm1765_vm9, %v4976_v52, %v1762_v63 }
 0x720   : > { %v1767_v2 = vmul.f32 %v1766_v1, %v1750_v34 }
 0x722   : > { %v1769_v4 = vmul.f32 %v1768_v0, %v1767_v2 }
 0x724   : > { %v1771_v5 = vadd.f32 %v1770_v3, %v1769_v4 }
 0x726   : > { %4512 = vmatmul.msk.f32.vlgmr.msrb.gmra.mxu2 %vm1401_vm2, %v1771_v5 }
 0x7a9   : > { %v1800_v15 = vpop.f32.mrf.mxu2 }
 0x7aa   : > { %v1801_v16 = vadd.f32 %v4937_v14, %v1800_v15 }
 0x7ac   : > { %v1803_v17 = vmax.f32 %v1801_v16, 0.0 }
 0x7ae   : > { %1840 = vmatmul.f32.vlgmr.msrb.gmra.mxu0 %v1803_v17 }
 0x7b6   : > { %4557 = vmatmul.msk.f32.vlgmr.msra.gmra.mxu0 %vm1401_vm2, %v6334_v10 }
 0x82b   : > { %v1841_v19 = vpop.f32.mrf.mxu0 }
 0x82c   : > { %v1842_v20 = vadd.f32 %v4938_v18, %v1841_v19 }
 0x82e   : > { %v1844_v21 = vadd.f32 %v1842_v20, %v1771_v5 }
 0x830   : > { %v1846_v22 = vsel %vm1401_vm2, %v1844_v21, 0.0 }
 0x831   : > { %1847 = vadd.xlane.f32.xlu0 %v1846_v22 }
 0x8a4   : > { %v1848_v23 = vpop.xlane.xlu0 %1847 }
 0x8a5   : > { %v1849_v24 = vmul.f32 %v1848_v23, %v6397_v31 }
 0x8a7   : > { %v1850_v25 = vsub.f32 %v1844_v21, %v1849_v24 }
 0x8a9   : > { %v1851_v26 = vmul.f32 %v1850_v25, %v1850_v25 }
 0x8ab   : > { %v1852_v27 = vsel %vm1401_vm2, %v1851_v26, 0.0 }
 0x8ac   : > { %1853 = vadd.xlane.f32.xlu2 %v1852_v27 }
 0x91f   : > { %v1854_v33 = vpop.xlane.xlu2 %1853 }
 0x920   : > { %v1855_v34 = vmul.f32 %v1854_v33, %v6397_v31 }
 0x922   : > { %v1856_v35 = vadd.f32 1e-05, %v1855_v34 }
 0x924   : > { %4977 = vrsqrt.f32 %v1856_v35  ;;  %vm1863_vm11 = vweird.f32 %v1856_v35 }
 0x92a   : > { %v4978_v36 = vpop.eup %4977 }
 0x92b   : > { %v1858_v37 = vmul.f32 %v4978_v36, %v1856_v35  ;;  %vm1864_vm10 = vweird.f32 %v4978_v36 }
 0x92c   : > { %vm1865_vm12 = vmor %vm1863_vm11, %vm1864_vm10 }
 0x92d   : > { %v1859_v38 = vmul.f32 %v4978_v36, %v1858_v37 }
 0x92f   : > { %v1860_v39 = vmul.f32 0.5, %v1859_v38 }
 0x931   : > { %v1861_v41 = vsub.f32 1.5, %v1860_v39 }
 0x933   : > { %v1862_v42 = vmul.f32 %v4978_v36, %v1861_v41  ;;  %v2402_v41 = vpop.f32.mrf.mxu0 }
 0x935   : > { %v1866_v44 = vsel %vm1865_vm12, %v4978_v36, %v1862_v42  ;;  %v6488_v42 = vadd.f32 %v4939_v40, %v2402_v41 }
 0x936   : > { %v1867_v45 = vmul.f32 %v1866_v44, %v1850_v25 }
 0x938   : > { %v1869_v47 = vmul.f32 %v1868_v43, %v1867_v45 }
 0x93a   : > { %v6437_v48 = vadd.f32 %v1870_v46, %v1869_v47 }
 0x93c   : > { %4518 = vmatmul.msk.f32.vlgmr.msra.gmra.mxu3 %vm1401_vm2, %v6437_v48 }
 0x9bf   : > { %v1902_v50 = vpop.f32.mrf.mxu3 }
 0x9c0   : > { %v6442_v51 = vadd.f32 %v4940_v49, %v1902_v50 }
 0x9c2   : > { %1970 = vrot.lane.b32.xlu2 %v6442_v51, %s6965_s7  ;;  %1972 = vrot.lane.b32.xlu0 %v6442_v51, %s6949_s2 }
 0x9c3   : > { %1906 = vrot.lane.b32.xlu1 %v6442_v51, %s6959_s6 }
 0x9ca   : > { %2010 = vrot.lane.b32.xlu2 %v6442_v51, %s6954_s11 }
 0xa1c   : > { %v1971_v52 = vpop.permute.xlu2 %1970 }
 0xa24   : > { %v2011_v55 = vpop.permute.xlu2 %2010 }
 0xa34   : > { %v1973_v53 = vpop.permute.xlu0 %1972 }
 0xa35   : > { %v1907_v54 = vpop.permute.xlu1 %1906  ;;  %4522 = vmatpush.xpose.msk.msrb.mxu3 %vm1428_vm3, %v1973_v53 }
 0xa36   : > { %4519 = vmatpush.xpose.msk.msra.mxu2 %vm1428_vm3, %v1907_v54 }
 0xa38   : > { %4523 = vmatmul.msk.f32.vlgmr.msrb.gmra.mxu3 %vm1428_vm3, %v1971_v52 }
 0xa39   : > { %4520 = vmatmul.msk.f32.vlgmr.msra.gmra.mxu2 %vm1428_vm3, %v6442_v51 }
 0xa3a   : > { %2031 = vmatpush.msrb.mxu2 %v2011_v55  ;;  %v4534_v55 = vld [vmem:[%s7038_s8 + $0x38] sm:$0xff] }
 0xabb   : > { %v1995_v56 = vpop.f32.mrf.mxu3 }
 0xabc   : > { %v1929_v57 = vpop.f32.mrf.mxu2  ;;  %v1998_v58 = vmul.f32 0.35355338, %v1995_v56  ;;  %v4533_v56 = vld [vmem:[%s7038_s8 + $0x30] sm:$0xff] }
 0xabd   : > { %v1932_v59 = vmul.f32 0.35355338, %v1929_v57  ;;  %v4532_v57 = vld [vmem:[%s7038_s8 + $0x28] sm:$0xff] }
 0xabe   : > { %v1999_v60 = vsel %vm1428_vm3, %v1998_v58, -inf }
 0xabf   : > { %2000 = vmax.xlane.f32.xlu1 %v1999_v60  ;;  %v1933_v61 = vsel %vm1428_vm3, %v1932_v59, -inf }
 0xac0   : > { %1934 = vmax.xlane.f32.xlu0 %v1933_v61 }
 0xad4   : > { %2038 = vrot.lane.b32.xlu0 %v6442_v51, %s6957_s1 }
 0xad8   : > { %1944 = vrot.lane.b32.xlu1 %v6442_v51, %s6953_s23 }
 0xae0   : > { %2104 = vrot.lane.b32.xlu1 %v6442_v51, %s6955_s10 }
 0xb32   : > { %v2001_v62 = vpop.xlane.xlu1 %2000 }
 0xb33   : > { %v1935_v63 = vpop.xlane.xlu0 %1934  ;;  %v2002_v0 = vsub.f32 %v1998_v58, %v2001_v62  ;;  %v4531_v58 = vld [vmem:[%s7038_s8 + $0x20] sm:$0xff]  ;;  %s7056_s8 = sld [smem:[#allocation65_spill]] }
 0xb34   : > { %v1936_v1 = vsub.f32 %v1932_v59, %v1935_v63 }
 0xb35   : > { %v2003_v2 = vmul.f32 1.442695, %v2002_v0 }
 0xb36   : > { %v1937_v3 = vmul.f32 1.442695, %v1936_v1 }
 0xb37   : > { %4979 = vpow2.f32 %v2003_v2 }
 0xb38   : > { %4981 = vpow2.f32 %v1937_v3 }
 0xb3d   : > { %v4980_v4 = vpop.eup %4979 }
 0xb3e   : > { %v4982_v5 = vpop.eup %4981  ;;  %v2005_v6 = vsel %vm1428_vm3, %v4980_v4, 0.0 }
 0xb3f   : > { %v1939_v7 = vsel %vm1428_vm3, %v4982_v5, 0.0  ;;  %2006 = vadd.xlane.f32.xlu0 %v2005_v6 }
 0xb40   : > { %1940 = vadd.xlane.f32.xlu2 %v1939_v7 }
 0xb46   : > { %v2039_v9 = vpop.permute.xlu0 %2038 }
 0xb4a   : > { %v1945_v8 = vpop.permute.xlu1 %1944 }
 0xb4b   : > { %1965 = vmatpush.msrb.mxu1 %v1945_v8 }
 0xb4d   : > { %4525 = vmatpush.xpose.msk.msra.mxu1 %vm1428_vm3, %v2039_v9 }
 0xb52   : > { %v2105_v11 = vpop.permute.xlu1 %2104 }
 0xb53   : > { %2036 = vrot.lane.b32.xlu0 %v6442_v51, %s6963_s0  ;;  %4528 = vmatpush.xpose.msk.msra.mxu2 %vm1428_vm3, %v2105_v11 }
 0xb58   : > { %2102 = vrot.lane.b32.xlu2 %v6442_v51, %s6961_s12 }
 0xbb2   : > { %v2007_v12 = vpop.xlane.xlu0 %2006 }
 0xbb3   : > { %v1941_v13 = vpop.xlane.xlu2 %1940  ;;  %4983 = vrcp.f32 %v2007_v12 }
 0xbb4   : > { %4985 = vrcp.f32 %v1941_v13 }
 0xbb9   : > { %v4984_v14 = vpop.eup %4983 }
 0xbba   : > { %v4986_v15 = vpop.eup %4985  ;;  %v2009_v16 = vmul.f32 %v4984_v14, %v4980_v4 }
 0xbbb   : > { %v1943_v17 = vmul.f32 %v4986_v15, %v4982_v5  ;;  %v2103_v18 = vpop.permute.xlu2 %2102  ;;  %v4941_v5 = vld [vmem:[#allocation2 + $0x1] ss:$0 sm:$0xff] }
 0xbbc   : > { %4524 = vmatmul.msk.f32.vlgmr.msrb.gmra.mxu2 %vm1428_vm3, %v2009_v16 }
 0xbbd   : > { %4521 = vmatmul.msk.f32.vlgmr.msrb.gmra.mxu1 %vm1428_vm3, %v1943_v17 }
 0xbc4   : > { %4529 = vmatmul.msk.f32.vlgmr.msra.gmra.mxu2 %vm1428_vm3, %v2103_v18 }
 0xbc5   : > { %v2037_v19 = vpop.permute.xlu0 %2036 }
 0xbc6   : > { %4526 = vmatmul.msk.f32.vlgmr.msra.gmra.mxu1 %vm1428_vm3, %v2037_v19 }
 0xc3a   : > { %v6477_v20 = vpop.f32.mrf.mxu1 }
 0xc3f   : > { %v2033_v21 = vpop.f32.mrf.mxu2 }
 0xc43   : > { %v2061_v22 = vpop.f32.mrf.mxu1 }
 0xc44   : > { %v2064_v23 = vmul.f32 0.35355338, %v2061_v22 }
 0xc46   : > { %v2065_v24 = vsel %vm1428_vm3, %v2064_v23, -inf }
 0xc47   : > { %2066 = vmax.xlane.f32.xlu1 %v2065_v24  ;;  %v2127_v25 = vpop.f32.mrf.mxu2 }
 0xc48   : > { %v2130_v26 = vmul.f32 0.35355338, %v2127_v25 }
 0xc4a   : > { %v2131_v27 = vsel %vm1428_vm3, %v2130_v26, -inf }
 0xc4b   : > { %2132 = vmax.xlane.f32.xlu0 %v2131_v27 }
 0xc5f   : > { %2076 = vrot.lane.b32.xlu0 %v6442_v51, %s6947_s22  ;;  %s7042_s22 = smov 8  }
 0xcba   : > { %v2067_v28 = vpop.xlane.xlu1 %2066 }
 0xcbb   : > { %v2068_v29 = vsub.f32 %v2064_v23, %v2067_v28 }
 0xcbd   : > { %v2069_v30 = vmul.f32 1.442695, %v2068_v29  ;;  %v4539_v29 = vld [vmem:[%s7039_s13 + $0x38] sm:$0xff] }
 0xcbe   : > { %v2133_v32 = vpop.xlane.xlu0 %2132  ;;  %2270 = vmatpush.msrb.mxu2 %v4539_v29 }
 0xcbf   : > { %4987 = vpow2.f32 %v2069_v30  ;;  %v2134_v33 = vsub.f32 %v2130_v26, %v2133_v32  ;;  %v4538_v30 = vld [vmem:[%s7039_s13 + $0x30] sm:$0xff]  ;;  %v4537_v32 = vld [vmem:[%s7039_s13 + $0x28] sm:$0xff] }
 0xcc0   : > { %2271 = vmatpush.msrb.mxu2 %v4538_v30 }
 0xcc1   : > { %v2135_v34 = vmul.f32 1.442695, %v2134_v33  ;;  %v4536_v33 = vld [vmem:[%s7039_s13 + $0x20] sm:$0xff]  ;;  %s7058_s13 = smov 56  }
 0xcc2   : > { %2272 = vmatpush.msrb.mxu2 %v4537_v32 }
 0xcc3   : > { %4989 = vpow2.f32 %v2135_v34 }
 0xcc4   : > { %2273 = vmatpush.msrb.mxu2 %v4536_v33 }
 0xcc5   : > { %v4988_v35 = vpop.eup %4987 }
 0xcc6   : > { %v2071_v36 = vsel %vm1428_vm3, %v4988_v35, 0.0 }
 0xcc7   : > { %2072 = vadd.xlane.f32.xlu2 %v2071_v36 }
 0xcc9   : > { %v4990_v37 = vpop.eup %4989 }
 0xcca   : > { %v2137_v38 = vsel %vm1428_vm3, %v4990_v37, 0.0 }
 0xccb   : > { %2138 = vadd.xlane.f32.xlu1 %v2137_v38 }
 0xcd1   : > { %v2077_v39 = vpop.permute.xlu0 %2076 }
 0xcd2   : > { %2097 = vmatpush.msra.mxu3 %v2077_v39 }
 0xcd4   : > { %2208 = vmatpush.msrb.mxu3 %v4534_v55 }
 0xcd6   : > { %2209 = vmatpush.msrb.mxu3 %v4533_v56 }
 0xcd8   : > { %2210 = vmatpush.msrb.mxu3 %v4532_v57 }
 0xcda   : > { %2211 = vmatpush.msrb.mxu3 %v4531_v58 }
 0xcdf   : > { %2142 = vrot.lane.b32.xlu2 %v6442_v51, %s6951_s26  ;;  %s7044_s26 = smov 16  }
 0xce4   : > { %2169 = vrot.lane.b32.xlu1 %v2033_v21, %s7042_s22 }
 0xcec   : > { %2472 = vrot.lane.b32.xlu1 %v6488_v42, %s6949_s2  ;;  %s7043_s2 = smov 24  }
 0xd3a   : > { %v2073_v43 = vpop.xlane.xlu2 %2072 }
 0xd3b   : > { %4991 = vrcp.f32 %v2073_v43 }
 0xd3e   : > { %v2139_v44 = vpop.xlane.xlu1 %2138 }
 0xd3f   : > { %4993 = vrcp.f32 %v2139_v44 }
 0xd41   : > { %v4992_v45 = vpop.eup %4991 }
 0xd42   : > { %v2075_v46 = vmul.f32 %v4992_v45, %v4988_v35  ;;  %v2143_v47 = vpop.permute.xlu2 %2142 }
 0xd43   : > { %2163 = vmatpush.msrb.mxu1 %v2143_v47 }
 0xd44   : > { %4527 = vmatmul.msk.f32.vlgmr.msra.gmra.mxu3 %vm1428_vm3, %v2075_v46  ;;  %v2218_v46 = vld [vmem:[#allocation5 + $0x2] sm:$0x3] }
 0xd45   : > { %v4994_v49 = vpop.eup %4993 }
 0xd46   : > { %v2141_v50 = vmul.f32 %v4994_v49, %v4990_v37 }
 0xd48   : > { %4530 = vmatmul.msk.f32.vlgmr.msrb.gmra.mxu1 %vm1428_vm3, %v2141_v50  ;;  %v2241_v50 = vperm.slane %v2218_v46, 0 }
 0xd56   : > { %v2170_v51 = vpop.permute.xlu1 %2169 }
 0xd57   : > { %v2180_v61 = vsel %vm1428_vm3, %v6477_v20, %v2170_v51 }
 0xd5e   : > { %v2473_v52 = vpop.permute.xlu1 %2472 }
 0xd5f   : > { %4561 = vmatpush.xpose.msk.msrb.mxu0 %vm1428_vm3, %v2473_v52 }
 0xdc5   : > { %v2165_v53 = vpop.f32.mrf.mxu1 }
 0xdc6   : > { %2177 = vrot.lane.b32.xlu2 %v2165_v53, %s7043_s2 }
 0xdc7   : > { %v2099_v54 = vpop.f32.mrf.mxu3 }
 0xdc8   : > { %2173 = vrot.lane.b32.xlu0 %v2099_v54, %s7044_s26  ;;  %v2243_v54 = vperm.slane %v2218_v46, 1 }
 0xdce   : > { %2470 = vrot.lane.b32.xlu2 %v6488_v42, %s6965_s7 }
 0xdd0   : > { %2406 = vrot.lane.b32.xlu0 %v6488_v42, %s6959_s6  ;;  %s7049_s6 = sld [smem:[#allocation58_spill]] }
 0xe20   : > { %v2178_v59 = vpop.permute.xlu2 %2177 }
 0xe28   : > { %v2471_v60 = vpop.permute.xlu2 %2470 }
 0xe29   : > { %4562 = vmatmul.msk.f32.vlgmr.msrb.gmra.mxu0 %vm1428_vm3, %v2471_v60 }
 0xe3a   : > { %v2174_v62 = vpop.permute.xlu0 %2173 }
 0xe3b   : > { %v2181_v63 = vsel %vm1702_vm4, %v2180_v61, %v2174_v62 }
 0xe3c   : > { %v2182_v0 = vsel %vm1704_vm5, %v2181_v63, %v2178_v59  ;;  %v4556_v63 = vld [vmem:[%s7040_s3 + $0xf8] sm:$0xff] }
 0xe3d   : > { %4535 = vmatmul.msk.f32.vlgmr.msrb.gmra.mxu3 %vm1401_vm2, %v2182_v0  ;;  %v4555_v0 = vld [vmem:[%s7040_s3 + $0xf0] sm:$0xff]  ;;  %2301 = vmatpush.msra.mxu1 %v4556_v63 }
 0xe3f   : > { %2302 = vmatpush.msra.mxu1 %v4555_v0 }
 0xe42   : > { %v2407_v1 = vpop.permute.xlu0 %2406 }
 0xe43   : > { %4558 = vmatpush.xpose.msk.msra.mxu3 %vm1428_vm3, %v2407_v1  ;;  %v4554_v1 = vld [vmem:[%s7040_s3 + $0xe8] sm:$0xff] }
 0xe44   : > { %2303 = vmatpush.msra.mxu1 %v4554_v1 }
 0xe46   : > { %4559 = vmatmul.msk.f32.vlgmr.msra.gmra.mxu3 %vm1428_vm3, %v6488_v42 }
 0xea6   : > { %v2495_v2 = vpop.f32.mrf.mxu0 }
 0xea7   : > { %v2498_v3 = vmul.f32 0.35355338, %v2495_v2  ;;  %v4553_v2 = vld [vmem:[%s7040_s3 + $0xe0] sm:$0xff] }
 0xea8   : > { %2304 = vmatpush.msra.mxu1 %v4553_v2 }
 0xea9   : > { %v2499_v4 = vsel %vm1428_vm3, %v2498_v3, -inf }
 0xeaa   : > { %2500 = vmax.xlane.f32.xlu1 %v2499_v4  ;;  %v4551_v4 = vld [vmem:[%s7040_s3 + $0xd0] sm:$0xff] }
 0xec0   : > { %v2213_v6 = vpop.f32.mrf.mxu3 }
 0xec1   : > { %v2214_v7 = vadd.f32 %v4941_v5, %v2213_v6  ;;  %v4550_v5 = vld [vmem:[%s7040_s3 + $0xc8] sm:$0xff]  ;;  %v4549_v6 = vld [vmem:[%s7040_s3 + $0xc0] sm:$0xff] }
 0xec3   : > { %v2216_v8 = vadd.f32 %v2214_v7, %v6437_v48  ;;  %v4548_v7 = vld [vmem:[%s7040_s3 + $0xb8] sm:$0xff] }
 0xec5   : > { %v2219_v9 = vsel %vm1401_vm2, %v2216_v8, 0.0 }
 0xec6   : > { %2220 = vadd.xlane.f32.xlu0 %v2219_v9  ;;  %v4546_v9 = vld [vmem:[%s7040_s3 + $0xa8] sm:$0xff] }
 0xec9   : > { %v2429_v11 = vpop.f32.mrf.mxu3 }
 0xeca   : > { %v2432_v12 = vmul.f32 0.35355338, %v2429_v11  ;;  %v4545_v11 = vld [vmem:[%s7040_s3 + $0xa0] sm:$0xff] }
 0xecc   : > { %v2433_v13 = vsel %vm1428_vm3, %v2432_v12, -inf }
 0xecd   : > { %2434 = vmax.xlane.f32.xlu2 %v2433_v13  ;;  %v4543_v13 = vld [vmem:[%s7040_s3 + $0x90] sm:$0xff] }
 0xeda   : > { %2510 = vrot.lane.b32.xlu0 %v6488_v42, %s6954_s11  ;;  %s7046_s11 = smov 48  }
 0xf1d   : > { %v2501_v14 = vpop.xlane.xlu1 %2500 }
 0xf1e   : > { %v2502_v15 = vsub.f32 %v2498_v3, %v2501_v14  ;;  %v4552_v3 = vld [vmem:[%s7040_s3 + $0xd8] sm:$0xff]  ;;  %v4542_v14 = vld [vmem:[%s7040_s3 + $0x88] sm:$0xff] }
 0xf1f   : > { %2305 = vmatpush.msra.mxu1 %v4552_v3 }
 0xf20   : > { %v2503_v16 = vmul.f32 1.442695, %v2502_v15  ;;  %v4541_v15 = vld [vmem:[%s7040_s3 + $0x80] sm:$0xff] }
 0xf21   : > { %2306 = vmatpush.msra.mxu1 %v4551_v4 }
 0xf22   : > { %4995 = vpow2.f32 %v2503_v16  ;;  %v4942_v16 = vld [vmem:[#allocation7 + $0x1] ss:$0 sm:$0xff] }
 0xf23   : > { %2307 = vmatpush.msra.mxu1 %v4550_v5 }
 0xf25   : > { %2308 = vmatpush.msra.mxu1 %v4549_v6 }
 0xf27   : > { %2309 = vmatpush.msra.mxu1 %v4548_v7 }
 0xf28   : > { %v4996_v17 = vpop.eup %4995 }
 0xf29   : > { %v2505_v18 = vsel %vm1428_vm3, %v4996_v17, 0.0 }
 0xf2a   : > { %2506 = vadd.xlane.f32.xlu2 %v2505_v18 }
 0xf39   : > { %v2221_v48 = vpop.xlane.xlu0 %2220 }
 0xf3a   : > { %v2222_v19 = vmul.f32 %v2221_v48, %v6397_v31 }
 0xf3c   : > { %v2223_v20 = vsub.f32 %v2216_v8, %v2222_v19  ;;  %v4547_v8 = vld [vmem:[%s7040_s3 + $0xb0] sm:$0xff] }
 0xf3d   : > { %2310 = vmatpush.msra.mxu1 %v4547_v8 }
 0xf3e   : > { %v2224_v21 = vmul.f32 %v2223_v20, %v2223_v20 }
 0xf3f   : > { %2311 = vmatpush.msra.mxu1 %v4546_v9 }
 0xf40   : > { %v2435_v22 = vpop.xlane.xlu2 %2434  ;;  %v2225_v23 = vsel %vm1401_vm2, %v2224_v21, 0.0 }
 0xf41   : > { %v2436_v24 = vsub.f32 %v2432_v12, %v2435_v22  ;;  %2226 = vadd.xlane.f32.xlu0 %v2225_v23  ;;  %v4544_v12 = vld [vmem:[%s7040_s3 + $0x98] sm:$0xff]  ;;  %2312 = vmatpush.msra.mxu1 %v4545_v11  ;;  %s7053_s3 = smov 72  }
 0xf42   : > { %2444 = vrot.lane.b32.xlu2 %v6488_v42, %s6953_s23  ;;  %s7045_s23 = smov 40  }
 0xf43   : > { %v2437_v25 = vmul.f32 1.442695, %v2436_v24  ;;  %2313 = vmatpush.msra.mxu1 %v4544_v12 }
 0xf45   : > { %4997 = vpow2.f32 %v2437_v25  ;;  %2314 = vmatpush.msra.mxu1 %v4543_v13 }
 0xf47   : > { %2315 = vmatpush.msra.mxu1 %v4542_v14  ;;  %v2323_v14 = vld [vmem:[#allocation10 + $0x2] sm:$0x3] }
 0xf49   : > { %2316 = vmatpush.msra.mxu1 %v4541_v15 }
 0xf4a   : > { %2538 = vrot.lane.b32.xlu2 %v6488_v42, %s6957_s1  ;;  %s7048_s1 = sld [smem:[#allocation60_spill]] }
 0xf4b   : > { %v4998_v26 = vpop.eup %4997 }
 0xf4c   : > { %v2511_v27 = vpop.permute.xlu0 %2510  ;;  %v2439_v28 = vsel %vm1428_vm3, %v4998_v26, 0.0 }
 0xf4d   : > { %2531 = vmatpush.msrb.mxu3 %v2511_v27  ;;  %2440 = vadd.xlane.f32.xlu1 %v2439_v28 }
 0xf55   : > { %2602 = vrot.lane.b32.xlu0 %v6488_v42, %s6961_s12 }
 0xf5d   : > { %2536 = vrot.lane.b32.xlu0 %v6488_v42, %s6963_s0 }
 0xf66   : > { %2604 = vrot.lane.b32.xlu1 %v6488_v42, %s6955_s10  ;;  %s7047_s10 = sld [smem:[#allocation57_spill]] }
 0xf6c   : > { %v2683_v63 = vld [vmem:[%s7047_s10] sm:$0xff] }
 0xf9d   : > { %v2507_v34 = vpop.xlane.xlu2 %2506 }
 0xf9e   : > { %4999 = vrcp.f32 %v2507_v34 }
 0xfa4   : > { %v5000_v35 = vpop.eup %4999 }
 0xfa5   : > { %v2509_v36 = vmul.f32 %v5000_v35, %v4996_v17  ;;  %v2445_v37 = vpop.permute.xlu2 %2444 }
 0xfa6   : > { %2465 = vmatpush.msra.mxu2 %v2445_v37 }
 0xfa7   : > { %4563 = vmatmul.msk.f32.vlgmr.msrb.gmra.mxu3 %vm1428_vm3, %v2509_v36 }
 0xfad   : > { %v2539_v57 = vpop.permute.xlu2 %2538 }
 0xfb4   : > { %v2227_v38 = vpop.xlane.xlu0 %2226 }
 0xfb5   : > { %v2228_v39 = vmul.f32 %v2227_v38, %v6397_v31 }
 0xfb7   : > { %v2229_v40 = vadd.f32 1e-05, %v2228_v39  ;;  %v4943_v39 = vld [vmem:[#allocation8 + $0x1] ss:$0 sm:$0xff] }
 0xfb9   : > { %5001 = vrsqrt.f32 %v2229_v40  ;;  %vm2236_vm14 = vweird.f32 %v2229_v40 }
 0xfbf   : > { %v5002_v41 = vpop.eup %5001 }
 0xfc0   : > { %v2231_v43 = vmul.f32 %v5002_v41, %v2229_v40  ;;  %vm2237_vm13 = vweird.f32 %v5002_v41  ;;  %v2441_v53 = vpop.xlane.xlu1 %2440 }
 0xfc1   : > { %vm2238_vm15 = vmor %vm2236_vm14, %vm2237_vm13  ;;  %5003 = vrcp.f32 %v2441_v53 }
 0xfc2   : > { %v2232_v44 = vmul.f32 %v5002_v41, %v2231_v43 }
 0xfc4   : > { %v2233_v45 = vmul.f32 0.5, %v2232_v44 }
 0xfc6   : > { %v2234_v47 = vsub.f32 1.5, %v2233_v45 }
 0xfc7   : > { %v5004_v58 = vpop.eup %5003  ;;  %v2603_v59 = vpop.permute.xlu0 %2602 }
 0xfc8   : > { %v2235_v49 = vmul.f32 %v5002_v41, %v2234_v47  ;;  %v2443_v60 = vmul.f32 %v5004_v58, %v4998_v26 }
 0xfca   : > { %v2239_v51 = vsel %vm2238_vm15, %v5002_v41, %v2235_v49 }
 0xfcb   : > { %v2240_v52 = vmul.f32 %v2239_v51, %v2223_v20 }
 0xfcd   : > { %v2242_v55 = vmul.f32 %v2241_v50, %v2240_v52 }
 0xfcf   : > { %v6540_v56 = vadd.f32 %v2243_v54, %v2242_v55  ;;  %v2537_v62 = vpop.permute.xlu0 %2536 }
 0xfd1   : > { %4540 = vmatmul.msk.f32.vlgmr.msrb.gmra.mxu2 %vm1401_vm2, %v6540_v56 }
 0xfd2   : > { %4564 = vmatpush.xpose.msk.msrb.mxu2 %vm1428_vm3, %v2539_v57 }
 0xfd8   : > { %v2605_v61 = vpop.permute.xlu1 %2604 }
 0xfd9   : > { %4560 = vmatmul.msk.f32.vlgmr.msra.gmra.mxu2 %vm1428_vm3, %v2443_v60  ;;  %4567 = vmatpush.xpose.msk.msra.mxu3 %vm1428_vm3, %v2605_v61  ;;  %v2686_v60 = vld [vmem:[%s7047_s10 + $0x18] sm:$0xff]  ;;  %v2685_v61 = vld [vmem:[%s7047_s10 + $0x10] sm:$0xff] }
 0xfdc   : > { %4568 = vmatmul.msk.f32.vlgmr.msra.gmra.mxu3 %vm1428_vm3, %v2603_v59 }
 0xfe1   : > { %4565 = vmatmul.msk.f32.vlgmr.msrb.gmra.mxu2 %vm1428_vm3, %v2537_v62  ;;  %v2684_v62 = vld [vmem:[%s7047_s10 + $0x8] sm:$0xff] }
0x102a   : > { %v2533_v48 = vpop.f32.mrf.mxu3 }
0x1054   : > { %v2275_v17 = vpop.f32.mrf.mxu2 }
0x1055   : > { %v2276_v18 = vadd.f32 %v4942_v16, %v2275_v17  ;;  %v2346_v16 = vperm.slane %v2323_v14, 0 }
0x1057   : > { %v2278_v19 = vmax.f32 %v2276_v18, 0.0 }
0x1059   : > { %2317 = vmatmul.f32.vlgmr.msra.gmra.mxu1 %v2278_v19 }
0x105c   : > { %v6565_v20 = vpop.f32.mrf.mxu2 }
0x105f   : > { %v2627_v21 = vpop.f32.mrf.mxu3 }
0x1060   : > { %v2630_v22 = vmul.f32 0.35355338, %v2627_v21 }
0x1062   : > { %v2631_v23 = vsel %vm1428_vm3, %v2630_v22, -inf }
0x1063   : > { %2632 = vmax.xlane.f32.xlu1 %v2631_v23 }
0x1064   : > { %v2561_v24 = vpop.f32.mrf.mxu2 }
0x1065   : > { %v2564_v25 = vmul.f32 0.35355338, %v2561_v24 }
0x1067   : > { %v2565_v26 = vsel %vm1428_vm3, %v2564_v25, -inf }
0x1068   : > { %2566 = vmax.xlane.f32.xlu2 %v2565_v26 }
0x1080   : > { %2642 = vrot.lane.b32.xlu2 %v6488_v42, %s7045_s23 }
0x10d6   : > { %v2633_v27 = vpop.xlane.xlu1 %2632  ;;  %v2318_v40 = vpop.f32.mrf.mxu1 }
0x10d7   : > { %v2634_v28 = vsub.f32 %v2630_v22, %v2633_v27  ;;  %v2319_v41 = vadd.f32 %v4943_v39, %v2318_v40  ;;  %v4944_v22 = vld [vmem:[#allocation14] ss:$0 sm:$0xff]  ;;  %v2774_v39 = vld [vmem:[%s7048_s1 + $0x8] sm:$0xff]  ;;  %v2773_v40 = vld [vmem:[%s7048_s1] sm:$0xff] }
0x10d9   : > { %v2635_v29 = vmul.f32 1.442695, %v2634_v28  ;;  %v2321_v43 = vadd.f32 %v2319_v41, %v6540_v56 }
0x10db   : > { %5005 = vpow2.f32 %v2635_v29  ;;  %v2567_v30 = vpop.xlane.xlu2 %2566  ;;  %v2324_v44 = vsel %vm1401_vm2, %v2321_v43, 0.0 }
0x10dc   : > { %v2568_v32 = vsub.f32 %v2564_v25, %v2567_v30 }
0x10de   : > { %v2569_v33 = vmul.f32 1.442695, %v2568_v32 }
0x10e0   : > { %5007 = vpow2.f32 %v2569_v33 }
0x10e1   : > { %v5006_v34 = vpop.eup %5005 }
0x10e2   : > { %v2637_v35 = vsel %vm1428_vm3, %v5006_v34, 0.0 }
0x10e3   : > { %v2643_v36 = vpop.permute.xlu2 %2642  ;;  %2638 = vadd.xlane.f32.xlu0 %v2637_v35 }
0x10e4   : > { %2663 = vmatpush.msra.mxu2 %v2643_v36 }
0x10e6   : > { %v5008_v37 = vpop.eup %5007 }
0x10e7   : > { %v2571_v38 = vsel %vm1428_vm3, %v5008_v37, 0.0 }
0x10e8   : > { %2572 = vadd.xlane.f32.xlu1 %v2571_v38  ;;  %v2775_v38 = vld [vmem:[%s7048_s1 + $0x10] sm:$0xff] }
0x10f7   : > { %2576 = vrot.lane.b32.xlu0 %v6488_v42, %s7046_s11 }
0x1101   : > { %2669 = vrot.lane.b32.xlu1 %v2533_v48, %s7042_s22  ;;  %v2348_v48 = vperm.slane %v2323_v14, 1 }
0x112b   : > { %2325 = vadd.xlane.f32.xlu1 %v2324_v44 }
0x1156   : > { %v2639_v45 = vpop.xlane.xlu0 %2638 }
0x1157   : > { %5009 = vrcp.f32 %v2639_v45 }
0x115b   : > { %v2573_v47 = vpop.xlane.xlu1 %2572 }
0x115c   : > { %5011 = vrcp.f32 %v2573_v47 }
0x115d   : > { %v5010_v46 = vpop.eup %5009 }
0x115e   : > { %v2641_v49 = vmul.f32 %v5010_v46, %v5006_v34 }
0x1160   : > { %4569 = vmatmul.msk.f32.vlgmr.msra.gmra.mxu2 %vm1428_vm3, %v2641_v49 }
0x1162   : > { %v5012_v50 = vpop.eup %5011 }
0x1163   : > { %v2575_v42 = vmul.f32 %v5012_v50, %v5008_v37  ;;  %v2776_v37 = vld [vmem:[%s7048_s1 + $0x18] sm:$0xff]  ;;  %v2350_v50 = vld [vmem:[#allocation11] sm:$0x3] }
0x1164   : > { %2796 = vmatpush.msrb.mxu2 %v2776_v37 }
0x1166   : > { %2797 = vmatpush.msrb.mxu2 %v2775_v38 }
0x1168   : > { %2798 = vmatpush.msrb.mxu2 %v2774_v39 }
0x1169   : > { %v2577_v51 = vpop.permute.xlu0 %2576 }
0x116a   : > { %2597 = vmatpush.msra.mxu0 %v2577_v51  ;;  %2799 = vmatpush.msrb.mxu2 %v2773_v40 }
0x116b   : > { %4566 = vmatmul.msk.f32.vlgmr.msra.gmra.mxu0 %vm1428_vm3, %v2575_v42 }
0x116c   : > { %2706 = vmatpush.msrb.mxu0 %v2686_v60  ;;  %v2743_v60 = vld [vmem:[%s7049_s6 + $0x8] sm:$0xff] }
0x116e   : > { %2707 = vmatpush.msrb.mxu0 %v2685_v61  ;;  %v2742_v61 = vld [vmem:[%s7049_s6] sm:$0xff] }
0x1170   : > { %2708 = vmatpush.msrb.mxu0 %v2684_v62 }
0x1172   : > { %2709 = vmatpush.msrb.mxu0 %v2683_v63 }
0x1173   : > { %v2670_v54 = vpop.permute.xlu1 %2669 }
0x1174   : > { %v2680_v0 = vsel %vm1428_vm3, %v6565_v20, %v2670_v54 }
0x119e   : > { %v2326_v55 = vpop.xlane.xlu1 %2325 }
0x119f   : > { %v2327_v56 = vmul.f32 %v2326_v55, %v6397_v31  ;;  %v2375_v55 = vperm.slane %v2350_v50, 1 }
0x11a1   : > { %v2328_v57 = vsub.f32 %v2321_v43, %v2327_v56 }
0x11a3   : > { %v2329_v58 = vmul.f32 %v2328_v57, %v2328_v57 }
0x11a5   : > { %v2330_v59 = vsel %vm1401_vm2, %v2329_v58, 0.0  ;;  %v2745_v58 = vld [vmem:[%s7049_s6 + $0x18] sm:$0xff] }
0x11a6   : > { %2765 = vmatpush.msrb.mxu3 %v2745_v58 }
0x11e3   : > { %v2665_v52 = vpop.f32.mrf.mxu2 }
0x11e4   : > { %2677 = vrot.lane.b32.xlu2 %v2665_v52, %s7043_s2  ;;  %v2373_v52 = vperm.slane %v2350_v50, 0 }
0x11e8   : > { %v2599_v53 = vpop.f32.mrf.mxu0 }
0x11e9   : > { %2673 = vrot.lane.b32.xlu0 %v2599_v53, %s7044_s26 }
0x1213   : > { %2331 = vadd.xlane.f32.xlu0 %v2330_v59  ;;  %v2744_v59 = vld [vmem:[%s7049_s6 + $0x10] sm:$0xff] }
0x1214   : > { %2766 = vmatpush.msrb.mxu3 %v2744_v59 }
0x1216   : > { %2767 = vmatpush.msrb.mxu3 %v2743_v60 }
0x1218   : > { %2768 = vmatpush.msrb.mxu3 %v2742_v61 }
0x123e   : > { %v2678_v2 = vpop.permute.xlu2 %2677 }
0x125b   : > { %v2674_v1 = vpop.permute.xlu0 %2673 }
0x125c   : > { %v2681_v3 = vsel %vm1702_vm4, %v2680_v0, %v2674_v1 }
0x125d   : > { %v2682_v4 = vsel %vm1704_vm5, %v2681_v3, %v2678_v2 }
0x125e   : > { %4570 = vmatmul.msk.f32.vlgmr.msrb.gmra.mxu0 %vm1401_vm2, %v2682_v4 }
0x1286   : > { %v2332_v5 = vpop.xlane.xlu0 %2331 }
0x1287   : > { %v2333_v6 = vmul.f32 %v2332_v5, %v6397_v31  ;;  %v2715_v5 = vld [vmem:[#allocation16] sm:$0x3] }
0x1289   : > { %v2334_v7 = vadd.f32 1e-05, %v2333_v6 }
0x128b   : > { %5013 = vrsqrt.f32 %v2334_v7  ;;  %vm2341_vm1 = vweird.f32 %v2334_v7 }
0x1291   : > { %v5014_v8 = vpop.eup %5013 }
0x1292   : > { %v2336_v9 = vmul.f32 %v5014_v8, %v2334_v7  ;;  %vm2342_vm0 = vweird.f32 %v5014_v8 }
0x1293   : > { %vm2343_vm6 = vmor %vm2341_vm1, %vm2342_vm0 }
0x1294   : > { %v2337_v11 = vmul.f32 %v5014_v8, %v2336_v9 }
0x1296   : > { %v2338_v12 = vmul.f32 0.5, %v2337_v11 }
0x1298   : > { %v2339_v13 = vsub.f32 1.5, %v2338_v12  ;;  %v2740_v12 = vperm.slane %v2715_v5, 1 }
0x129a   : > { %v2340_v15 = vmul.f32 %v5014_v8, %v2339_v13 }
0x129c   : > { %v2344_v17 = vsel %vm2343_vm6, %v5014_v8, %v2340_v15  ;;  %v2738_v8 = vperm.slane %v2715_v5, 0  ;;  %v4945_v15 = vld [vmem:[#allocation19] ss:$0 sm:$0xff] }
0x129d   : > { %v2345_v18 = vmul.f32 %v2344_v17, %v2328_v57 }
0x129f   : > { %v2347_v19 = vmul.f32 %v2346_v16, %v2345_v18  ;;  %v4946_v18 = vld [vmem:[#allocation17] ss:$0 sm:$0xff] }
0x12a1   : > { %v2349_v20 = vadd.f32 %v2348_v48, %v2347_v19 }
0x12a3   : > { %v2351_v21 = vsel %vm1401_vm2, %v2349_v20, 0.0 }
0x12a4   : > { %2352 = vadd.xlane.f32.xlu2 %v2351_v21 }
0x12db   : > { %v2711_v23 = vpop.f32.mrf.mxu0 }
0x12dc   : > { %v2712_v24 = vadd.f32 %v4944_v22, %v2711_v23 }
0x12de   : > { %v2714_v25 = vadd.f32 %v2712_v24, %v6334_v10 }
0x12e0   : > { %v2716_v26 = vsel %vm1401_vm2, %v2714_v25, 0.0 }
0x12e1   : > { %2717 = vadd.xlane.f32.xlu1 %v2716_v26 }
0x1317   : > { %v2353_v27 = vpop.xlane.xlu2 %2352 }
0x1318   : > { %v2354_v28 = vmul.f32 %v2353_v27, %v6397_v31 }
0x131a   : > { %v2355_v29 = vsub.f32 %v2349_v20, %v2354_v28 }
0x131c   : > { %v2356_v30 = vmul.f32 %v2355_v29, %v2355_v29 }
0x131e   : > { %v2357_v32 = vsel %vm1401_vm2, %v2356_v30, 0.0 }
0x131f   : > { %2358 = vadd.xlane.f32.xlu0 %v2357_v32 }
0x1354   : > { %v2718_v33 = vpop.xlane.xlu1 %2717 }
0x1355   : > { %v2719_v34 = vmul.f32 %v2718_v33, %v6397_v31 }
0x1357   : > { %v2720_v35 = vsub.f32 %v2714_v25, %v2719_v34 }
0x1359   : > { %v2721_v36 = vmul.f32 %v2720_v35, %v2720_v35 }
0x135b   : > { %v2722_v10 = vsel %vm1401_vm2, %v2721_v36, 0.0 }
0x135c   : > { %2723 = vadd.xlane.f32.xlu2 %v2722_v10 }
0x1392   : > { %v2359_v41 = vpop.xlane.xlu0 %2358 }
0x1393   : > { %v2360_v43 = vmul.f32 %v2359_v41, %v6397_v31 }
0x1395   : > { %v2361_v44 = vadd.f32 1e-05, %v2360_v43 }
0x1397   : > { %5015 = vrsqrt.f32 %v2361_v44  ;;  %vm2368_vm8 = vweird.f32 %v2361_v44 }
0x139d   : > { %v5016_v45 = vpop.eup %5015 }
0x139e   : > { %v2363_v46 = vmul.f32 %v5016_v45, %v2361_v44  ;;  %vm2369_vm7 = vweird.f32 %v5016_v45 }
0x139f   : > { %vm2370_vm9 = vmor %vm2368_vm8, %vm2369_vm7 }
0x13a0   : > { %v2364_v47 = vmul.f32 %v5016_v45, %v2363_v46 }
0x13a2   : > { %v2365_v49 = vmul.f32 0.5, %v2364_v47 }
0x13a4   : > { %v2366_v42 = vsub.f32 1.5, %v2365_v49 }
0x13a6   : > { %v2367_v51 = vmul.f32 %v5016_v45, %v2366_v42 }
0x13a8   : > { %v2371_v53 = vsel %vm2370_vm9, %v5016_v45, %v2367_v51 }
0x13a9   : > { %v2372_v54 = vmul.f32 %v2371_v53, %v2355_v29 }
0x13ab   : > { %v2374_v56 = vmul.f32 %v2373_v52, %v2372_v54 }
0x13ad   : > { %v6606_v57 = vadd.f32 %v2375_v55, %v2374_v56 }
0x13af   : > { %4572 = vmatmul.msk.f32.vlgmr.msrb.gmra.mxu2 %vm1401_vm2, %v6606_v57 }
0x13cf   : > { %v2724_v62 = vpop.xlane.xlu2 %2723 }
0x13d0   : > { %v2725_v63 = vmul.f32 %v2724_v62, %v6397_v31 }
0x13d2   : > { %v2726_v0 = vadd.f32 1e-05, %v2725_v63 }
0x13d4   : > { %5017 = vrsqrt.f32 %v2726_v0  ;;  %vm2733_vm11 = vweird.f32 %v2726_v0 }
0x13da   : > { %v5018_v1 = vpop.eup %5017 }
0x13db   : > { %v2728_v2 = vmul.f32 %v5018_v1, %v2726_v0  ;;  %vm2734_vm10 = vweird.f32 %v5018_v1 }
0x13dc   : > { %vm2735_vm12 = vmor %vm2733_vm11, %vm2734_vm10 }
0x13dd   : > { %v2729_v3 = vmul.f32 %v5018_v1, %v2728_v2 }
0x13df   : > { %v2730_v4 = vmul.f32 0.5, %v2729_v3 }
0x13e1   : > { %v2731_v6 = vsub.f32 1.5, %v2730_v4 }
0x13e3   : > { %v2732_v7 = vmul.f32 %v5018_v1, %v2731_v6 }
0x13e5   : > { %v2736_v9 = vsel %vm2735_vm12, %v5018_v1, %v2732_v7 }
0x13e6   : > { %v2737_v11 = vmul.f32 %v2736_v9, %v2720_v35 }
0x13e8   : > { %v2739_v13 = vmul.f32 %v2738_v8, %v2737_v11 }
0x13ea   : > { %v6615_v14 = vadd.f32 %v2740_v12, %v2739_v13 }
0x13ec   : > { %4571 = vmatmul.msk.f32.vlgmr.msrb.gmra.mxu3 %vm1401_vm2, %v6615_v14 }
0x1432   : > { %v2801_v16 = vpop.f32.mrf.mxu2 }
0x1433   : > { %v6619_v17 = vadd.f32 %v4945_v15, %v2801_v16 }
0x1435   : > { %2870 = vrot.lane.b32.xlu1 %v6619_v17, %s6965_s7  ;;  %4573 = vmatpush.xpose.msk.msrb.mxu1 %vm1428_vm3, %v6619_v17 }
0x1436   : > { %3002 = vrot.lane.b32.xlu2 %v6619_v17, %s6961_s12 }
0x143d   : > { %2936 = vrot.lane.b32.xlu1 %v6619_v17, %s6963_s0 }
0x146f   : > { %v2770_v48 = vpop.f32.mrf.mxu3 }
0x1470   : > { %v2771_v19 = vadd.f32 %v4946_v18, %v2770_v48  ;;  %v3084_v18 = vld [vmem:[%s7054_s4 + $0x18] sm:$0xff]  ;;  %v3083_v48 = vld [vmem:[%s7054_s4 + $0x10] sm:$0xff] }
0x1472   : > { %2934 = vrot.lane.b32.xlu2 %v2771_v19, %s6963_s0  ;;  %2868 = vrot.lane.b32.xlu0 %v2771_v19, %s6965_s7  ;;  %s7051_s0 = smov 88   ;;  %s7052_s7 = smov 80  }
0x1473   : > { %4574 = vmatmul.msk.f32.vlgmr.msrb.gmra.mxu1 %vm1428_vm3, %v2771_v19 }
0x147a   : > { %3000 = vrot.lane.b32.xlu0 %v2771_v19, %s6961_s12  ;;  %s7050_s12 = smov 96   ;;  %v3082_v19 = vld [vmem:[%s7054_s4 + $0x8] sm:$0xff] }
0x1490   : > { %v3003_v21 = vpop.permute.xlu2 %3002 }
0x14a7   : > { %v2871_v20 = vpop.permute.xlu1 %2870 }
0x14a8   : > { %4576 = vmatpush.xpose.msk.msra.mxu3 %vm1428_vm3, %v2871_v20  ;;  %v3081_v20 = vld [vmem:[%s7054_s4] sm:$0xff] }
0x14ac   : > { %4582 = vmatpush.xpose.msk.msrb.mxu3 %vm1428_vm3, %v3003_v21 }
0x14af   : > { %v2937_v22 = vpop.permute.xlu1 %2936 }
0x14b0   : > { %4579 = vmatpush.xpose.msk.msra.mxu1 %vm1428_vm3, %v2937_v22 }
0x14b4   : > { %3104 = vmatpush.msrb.mxu1 %v3084_v18 }
0x14b6   : > { %3105 = vmatpush.msrb.mxu1 %v3083_v48 }
0x14b8   : > { %3106 = vmatpush.msrb.mxu1 %v3082_v19 }
0x14ba   : > { %3107 = vmatpush.msrb.mxu1 %v3081_v20 }
0x14cc   : > { %v2935_v23 = vpop.permute.xlu2 %2934 }
0x14cd   : > { %4580 = vmatmul.msk.f32.vlgmr.msra.gmra.mxu1 %vm1428_vm3, %v2935_v23 }
0x14e4   : > { %v2869_v24 = vpop.permute.xlu0 %2868 }
0x14e5   : > { %4577 = vmatmul.msk.f32.vlgmr.msra.gmra.mxu3 %vm1428_vm3, %v2869_v24 }
0x14ec   : > { %v3001_v25 = vpop.permute.xlu0 %3000 }
0x14ed   : > { %4583 = vmatmul.msk.f32.vlgmr.msrb.gmra.mxu3 %vm1428_vm3, %v3001_v25 }
0x14f0   : > { %v2827_v26 = vpop.f32.mrf.mxu1 }
0x14f1   : > { %v2830_v27 = vmul.f32 0.35355338, %v2827_v26 }
0x14f3   : > { %v2831_v28 = vsel %vm1428_vm3, %v2830_v27, -inf }
0x14f4   : > { %2832 = vmax.xlane.f32.xlu1 %v2831_v28 }
0x154a   : > { %v2959_v35 = vpop.f32.mrf.mxu1 }
0x154b   : > { %v2962_v10 = vmul.f32 0.35355338, %v2959_v35 }
0x154d   : > { %v2963_v40 = vsel %vm1428_vm3, %v2962_v10, -inf }
0x1567   : > { %v2833_v29 = vpop.xlane.xlu1 %2832 }
0x1568   : > { %v2893_v30 = vpop.f32.mrf.mxu3  ;;  %v2834_v33 = vsub.f32 %v2830_v27, %v2833_v29  ;;  %v4947_v27 = vld [vmem:[#allocation20] ss:$0 sm:$0xff] }
0x1569   : > { %v2896_v32 = vmul.f32 0.35355338, %v2893_v30 }
0x156a   : > { %v2835_v36 = vmul.f32 1.442695, %v2834_v33 }
0x156b   : > { %v2897_v34 = vsel %vm1428_vm3, %v2896_v32, -inf }
0x156c   : > { %2898 = vmax.xlane.f32.xlu0 %v2897_v34  ;;  %5019 = vpow2.f32 %v2835_v36 }
0x1570   : > { %v3025_v37 = vpop.f32.mrf.mxu3 }
0x1571   : > { %v3028_v38 = vmul.f32 0.35355338, %v3025_v37  ;;  %v3143_v37 = vld [vmem:[%s7055_s5 + $0x18] sm:$0xff] }
0x1572   : > { %v5020_v41 = vpop.eup %5019 }
0x1573   : > { %v3029_v39 = vsel %vm1428_vm3, %v3028_v38, -inf  ;;  %v2837_v43 = vsel %vm1428_vm3, %v5020_v41, 0.0 }
0x1574   : > { %3030 = vmax.xlane.f32.xlu2 %v3029_v39  ;;  %2964 = vmax.xlane.f32.xlu0 %v2963_v40  ;;  %v3140_v39 = vld [vmem:[%s7055_s5] sm:$0xff]  ;;  %v3187_v40 = vld [vmem:[%s7056_s8 + $0x78] sm:$0xff] }
0x1575   : > { %3192 = vmatpush.msra.mxu3 %v3187_v40 }
0x157c   : > { %2838 = vadd.xlane.f32.xlu2 %v2837_v43  ;;  %v3185_v43 = vld [vmem:[%s7056_s8 + $0x68] sm:$0xff] }
0x1588   : > { %2842 = vrot.lane.b32.xlu0 %v6619_v17, %s7050_s12 }
0x15df   : > { %v2899_v44 = vpop.xlane.xlu0 %2898 }
0x15e0   : > { %v2900_v45 = vsub.f32 %v2896_v32, %v2899_v44 }
0x15e2   : > { %v2901_v46 = vmul.f32 1.442695, %v2900_v45 }
0x15e4   : > { %5021 = vpow2.f32 %v2901_v46  ;;  %v3184_v46 = vld [vmem:[%s7056_s8 + $0x60] sm:$0xff] }
0x15e7   : > { %v3031_v47 = vpop.xlane.xlu2 %3030  ;;  %v2965_v49 = vpop.xlane.xlu0 %2964 }
0x15e8   : > { %v3032_v50 = vsub.f32 %v3028_v38, %v3031_v47  ;;  %v2966_v42 = vsub.f32 %v2962_v10, %v2965_v49  ;;  %v3142_v38 = vld [vmem:[%s7055_s5 + $0x10] sm:$0xff]  ;;  %v3183_v49 = vld [vmem:[%s7056_s8 + $0x58] sm:$0xff] }
0x15ea   : > { %v5022_v51 = vpop.eup %5021  ;;  %v3033_v52 = vmul.f32 1.442695, %v3032_v50  ;;  %v2967_v53 = vmul.f32 1.442695, %v2966_v42  ;;  %v3182_v50 = vld [vmem:[%s7056_s8 + $0x50] sm:$0xff]  ;;  %v3181_v42 = vld [vmem:[%s7056_s8 + $0x48] sm:$0xff] }
0x15eb   : > { %v2903_v54 = vsel %vm1428_vm3, %v5022_v51, 0.0 }
0x15ec   : > { %5023 = vpow2.f32 %v3033_v52  ;;  %2904 = vadd.xlane.f32.xlu1 %v2903_v54 }
0x15ed   : > { %5025 = vpow2.f32 %v2967_v53  ;;  %v3179_v53 = vld [vmem:[%s7056_s8 + $0x38] sm:$0xff] }
0x15ef   : > { %v2839_v55 = vpop.xlane.xlu2 %2838 }
0x15f0   : > { %5027 = vrcp.f32 %v2839_v55  ;;  %v3178_v55 = vld [vmem:[%s7056_s8 + $0x30] sm:$0xff] }
0x15f2   : > { %v5024_v56 = vpop.eup %5023 }
0x15f3   : > { %v5026_v58 = vpop.eup %5025  ;;  %v3035_v59 = vsel %vm1428_vm3, %v5024_v56, 0.0 }
0x15f4   : > { %3036 = vadd.xlane.f32.xlu0 %v3035_v59  ;;  %v2969_v60 = vsel %vm1428_vm3, %v5026_v58, 0.0 }
0x15f5   : > { %2970 = vadd.xlane.f32.xlu2 %v2969_v60  ;;  %v3176_v60 = vld [vmem:[%s7056_s8 + $0x20] sm:$0xff] }
0x15f6   : > { %v5028_v61 = vpop.eup %5027 }
0x15f7   : > { %v2841_v62 = vmul.f32 %v5028_v61, %v5020_v41  ;;  %v3186_v41 = vld [vmem:[%s7056_s8 + $0x70] sm:$0xff]  ;;  %v3113_v61 = vld [vmem:[#allocation22] sm:$0x3] }
0x15f8   : > { %3193 = vmatpush.msra.mxu3 %v3186_v41 }
0x15fa   : > { %v2843_v63 = vpop.permute.xlu0 %2842  ;;  %3194 = vmatpush.msra.mxu3 %v3185_v43 }
0x15fb   : > { %2863 = vmatpush.msra.mxu0 %v2843_v63  ;;  %v3175_v63 = vld [vmem:[%s7056_s8 + $0x18] sm:$0xff] }
0x15fc   : > { %4575 = vmatmul.msk.f32.vlgmr.msra.gmra.mxu0 %vm1428_vm3, %v2841_v62  ;;  %3195 = vmatpush.msra.mxu3 %v3184_v46 }
0x15fe   : > { %3196 = vmatpush.msra.mxu3 %v3183_v49 }
0x1600   : > { %3197 = vmatpush.msra.mxu3 %v3182_v50 }
0x1602   : > { %3198 = vmatpush.msra.mxu3 %v3181_v42 }
0x1605   : > { %2908 = vrot.lane.b32.xlu1 %v6619_v17, %s7051_s0 }
0x1608   : > { %2974 = vrot.lane.b32.xlu0 %v6619_v17, %s7052_s7 }
0x160d   : > { %3040 = vrot.lane.b32.xlu2 %v6619_v17, %s7053_s3 }
0x165f   : > { %v2905_v0 = vpop.xlane.xlu1 %2904 }
0x1660   : > { %5029 = vrcp.f32 %v2905_v0 }
0x1666   : > { %v5030_v3 = vpop.eup %5029 }
0x1667   : > { %v3037_v2 = vpop.xlane.xlu0 %3036  ;;  %v2907_v5 = vmul.f32 %v5030_v3, %v5022_v51  ;;  %v3180_v51 = vld [vmem:[%s7056_s8 + $0x40] sm:$0xff] }
0x1668   : > { %v2971_v1 = vpop.xlane.xlu2 %2970  ;;  %3199 = vmatpush.msra.mxu3 %v3180_v51 }
0x1669   : > { %5031 = vrcp.f32 %v2971_v1  ;;  %v3136_v1 = vperm.slane %v3113_v61, 0 }
0x166a   : > { %5033 = vrcp.f32 %v3037_v2  ;;  %3200 = vmatpush.msra.mxu3 %v3179_v53 }
0x166c   : > { %3201 = vmatpush.msra.mxu3 %v3178_v55 }
0x166f   : > { %v5032_v4 = vpop.eup %5031 }
0x1670   : > { %v3041_v7 = vpop.permute.xlu2 %3040  ;;  %v2973_v8 = vmul.f32 %v5032_v4, %v5026_v58  ;;  %v5034_v11 = vpop.eup %5033  ;;  %v3177_v58 = vld [vmem:[%s7056_s8 + $0x28] sm:$0xff]  ;;  %v3138_v4 = vperm.slane %v3113_v61, 1 }
0x1671   : > { %v3039_v12 = vmul.f32 %v5034_v11, %v5024_v56  ;;  %3202 = vmatpush.msra.mxu3 %v3177_v58  ;;  %v4948_v11 = vld [vmem:[#allocation23] ss:$0 sm:$0xff] }
0x1673   : > { %3203 = vmatpush.msra.mxu3 %v3176_v60 }
0x1675   : > { %3204 = vmatpush.msra.mxu3 %v3175_v63 }
0x1677   : > { %v2909_v6 = vpop.permute.xlu1 %2908 }
0x1678   : > { %2929 = vmatpush.msra.mxu2 %v2909_v6 }
0x1679   : > { %4578 = vmatmul.msk.f32.vlgmr.msra.gmra.mxu2 %vm1428_vm3, %v2907_v5  ;;  %v2865_v13 = vpop.f32.mrf.mxu0 }
0x167a   : > { %3061 = vmatpush.msrb.mxu2 %v3041_v7  ;;  %v2975_v9 = vpop.permute.xlu0 %2974  ;;  %v3174_v7 = vld [vmem:[%s7056_s8 + $0x10] sm:$0xff] }
0x167b   : > { %2995 = vmatpush.msrb.mxu0 %v2975_v9  ;;  %3205 = vmatpush.msra.mxu3 %v3174_v7  ;;  %v3172_v9 = vld [vmem:[%s7056_s8] sm:$0xff] }
0x167c   : > { %4581 = vmatmul.msk.f32.vlgmr.msrb.gmra.mxu0 %vm1428_vm3, %v2973_v8  ;;  %v3173_v8 = vld [vmem:[%s7056_s8 + $0x8] sm:$0xff] }
0x167d   : > { %3163 = vmatpush.msra.mxu0 %v3143_v37  ;;  %3206 = vmatpush.msra.mxu3 %v3173_v8 }
0x167f   : > { %3164 = vmatpush.msra.mxu0 %v3142_v38  ;;  %3207 = vmatpush.msra.mxu3 %v3172_v9 }
0x1681   : > { %4584 = vmatmul.msk.f32.vlgmr.msrb.gmra.mxu2 %vm1428_vm3, %v3039_v12 }
0x16f9   : > { %v2997_v15 = vpop.f32.mrf.mxu0 }
0x16fa   : > { %3071 = vrot.lane.b32.xlu0 %v2997_v15, %s7044_s26 }
0x16fc   : > { %v2931_v16 = vpop.f32.mrf.mxu2 }
0x16fd   : > { %3067 = vrot.lane.b32.xlu1 %v2931_v16, %s7042_s22  ;;  %v4949_v16 = vld [vmem:[#allocation25] ss:$0 sm:$0xff] }
0x1704   : > { %v3063_v17 = vpop.f32.mrf.mxu2 }
0x1705   : > { %3075 = vrot.lane.b32.xlu1 %v3063_v17, %s7043_s2 }
0x176c   : > { %v3072_v23 = vpop.permute.xlu0 %3071 }
0x176f   : > { %v3068_v21 = vpop.permute.xlu1 %3067 }
0x1770   : > { %v3078_v22 = vsel %vm1428_vm3, %v2865_v13, %v3068_v21 }
0x1771   : > { %v3079_v24 = vsel %vm1702_vm4, %v3078_v22, %v3072_v23 }
0x1777   : > { %v3076_v25 = vpop.permute.xlu1 %3075 }
0x1778   : > { %v3080_v26 = vsel %vm1704_vm5, %v3079_v24, %v3076_v25  ;;  %v4590_v25 = vld [vmem:[%s7041_s15 + $0x38] sm:$0xff] }
0x1779   : > { %4585 = vmatmul.msk.f32.vlgmr.msrb.gmra.mxu1 %vm1401_vm2, %v3080_v26  ;;  %3265 = vmatpush.msra.mxu2 %v4590_v25  ;;  %v4589_v26 = vld [vmem:[%s7041_s15 + $0x30] sm:$0xff] }
0x177b   : > { %3266 = vmatpush.msra.mxu2 %v4589_v26 }
0x17f6   : > { %v3109_v28 = vpop.f32.mrf.mxu1 }
0x17f7   : > { %v3110_v29 = vadd.f32 %v4947_v27, %v3109_v28  ;;  %v4588_v27 = vld [vmem:[%s7041_s15 + $0x28] sm:$0xff]  ;;  %v4587_v28 = vld [vmem:[%s7041_s15 + $0x20] sm:$0xff]  ;;  %s7060_s15 = smov 112  }
0x17f8   : > { %3267 = vmatpush.msra.mxu2 %v4588_v27 }
0x17f9   : > { %v3112_v30 = vadd.f32 %v3110_v29, %v6615_v14  ;;  %v3141_v14 = vld [vmem:[%s7055_s5 + $0x8] sm:$0xff] }
0x17fa   : > { %3165 = vmatpush.msra.mxu0 %v3141_v14  ;;  %3268 = vmatpush.msra.mxu2 %v4587_v28 }
0x17fb   : > { %v3114_v32 = vsel %vm1401_vm2, %v3112_v30, 0.0 }
0x17fc   : > { %3115 = vadd.xlane.f32.xlu2 %v3114_v32  ;;  %3166 = vmatpush.msra.mxu0 %v3140_v39 }
0x186f   : > { %v3116_v33 = vpop.xlane.xlu2 %3115 }
0x1870   : > { %v3117_v34 = vmul.f32 %v3116_v33, %v6397_v31 }
0x1872   : > { %v3118_v35 = vsub.f32 %v3112_v30, %v3117_v34 }
0x1874   : > { %v3119_v36 = vmul.f32 %v3118_v35, %v3118_v35 }
0x1876   : > { %v3120_v10 = vsel %vm1401_vm2, %v3119_v36, 0.0 }
0x1877   : > { %3121 = vadd.xlane.f32.xlu0 %v3120_v10  ;;  %v3213_v10 = vld [vmem:[#allocation26] sm:$0x3] }
0x1878   : > { %v3236_v14 = vperm.slane %v3213_v10, 0  ;;  %v3238_v41 = vperm.slane %v3213_v10, 1 }
0x18ea   : > { %v3122_v44 = vpop.xlane.xlu0 %3121 }
0x18eb   : > { %v3123_v45 = vmul.f32 %v3122_v44, %v6397_v31 }
0x18ed   : > { %v3124_v47 = vadd.f32 1e-05, %v3123_v45  ;;  %v4950_v45 = vld [vmem:[#allocation13 + $0x1] ss:$0 sm:$0xff] }
0x18ef   : > { %5035 = vrsqrt.f32 %v3124_v47  ;;  %vm3131_vm14 = vweird.f32 %v3124_v47 }
0x18f5   : > { %v5036_v52 = vpop.eup %5035 }
0x18f6   : > { %v3126_v54 = vmul.f32 %v5036_v52, %v3124_v47  ;;  %vm3132_vm13 = vweird.f32 %v5036_v52 }
0x18f7   : > { %vm3133_vm15 = vmor %vm3131_vm14, %vm3132_vm13 }
0x18f8   : > { %v3127_v56 = vmul.f32 %v5036_v52, %v3126_v54 }
0x18fa   : > { %v3128_v59 = vmul.f32 0.5, %v3127_v56 }
0x18fc   : > { %v3129_v62 = vsub.f32 1.5, %v3128_v59 }
0x18fe   : > { %v3130_v0 = vmul.f32 %v5036_v52, %v3129_v62 }
0x1900   : > { %v3134_v2 = vsel %vm3133_vm15, %v5036_v52, %v3130_v0 }
0x1901   : > { %v3135_v3 = vmul.f32 %v3134_v2, %v3118_v35 }
0x1903   : > { %v3137_v5 = vmul.f32 %v3136_v1, %v3135_v3 }
0x1905   : > { %v3139_v6 = vadd.f32 %v3138_v4, %v3137_v5 }
0x1907   : > { %4586 = vmatmul.msk.f32.vlgmr.msra.gmra.mxu0 %vm1401_vm2, %v3139_v6 }
0x1984   : > { %v3168_v12 = vpop.f32.mrf.mxu0 }
0x1985   : > { %v3169_v13 = vadd.f32 %v4948_v11, %v3168_v12 }
0x1987   : > { %v3171_v15 = vmax.f32 %v3169_v13, 0.0 }
0x1989   : > { %3208 = vmatmul.f32.vlgmr.msra.gmra.mxu3 %v3171_v15 }
0x1a0c   : > { %v3209_v17 = vpop.f32.mrf.mxu3 }
0x1a0d   : > { %v3210_v18 = vadd.f32 %v4949_v16, %v3209_v17 }
0x1a0f   : > { %v3212_v48 = vadd.f32 %v3210_v18, %v3139_v6 }
0x1a11   : > { %v3214_v19 = vsel %vm1401_vm2, %v3212_v48, 0.0 }
0x1a12   : > { %3215 = vadd.xlane.f32.xlu1 %v3214_v19 }
0x1a85   : > { %v3216_v20 = vpop.xlane.xlu1 %3215 }
0x1a86   : > { %v3217_v21 = vmul.f32 %v3216_v20, %v6397_v31 }
0x1a88   : > { %v3218_v22 = vsub.f32 %v3212_v48, %v3217_v21 }
0x1a8a   : > { %v3219_v23 = vmul.f32 %v3218_v22, %v3218_v22 }
0x1a8c   : > { %v3220_v24 = vsel %vm1401_vm2, %v3219_v23, 0.0 }
0x1a8d   : > { %3221 = vadd.xlane.f32.xlu2 %v3220_v24 }
0x1b00   : > { %v3222_v29 = vpop.xlane.xlu2 %3221 }
0x1b01   : > { %v3223_v30 = vmul.f32 %v3222_v29, %v6397_v31 }
0x1b03   : > { %v3224_v32 = vadd.f32 1e-05, %v3223_v30 }
0x1b05   : > { %5037 = vrsqrt.f32 %v3224_v32  ;;  %vm3231_vm1 = vweird.f32 %v3224_v32 }
0x1b0b   : > { %v5038_v33 = vpop.eup %5037 }
0x1b0c   : > { %v3226_v34 = vmul.f32 %v5038_v33, %v3224_v32  ;;  %vm3232_vm0 = vweird.f32 %v5038_v33 }
0x1b0d   : > { %vm3233_vm6 = vmor %vm3231_vm1, %vm3232_vm0  ;;  %vm4176_vm0 = vcmask 24576  }
0x1b0e   : > { %v3227_v35 = vmul.f32 %v5038_v33, %v3226_v34 }
0x1b10   : > { %v3228_v36 = vmul.f32 0.5, %v3227_v35 }
0x1b12   : > { %v3229_v37 = vsub.f32 1.5, %v3228_v36 }
0x1b14   : > { %v3230_v38 = vmul.f32 %v5038_v33, %v3229_v37 }
0x1b16   : > { %v3234_v39 = vsel %vm3233_vm6, %v5038_v33, %v3230_v38 }
0x1b17   : > { %v3235_v40 = vmul.f32 %v3234_v39, %v3218_v22 }
0x1b19   : > { %v3237_v43 = vmul.f32 %v3236_v14, %v3235_v40  ;;  %v4617_v14 = vld [vmem:[%s7048_s1 + $0x38] sm:$0xff]  ;;  %v4616_v40 = vld [vmem:[%s7048_s1 + $0x30] sm:$0xff] }
0x1b1b   : > { %v6704_v44 = vadd.f32 %v3238_v41, %v3237_v43  ;;  %v4615_v41 = vld [vmem:[%s7048_s1 + $0x28] sm:$0xff]  ;;  %v4614_v43 = vld [vmem:[%s7048_s1 + $0x20] sm:$0xff] }
0x1b1d   : > { %4591 = vmatmul.msk.f32.vlgmr.msra.gmra.mxu2 %vm1401_vm2, %v6704_v44 }
0x1ba0   : > { %v3270_v46 = vpop.f32.mrf.mxu2 }
0x1ba1   : > { %v6708_v47 = vadd.f32 %v4950_v45, %v3270_v46 }
0x1ba3   : > { %3338 = vrot.lane.b32.xlu1 %v6708_v47, %s7057_s9  ;;  %3340 = vrot.lane.b32.xlu0 %v6708_v47, %s7051_s0 }
0x1ba4   : > { %3274 = vrot.lane.b32.xlu2 %v6708_v47, %s7050_s12 }
0x1bab   : > { %3406 = vrot.lane.b32.xlu1 %v6708_v47, %s7052_s7 }
0x1bfe   : > { %v3275_v49 = vpop.permute.xlu2 %3274 }
0x1bff   : > { %4592 = vmatpush.xpose.msk.msra.mxu1 %vm1428_vm3, %v3275_v49 }
0x1c02   : > { %4593 = vmatmul.msk.f32.vlgmr.msra.gmra.mxu1 %vm1428_vm3, %v6708_v47 }
0x1c15   : > { %v3341_v50 = vpop.permute.xlu0 %3340  ;;  %v3339_v42 = vpop.permute.xlu1 %3338 }
0x1c16   : > { %4595 = vmatpush.xpose.msk.msrb.mxu2 %vm1428_vm3, %v3341_v50 }
0x1c19   : > { %4596 = vmatmul.msk.f32.vlgmr.msrb.gmra.mxu2 %vm1428_vm3, %v3339_v42  ;;  %v4951_v42 = vld [vmem:[#allocation19 + $0x1] ss:$0 sm:$0xff] }
0x1c1d   : > { %v3407_v4 = vpop.permute.xlu1 %3406 }
0x1c7f   : > { %v3297_v51 = vpop.f32.mrf.mxu1 }
0x1c80   : > { %v3300_v52 = vmul.f32 0.35355338, %v3297_v51 }
0x1c82   : > { %v3301_v53 = vsel %vm1428_vm3, %v3300_v52, -inf }
0x1c83   : > { %3302 = vmax.xlane.f32.xlu0 %v3301_v53  ;;  %v4606_v53 = vld [vmem:[%s7047_s10 + $0x30] sm:$0xff] }
0x1c97   : > { %3378 = vrot.lane.b32.xlu0 %v6708_v47, %s7058_s13 }
0x1c9c   : > { %v3363_v54 = vpop.f32.mrf.mxu2 }
0x1c9d   : > { %v3366_v55 = vmul.f32 0.35355338, %v3363_v54  ;;  %v4605_v54 = vld [vmem:[%s7047_s10 + $0x28] sm:$0xff] }
0x1c9f   : > { %v3367_v56 = vsel %vm1428_vm3, %v3366_v55, -inf }
0x1ca0   : > { %3368 = vmax.xlane.f32.xlu2 %v3367_v56  ;;  %v4612_v56 = vld [vmem:[%s7049_s6 + $0x38] sm:$0xff] }
0x1cb8   : > { %3312 = vrot.lane.b32.xlu2 %v6708_v47, %s7059_s14  ;;  %s7061_s14 = smov 104  }
0x1cc0   : > { %3404 = vrot.lane.b32.xlu2 %v6708_v47, %s7060_s15 }
0x1cf6   : > { %v3303_v58 = vpop.xlane.xlu0 %3302 }
0x1cf7   : > { %v3304_v59 = vsub.f32 %v3300_v52, %v3303_v58  ;;  %v4611_v58 = vld [vmem:[%s7049_s6 + $0x30] sm:$0xff] }
0x1cf9   : > { %v3305_v60 = vmul.f32 1.442695, %v3304_v59  ;;  %v4610_v59 = vld [vmem:[%s7049_s6 + $0x28] sm:$0xff] }
0x1cfb   : > { %5039 = vpow2.f32 %v3305_v60  ;;  %v4609_v60 = vld [vmem:[%s7049_s6 + $0x20] sm:$0xff] }
0x1d01   : > { %v5040_v61 = vpop.eup %5039 }
0x1d02   : > { %v3307_v62 = vsel %vm1428_vm3, %v5040_v61, 0.0 }
0x1d03   : > { %3308 = vadd.xlane.f32.xlu1 %v3307_v62 }
0x1d09   : > { %v3379_v63 = vpop.permute.xlu0 %3378 }
0x1d0a   : > { %3399 = vmatpush.msrb.mxu1 %v3379_v63 }
0x1d13   : > { %v3369_v0 = vpop.xlane.xlu2 %3368 }
0x1d14   : > { %v3370_v1 = vsub.f32 %v3366_v55, %v3369_v0  ;;  %v4604_v55 = vld [vmem:[%s7047_s10 + $0x20] sm:$0xff] }
0x1d16   : > { %v3371_v2 = vmul.f32 1.442695, %v3370_v1 }
0x1d18   : > { %5041 = vpow2.f32 %v3371_v2 }
0x1d1b   : > { %v3313_v3 = vpop.permute.xlu2 %3312 }
0x1d1c   : > { %3470 = vrot.lane.b32.xlu1 %v6708_v47, %s7061_s14  ;;  %3333 = vmatpush.msrb.mxu0 %v3313_v3 }
0x1d1e   : > { %4598 = vmatpush.xpose.msk.msra.mxu0 %vm1428_vm3, %v3407_v4  ;;  %v5042_v5 = vpop.eup %5041 }
0x1d1f   : > { %v3373_v6 = vsel %vm1428_vm3, %v5042_v5, 0.0 }
0x1d20   : > { %3374 = vadd.xlane.f32.xlu0 %v3373_v6 }
0x1d23   : > { %v3405_v11 = vpop.permute.xlu2 %3404 }
0x1d34   : > { %3472 = vrot.lane.b32.xlu0 %v6708_v47, %s7053_s3 }
0x1d76   : > { %v3309_v7 = vpop.xlane.xlu1 %3308 }
0x1d77   : > { %5043 = vrcp.f32 %v3309_v7 }
0x1d7d   : > { %v5044_v8 = vpop.eup %5043 }
0x1d7e   : > { %v3311_v9 = vmul.f32 %v5044_v8, %v5040_v61 }
0x1d80   : > { %4594 = vmatmul.msk.f32.vlgmr.msrb.gmra.mxu0 %vm1428_vm3, %v3311_v9 }
0x1d88   : > { %4599 = vmatmul.msk.f32.vlgmr.msra.gmra.mxu0 %vm1428_vm3, %v3405_v11 }
0x1d8e   : > { %v3471_v17 = vpop.permute.xlu1 %3470 }
0x1d93   : > { %v3375_v12 = vpop.xlane.xlu0 %3374 }
0x1d94   : > { %5045 = vrcp.f32 %v3375_v12 }
0x1d9a   : > { %v5046_v13 = vpop.eup %5045 }
0x1d9b   : > { %v3377_v15 = vmul.f32 %v5046_v13, %v5042_v5  ;;  %v4952_v5 = vld [vmem:[#allocation14 + $0x1] ss:$0 sm:$0xff] }
0x1d9d   : > { %4597 = vmatmul.msk.f32.vlgmr.msrb.gmra.mxu1 %vm1428_vm3, %v3377_v15 }
0x1da6   : > { %v3473_v16 = vpop.permute.xlu0 %3472 }
0x1da7   : > { %4601 = vmatpush.xpose.msk.msra.mxu1 %vm1428_vm3, %v3473_v16 }
0x1daa   : > { %4602 = vmatmul.msk.f32.vlgmr.msra.gmra.mxu1 %vm1428_vm3, %v3471_v17 }
0x1dab   : > { %3638 = vmatpush.msrb.mxu1 %v4612_v56 }
0x1dad   : > { %3639 = vmatpush.msrb.mxu1 %v4611_v58 }
0x1daf   : > { %3640 = vmatpush.msrb.mxu1 %v4610_v59 }
0x1db1   : > { %3641 = vmatpush.msrb.mxu1 %v4609_v60 }
0x1dfd   : > { %v6743_v18 = vpop.f32.mrf.mxu0 }
0x1e05   : > { %v3429_v48 = vpop.f32.mrf.mxu0 }
0x1e06   : > { %v3432_v19 = vmul.f32 0.35355338, %v3429_v48 }
0x1e08   : > { %v3433_v20 = vsel %vm1428_vm3, %v3432_v19, -inf }
0x1e09   : > { %3434 = vmax.xlane.f32.xlu2 %v3433_v20 }
0x1e1a   : > { %v3401_v21 = vpop.f32.mrf.mxu1 }
0x1e27   : > { %v3495_v22 = vpop.f32.mrf.mxu1 }
0x1e28   : > { %v3498_v23 = vmul.f32 0.35355338, %v3495_v22  ;;  %v3586_v22 = vld [vmem:[#allocation16 + $0x2] sm:$0x3] }
0x1e2a   : > { %v3499_v24 = vsel %vm1428_vm3, %v3498_v23, -inf }
0x1e2b   : > { %3500 = vmax.xlane.f32.xlu0 %v3499_v24 }
0x1e3f   : > { %3444 = vrot.lane.b32.xlu0 %v6708_v47, %s7046_s11 }
0x1e7c   : > { %v3435_v25 = vpop.xlane.xlu2 %3434 }
0x1e7d   : > { %v3436_v26 = vsub.f32 %v3432_v19, %v3435_v25  ;;  %v3609_v25 = vperm.slane %v3586_v22, 0 }
0x1e7f   : > { %v3437_v27 = vmul.f32 1.442695, %v3436_v26 }
0x1e81   : > { %5047 = vpow2.f32 %v3437_v27 }
0x1e87   : > { %v5048_v28 = vpop.eup %5047 }
0x1e88   : > { %v3439_v29 = vsel %vm1428_vm3, %v5048_v28, 0.0 }
0x1e89   : > { %3440 = vadd.xlane.f32.xlu1 %v3439_v29 }
0x1e9e   : > { %v3501_v30 = vpop.xlane.xlu0 %3500 }
0x1e9f   : > { %v3502_v32 = vsub.f32 %v3498_v23, %v3501_v30 }
0x1ea1   : > { %v3503_v33 = vmul.f32 1.442695, %v3502_v32  ;;  %v4953_v32 = vld [vmem:[#allocation17 + $0x1] ss:$0 sm:$0xff] }
0x1ea2   : > { %3510 = vrot.lane.b32.xlu1 %v6708_v47, %s7045_s23 }
0x1ea3   : > { %5049 = vpow2.f32 %v3503_v33 }
0x1ea9   : > { %v5050_v34 = vpop.eup %5049 }
0x1eaa   : > { %v3505_v35 = vsel %vm1428_vm3, %v5050_v34, 0.0 }
0x1eab   : > { %3506 = vadd.xlane.f32.xlu2 %v3505_v35 }
0x1eb1   : > { %v3445_v36 = vpop.permute.xlu0 %3444 }
0x1eb2   : > { %3465 = vmatpush.msra.mxu2 %v3445_v36 }
0x1ec3   : > { %3537 = vrot.lane.b32.xlu2 %v3401_v21, %s7042_s22 }
0x1efc   : > { %v3441_v10 = vpop.xlane.xlu1 %3440 }
0x1efd   : > { %5051 = vrcp.f32 %v3441_v10 }
0x1f03   : > { %v5052_v37 = vpop.eup %5051 }
0x1f04   : > { %v3443_v38 = vmul.f32 %v5052_v37, %v5048_v28  ;;  %v3611_v28 = vperm.slane %v3586_v22, 1 }
0x1f06   : > { %4600 = vmatmul.msk.f32.vlgmr.msra.gmra.mxu2 %vm1428_vm3, %v3443_v38 }
0x1f14   : > { %v3511_v39 = vpop.permute.xlu1 %3510 }
0x1f15   : > { %3531 = vmatpush.msrb.mxu0 %v3511_v39 }
0x1f17   : > { %3668 = vmatpush.msra.mxu0 %v4617_v14 }
0x1f19   : > { %3669 = vmatpush.msra.mxu0 %v4616_v40 }
0x1f1b   : > { %3670 = vmatpush.msra.mxu0 %v4615_v41 }
0x1f1d   : > { %3671 = vmatpush.msra.mxu0 %v4614_v43 }
0x1f1e   : > { %v3507_v45 = vpop.xlane.xlu2 %3506 }
0x1f1f   : > { %5053 = vrcp.f32 %v3507_v45 }
0x1f25   : > { %v5054_v46 = vpop.eup %5053 }
0x1f26   : > { %v3509_v47 = vmul.f32 %v5054_v46, %v5050_v34  ;;  %v3538_v61 = vpop.permute.xlu2 %3537 }
0x1f27   : > { %v3548_v63 = vsel %vm1428_vm3, %v6743_v18, %v3538_v61 }
0x1f28   : > { %4603 = vmatmul.msk.f32.vlgmr.msrb.gmra.mxu0 %vm1428_vm3, %v3509_v47 }
0x1f30   : > { %4618 = vmatmul.msk.f32.vlgmr.msra.gmra.mxu0 %vm1401_vm2, %v6606_v57  ;;  %v4607_v57 = vld [vmem:[%s7047_s10 + $0x38] sm:$0xff] }
0x1f31   : > { %3576 = vmatpush.msrb.mxu2 %v4607_v57 }
0x1f33   : > { %3577 = vmatpush.msrb.mxu2 %v4606_v53 }
0x1f35   : > { %3578 = vmatpush.msrb.mxu2 %v4605_v54 }
0x1f37   : > { %3579 = vmatpush.msrb.mxu2 %v4604_v55 }
0x1f89   : > { %v3467_v49 = vpop.f32.mrf.mxu2 }
0x1f8a   : > { %3541 = vrot.lane.b32.xlu0 %v3467_v49, %s7044_s26 }
0x1fa5   : > { %v3533_v50 = vpop.f32.mrf.mxu0 }
0x1fa6   : > { %3545 = vrot.lane.b32.xlu1 %v3533_v50, %s7043_s2 }
0x1fad   : > { %v3673_v51 = vpop.f32.mrf.mxu0 }
0x1fae   : > { %v6764_v52 = vadd.f32 %v4951_v42, %v3673_v51 }
0x1fb0   : > { %3808 = vrot.lane.b32.xlu1 %v6764_v52, %s7060_s15  ;;  %4619 = vmatpush.xpose.msk.msrb.mxu3 %vm1428_vm3, %v6764_v52 }
0x1fb8   : > { %3742 = vrot.lane.b32.xlu1 %v6764_v52, %s7057_s9 }
0x1ffc   : > { %v3542_v62 = vpop.permute.xlu0 %3541 }
0x1ffd   : > { %v3549_v0 = vsel %vm1702_vm4, %v3548_v63, %v3542_v62 }
0x2018   : > { %v3546_v1 = vpop.permute.xlu1 %3545 }
0x2019   : > { %v3550_v2 = vsel %vm1704_vm5, %v3549_v0, %v3546_v1 }
0x201a   : > { %4608 = vmatmul.msk.f32.vlgmr.msrb.gmra.mxu2 %vm1401_vm2, %v3550_v2 }
0x2022   : > { %v3809_v3 = vpop.permute.xlu1 %3808 }
0x2023   : > { %4625 = vmatpush.xpose.msk.msra.mxu3 %vm1428_vm3, %v3809_v3 }
0x202a   : > { %v3743_v4 = vpop.permute.xlu1 %3742 }
0x202b   : > { %4622 = vmatpush.xpose.msk.msra.mxu1 %vm1428_vm3, %v3743_v4 }
0x209d   : > { %v3581_v6 = vpop.f32.mrf.mxu2 }
0x209e   : > { %v3582_v7 = vadd.f32 %v4952_v5, %v3581_v6 }
0x20a0   : > { %v3584_v8 = vadd.f32 %v3582_v7, %v6704_v44 }
0x20a2   : > { %v3587_v9 = vsel %vm1401_vm2, %v3584_v8, 0.0 }
0x20a3   : > { %3588 = vadd.xlane.f32.xlu0 %v3587_v9 }
0x2116   : > { %v3589_v11 = vpop.xlane.xlu0 %3588 }
0x2117   : > { %v3590_v12 = vmul.f32 %v3589_v11, %v6397_v31 }
0x2119   : > { %v3591_v13 = vsub.f32 %v3584_v8, %v3590_v12 }
0x211b   : > { %v3592_v15 = vmul.f32 %v3591_v13, %v3591_v13 }
0x211d   : > { %v3593_v16 = vsel %vm1401_vm2, %v3592_v15, 0.0 }
0x211e   : > { %3594 = vadd.xlane.f32.xlu2 %v3593_v16 }
0x2191   : > { %v3595_v17 = vpop.xlane.xlu2 %3594 }
0x2192   : > { %v3596_v18 = vmul.f32 %v3595_v17, %v6397_v31 }
0x2194   : > { %v3597_v48 = vadd.f32 1e-05, %v3596_v18 }
0x2196   : > { %5055 = vrsqrt.f32 %v3597_v48  ;;  %vm3604_vm8 = vweird.f32 %v3597_v48 }
0x219c   : > { %v5056_v19 = vpop.eup %5055 }
0x219d   : > { %v3599_v20 = vmul.f32 %v5056_v19, %v3597_v48  ;;  %vm3605_vm7 = vweird.f32 %v5056_v19 }
0x219e   : > { %vm3606_vm9 = vmor %vm3604_vm8, %vm3605_vm7 }
0x219f   : > { %v3600_v21 = vmul.f32 %v5056_v19, %v3599_v20 }
0x21a1   : > { %v3601_v44 = vmul.f32 0.5, %v3600_v21 }
0x21a3   : > { %v3602_v23 = vsub.f32 1.5, %v3601_v44 }
0x21a5   : > { %v3603_v24 = vmul.f32 %v5056_v19, %v3602_v23 }
0x21a7   : > { %v3607_v26 = vsel %vm3606_vm9, %v5056_v19, %v3603_v24 }
0x21a8   : > { %v3608_v27 = vmul.f32 %v3607_v26, %v3591_v13 }
0x21aa   : > { %v3610_v29 = vmul.f32 %v3609_v25, %v3608_v27  ;;  %v4634_v27 = vld [vmem:[%s7054_s4 + $0x38] sm:$0xff] }
0x21ac   : > { %v6792_v30 = vadd.f32 %v3611_v28, %v3610_v29  ;;  %v4633_v28 = vld [vmem:[%s7054_s4 + $0x30] sm:$0xff]  ;;  %v4632_v29 = vld [vmem:[%s7054_s4 + $0x28] sm:$0xff] }
0x21ae   : > { %4613 = vmatmul.msk.f32.vlgmr.msrb.gmra.mxu1 %vm1401_vm2, %v6792_v30 }
0x222b   : > { %v3643_v33 = vpop.f32.mrf.mxu1 }
0x222c   : > { %v3644_v34 = vadd.f32 %v4953_v32, %v3643_v33  ;;  %v4631_v32 = vld [vmem:[%s7054_s4 + $0x20] sm:$0xff] }
0x222e   : > { %3872 = vrot.lane.b32.xlu0 %v3644_v34, %s7061_s14  ;;  %3806 = vrot.lane.b32.xlu1 %v3644_v34, %s7060_s15 }
0x222f   : > { %4620 = vmatmul.msk.f32.vlgmr.msrb.gmra.mxu3 %vm1428_vm3, %v3644_v34 }
0x2230   : > { %3978 = vmatpush.msrb.mxu3 %v4634_v27 }
0x2232   : > { %3979 = vmatpush.msrb.mxu3 %v4633_v28 }
0x2234   : > { %3980 = vmatpush.msrb.mxu3 %v4632_v29 }
0x2236   : > { %3740 = vrot.lane.b32.xlu1 %v3644_v34, %s7057_s9  ;;  %3981 = vmatpush.msrb.mxu3 %v4631_v32  ;;  %s7062_s9 = sld [smem:[#allocation72_spill]] }
0x223e   : > { %3874 = vrot.lane.b32.xlu1 %v6764_v52, %s7061_s14 }
0x22a0   : > { %v3807_v35 = vpop.permute.xlu1 %3806  ;;  %v3873_v38 = vpop.permute.xlu0 %3872 }
0x22a1   : > { %4626 = vmatmul.msk.f32.vlgmr.msra.gmra.mxu3 %vm1428_vm3, %v3807_v35 }
0x22a8   : > { %v3741_v36 = vpop.permute.xlu1 %3740 }
0x22a9   : > { %4623 = vmatmul.msk.f32.vlgmr.msra.gmra.mxu1 %vm1428_vm3, %v3741_v36 }
0x22b0   : > { %v3875_v10 = vpop.permute.xlu1 %3874 }
0x22b1   : > { %4628 = vmatpush.xpose.msk.msrb.mxu1 %vm1428_vm3, %v3875_v10 }
0x22b2   : > { %v3699_v37 = vpop.f32.mrf.mxu3 }
0x22b3   : > { %v3702_v14 = vmul.f32 0.35355338, %v3699_v37 }
0x22b4   : > { %4629 = vmatmul.msk.f32.vlgmr.msrb.gmra.mxu1 %vm1428_vm3, %v3873_v38  ;;  %v4954_v38 = vld [vmem:[#allocation20 + $0x1] ss:$0 sm:$0xff] }
0x22b5   : > { %v3703_v39 = vsel %vm1428_vm3, %v3702_v14, -inf }
0x22b6   : > { %3704 = vmax.xlane.f32.xlu2 %v3703_v39 }
0x2324   : > { %v3831_v40 = vpop.f32.mrf.mxu3 }
0x2325   : > { %v3834_v41 = vmul.f32 0.35355338, %v3831_v40 }
0x2326   : > { %v3765_v43 = vpop.f32.mrf.mxu1 }
0x2327   : > { %v3768_v45 = vmul.f32 0.35355338, %v3765_v43  ;;  %v3835_v46 = vsel %vm1428_vm3, %v3834_v41, -inf }
0x2328   : > { %3836 = vmax.xlane.f32.xlu2 %v3835_v46 }
0x2329   : > { %v3705_v47 = vpop.xlane.xlu2 %3704  ;;  %v3769_v49 = vsel %vm1428_vm3, %v3768_v45, -inf }
0x232a   : > { %v3706_v50 = vsub.f32 %v3702_v14, %v3705_v47  ;;  %3770 = vmax.xlane.f32.xlu1 %v3769_v49 }
0x232c   : > { %v3707_v42 = vmul.f32 1.442695, %v3706_v50  ;;  %v4639_v50 = vld [vmem:[%s7055_s5 + $0x38] sm:$0xff] }
0x232e   : > { %5057 = vpow2.f32 %v3707_v42  ;;  %v4638_v42 = vld [vmem:[%s7055_s5 + $0x30] sm:$0xff] }
0x2331   : > { %v3897_v51 = vpop.f32.mrf.mxu1 }
0x2332   : > { %v3900_v57 = vmul.f32 0.35355338, %v3897_v51  ;;  %v4636_v51 = vld [vmem:[%s7055_s5 + $0x20] sm:$0xff] }
0x2334   : > { %v5058_v53 = vpop.eup %5057  ;;  %v3901_v54 = vsel %vm1428_vm3, %v3900_v57, -inf }
0x2335   : > { %3902 = vmax.xlane.f32.xlu2 %v3901_v54  ;;  %v3709_v55 = vsel %vm1428_vm3, %v5058_v53, 0.0  ;;  %v4654_v54 = vld [vmem:[%s7056_s8 + $0xe8] sm:$0xff] }
0x2336   : > { %3710 = vadd.xlane.f32.xlu0 %v3709_v55 }
0x234a   : > { %3846 = vrot.lane.b32.xlu0 %v6764_v52, %s7052_s7  ;;  %s7063_s7 = sld [smem:[#allocation70_spill]] }
0x234d   : > { %3714 = vrot.lane.b32.xlu2 %v6764_v52, %s7050_s12 }
0x239b   : > { %v3837_v56 = vpop.xlane.xlu2 %3836 }
0x239c   : > { %v3838_v60 = vsub.f32 %v3834_v41, %v3837_v56 }
0x239d   : > { %v3771_v58 = vpop.xlane.xlu1 %3770 }
0x239e   : > { %v3772_v59 = vsub.f32 %v3768_v45, %v3771_v58  ;;  %v3839_v62 = vmul.f32 1.442695, %v3838_v60  ;;  %v4653_v58 = vld [vmem:[%s7056_s8 + $0xe0] sm:$0xff]  ;;  %v4652_v60 = vld [vmem:[%s7056_s8 + $0xd8] sm:$0xff] }
0x23a0   : > { %v3773_v61 = vmul.f32 1.442695, %v3772_v59 }
0x23a2   : > { %5059 = vpow2.f32 %v3773_v61  ;;  %v4651_v61 = vld [vmem:[%s7056_s8 + $0xd0] sm:$0xff] }
0x23a3   : > { %5061 = vpow2.f32 %v3839_v62  ;;  %v4650_v62 = vld [vmem:[%s7056_s8 + $0xc8] sm:$0xff] }
0x23a8   : > { %v5060_v63 = vpop.eup %5059  ;;  %v3903_v0 = vpop.xlane.xlu2 %3902 }
0x23a9   : > { %v3711_v1 = vpop.xlane.xlu0 %3710  ;;  %v3904_v2 = vsub.f32 %v3900_v57, %v3903_v0  ;;  %v3775_v3 = vsel %vm1428_vm3, %v5060_v63, 0.0  ;;  %v5062_v5 = vpop.eup %5061  ;;  %v4656_v57 = vld [vmem:[%s7056_s8 + $0xf8] sm:$0xff] }
0x23aa   : > { %5063 = vrcp.f32 %v3711_v1  ;;  %3776 = vadd.xlane.f32.xlu2 %v3775_v3  ;;  %v3841_v9 = vsel %vm1428_vm3, %v5062_v5, 0.0  ;;  %4071 = vmatpush.msra.mxu1 %v4656_v57  ;;  %v4648_v1 = vld [vmem:[%s7056_s8 + $0xb8] sm:$0xff]  ;;  %v4647_v3 = vld [vmem:[%s7056_s8 + $0xb0] sm:$0xff] }
0x23ab   : > { %v3905_v4 = vmul.f32 1.442695, %v3904_v2 }
0x23ad   : > { %5065 = vpow2.f32 %v3905_v4 }
0x23b0   : > { %v5064_v6 = vpop.eup %5063  ;;  %v3715_v7 = vpop.permute.xlu2 %3714 }
0x23b1   : > { %v3713_v8 = vmul.f32 %v5064_v6, %v5058_v53  ;;  %3735 = vmatpush.msra.mxu2 %v3715_v7  ;;  %v4655_v53 = vld [vmem:[%s7056_s8 + $0xf0] sm:$0xff]  ;;  %v4645_v7 = vld [vmem:[%s7056_s8 + $0xa0] sm:$0xff] }
0x23b2   : > { %3842 = vadd.xlane.f32.xlu2 %v3841_v9  ;;  %4072 = vmatpush.msra.mxu1 %v4655_v53 }
0x23b3   : > { %v5066_v11 = vpop.eup %5065  ;;  %4621 = vmatmul.msk.f32.vlgmr.msra.gmra.mxu2 %vm1428_vm3, %v3713_v8  ;;  %v3988_v8 = vld [vmem:[#allocation22 + $0x2] sm:$0x3] }
0x23b4   : > { %v3907_v12 = vsel %vm1428_vm3, %v5066_v11, 0.0  ;;  %4073 = vmatpush.msra.mxu1 %v4654_v54 }
0x23b5   : > { %3908 = vadd.xlane.f32.xlu1 %v3907_v12 }
0x23b6   : > { %4074 = vmatpush.msra.mxu1 %v4653_v58  ;;  %v4150_v58 = vld [vmem:[%s5968_s21 + $0x18] sm:$0xff] }
0x23b8   : > { %4075 = vmatpush.msra.mxu1 %v4652_v60  ;;  %v4148_v60 = vld [vmem:[%s5968_s21 + $0x8] sm:$0xff] }
0x23ba   : > { %4076 = vmatpush.msra.mxu1 %v4651_v61  ;;  %v4147_v61 = vld [vmem:[%s5968_s21] sm:$0xff] }
0x23bc   : > { %v3847_v13 = vpop.permute.xlu0 %3846  ;;  %4077 = vmatpush.msra.mxu1 %v4650_v62 }
0x23bd   : > { %3867 = vmatpush.msrb.mxu2 %v3847_v13  ;;  %v4011_v13 = vperm.slane %v3988_v8, 0 }
0x23bf   : > { %4040 = vmatpush.msra.mxu2 %v4639_v50 }
0x23c1   : > { %4041 = vmatpush.msra.mxu2 %v4638_v42 }
0x23ca   : > { %3912 = vrot.lane.b32.xlu2 %v6764_v52, %s7053_s3 }
0x23ce   : > { %3780 = vrot.lane.b32.xlu1 %v6764_v52, %s7051_s0  ;;  %s1351_s0 = sand.u32 1, %s7062_s9  }
0x23cf   : > { %s1352_s23 = scalar_lea.vmem [#allocation31], %s1351_s0 }
0x241d   : > { %v3777_v15 = vpop.xlane.xlu2 %3776 }
0x2425   : > { %v3843_v16 = vpop.xlane.xlu2 %3842 }
0x2426   : > { %5067 = vrcp.f32 %v3843_v16 }
0x2427   : > { %5069 = vrcp.f32 %v3777_v15 }
0x2428   : > { %v3909_v48 = vpop.xlane.xlu1 %3908 }
0x2429   : > { %5071 = vrcp.f32 %v3909_v48 }
0x242c   : > { %v5068_v17 = vpop.eup %5067 }
0x242d   : > { %v3845_v18 = vmul.f32 %v5068_v17, %v5062_v5  ;;  %v5070_v19 = vpop.eup %5069  ;;  %v3913_v44 = vpop.permute.xlu2 %3912  ;;  %v4646_v5 = vld [vmem:[%s7056_s8 + $0xa8] sm:$0xff]  ;;  %v4013_v17 = vperm.slane %v3988_v8, 1 }
0x242e   : > { %v3779_v20 = vmul.f32 %v5070_v19, %v5060_v63  ;;  %v4649_v63 = vld [vmem:[%s7056_s8 + $0xc0] sm:$0xff]  ;;  %v4643_v19 = vld [vmem:[%s7056_s8 + $0x90] sm:$0xff] }
0x242f   : > { %4627 = vmatmul.msk.f32.vlgmr.msrb.gmra.mxu2 %vm1428_vm3, %v3845_v18  ;;  %v5072_v52 = vpop.eup %5071  ;;  %4078 = vmatpush.msra.mxu1 %v4649_v63 }
0x2430   : > { %v3911_v22 = vmul.f32 %v5072_v52, %v5066_v11  ;;  %v4644_v11 = vld [vmem:[%s7056_s8 + $0x98] sm:$0xff] }
0x2431   : > { %4079 = vmatpush.msra.mxu1 %v4648_v1 }
0x2433   : > { %4080 = vmatpush.msra.mxu1 %v4647_v3 }
0x2435   : > { %4081 = vmatpush.msra.mxu1 %v4646_v5  ;;  %v4120_v5 = vld [vmem:[#allocation28] sm:$0x3] }
0x2436   : > { %v3737_v23 = vpop.f32.mrf.mxu2  ;;  %v4143_v8 = vperm.slane %v4120_v5, 0 }
0x2437   : > { %4082 = vmatpush.msra.mxu1 %v4645_v7 }
0x2439   : > { %4083 = vmatpush.msra.mxu1 %v4644_v11 }
0x243b   : > { %4084 = vmatpush.msra.mxu1 %v4643_v19 }
0x2440   : > { %v3781_v21 = vpop.permute.xlu1 %3780 }
0x2441   : > { %3801 = vmatpush.msrb.mxu0 %v3781_v21  ;;  %v4641_v21 = vld [vmem:[%s7056_s8 + $0x80] sm:$0xff] }
0x2442   : > { %4624 = vmatmul.msk.f32.vlgmr.msrb.gmra.mxu0 %vm1428_vm3, %v3779_v20  ;;  %v4642_v20 = vld [vmem:[%s7056_s8 + $0x88] sm:$0xff] }
0x2443   : > { %3933 = vmatpush.msra.mxu0 %v3913_v44  ;;  %4085 = vmatpush.msra.mxu1 %v4642_v20  ;;  %v4955_v44 = vld [vmem:[#allocation23 + $0x1] ss:$0 sm:$0xff] }
0x2445   : > { %4086 = vmatpush.msra.mxu1 %v4641_v21  ;;  %4168 = vmatpush.msrb.mxu0 %v4150_v58 }
0x244a   : > { %4630 = vmatmul.msk.f32.vlgmr.msra.gmra.mxu0 %vm1428_vm3, %v3911_v22 }
0x24b2   : > { %v3869_v24 = vpop.f32.mrf.mxu2 }
0x24b3   : > { %3943 = vrot.lane.b32.xlu1 %v3869_v24, %s7044_s26  ;;  %v4956_v24 = vld [vmem:[#allocation25 + $0x1] ss:$0 sm:$0xff]  ;;  %s4179_s26 = scalar_lea.sflag [#allocation4], %s1351_s0 }
0x24bf   : > { %v3803_v25 = vpop.f32.mrf.mxu0 }
0x24c0   : > { %3939 = vrot.lane.b32.xlu2 %v3803_v25, %s7042_s22  ;;  %s4189_s22 = sshll.u32 %s1352_s23, 4  ;;  %s4190_s22 = int_to_ptr.vmem [resolvable:$true] %s4189_s22 }
0x24c7   : > { %v3935_v26 = vpop.f32.mrf.mxu0 }
0x24c8   : > { %3947 = vrot.lane.b32.xlu2 %v3935_v26, %s7043_s2  ;;  %s4187_s2 = scalar_lea.hbm %s7063_s7, %s6001_s28  ;;  %s5639_s28 = scalar_lea.hbm %s7063_s7, 2 }
0x24c9   : > { %s4191_s11 = sshll.u32 %s4187_s2, 4  ;;  %s4192_s11 = int_to_ptr.hbm [resolvable:$true] %s4191_s11 }
0x24ca   : > { %s5633_s15 = sshra.s32 %s4192_s11, 4  ;;  %s5634_s15 = int_to_ptr.hbm [resolvable:$true] %s5633_s15 }
0x24cb   : > { %s5635_s13 = scalar_lea.hbm %s5634_s15, 1  ;;  %p5640_p8 = scmp.lt.s32.totalorder %s5634_s15, %s7063_s7 }
0x24cc   : > { %p5636_p9 = scmp.ne.s32.totalorder %s5634_s15, %s5635_s13  ;;  %p5641_p11 = scmp.lt.s32.totalorder %s5639_s28, %s5635_s13 }
0x24ce   : > { %p5637_p12 = pnand %p5636_p9, %p6018_p5  ;;  %p5642_p13 = por %p5641_p11, %p5640_p8 }
0x24d0   : > { %p5638_p0 = pneg %p5637_p12 }
0x24d2   : > { %p5643_p1 = pnand %p5642_p13, %p5638_p0 }
0x251a   : > { %v3940_v33 = vpop.permute.xlu2 %3939 }
0x251b   : > { %v3950_v34 = vsel %vm1428_vm3, %v3737_v23, %v3940_v33 }
0x2522   : > { %v3948_v36 = vpop.permute.xlu2 %3947 }
0x2525   : > { %v3944_v35 = vpop.permute.xlu1 %3943 }
0x2526   : > { %v3951_v10 = vsel %vm1702_vm4, %v3950_v34, %v3944_v35 }
0x2527   : > { %v3952_v37 = vsel %vm1704_vm5, %v3951_v10, %v3948_v36 }
0x2528   : > { %4635 = vmatmul.msk.f32.vlgmr.msrb.gmra.mxu3 %vm1401_vm2, %v3952_v37 }
0x25ab   : > { %v3983_v14 = vpop.f32.mrf.mxu3 }
0x25ac   : > { %v3984_v39 = vadd.f32 %v4954_v38, %v3983_v14 }
0x25ae   : > { %v3986_v40 = vadd.f32 %v3984_v39, %v6792_v30  ;;  %v4637_v30 = vld [vmem:[%s7055_s5 + $0x28] sm:$0xff] }
0x25af   : > { %4042 = vmatpush.msra.mxu2 %v4637_v30 }
0x25b0   : > { %v3989_v41 = vsel %vm1401_vm2, %v3986_v40, 0.0 }
0x25b1   : > { %3990 = vadd.xlane.f32.xlu0 %v3989_v41  ;;  %4043 = vmatpush.msra.mxu2 %v4636_v51 }
0x2624   : > { %v3991_v43 = vpop.xlane.xlu0 %3990 }
0x2625   : > { %v3992_v45 = vmul.f32 %v3991_v43, %v6397_v31  ;;  %v4093_v43 = vld [vmem:[#allocation26 + $0x2] sm:$0x3] }
0x2626   : > { %v4118_v50 = vperm.slane %v4093_v43, 1 }
0x2627   : > { %v3993_v46 = vsub.f32 %v3986_v40, %v3992_v45 }
0x2629   : > { %v3994_v47 = vmul.f32 %v3993_v46, %v3993_v46 }
0x262b   : > { %v3995_v49 = vsel %vm1401_vm2, %v3994_v47, 0.0 }
0x262c   : > { %3996 = vadd.xlane.f32.xlu1 %v3995_v49 }
0x269f   : > { %v3997_v55 = vpop.xlane.xlu1 %3996 }
0x26a0   : > { %v3998_v56 = vmul.f32 %v3997_v55, %v6397_v31 }
0x26a2   : > { %v3999_v59 = vadd.f32 1e-05, %v3998_v56 }
0x26a4   : > { %5073 = vrsqrt.f32 %v3999_v59  ;;  %vm4006_vm4 = vweird.f32 %v3999_v59 }
0x26aa   : > { %v5074_v0 = vpop.eup %5073 }
0x26ab   : > { %v4001_v2 = vmul.f32 %v5074_v0, %v3999_v59  ;;  %vm4007_vm3 = vweird.f32 %v5074_v0  ;;  %v4149_v59 = vld [vmem:[%s5968_s21 + $0x10] sm:$0xff] }
0x26ac   : > { %vm4008_vm5 = vmor %vm4006_vm4, %vm4007_vm3  ;;  %4169 = vmatpush.msrb.mxu0 %v4149_v59 }
0x26ad   : > { %v4002_v4 = vmul.f32 %v5074_v0, %v4001_v2 }
0x26ae   : > { %4170 = vmatpush.msrb.mxu0 %v4148_v60 }
0x26af   : > { %v4003_v6 = vmul.f32 0.5, %v4002_v4 }
0x26b0   : > { %4171 = vmatpush.msrb.mxu0 %v4147_v61 }
0x26b1   : > { %v4004_v9 = vsub.f32 1.5, %v4003_v6 }
0x26b3   : > { %v4005_v12 = vmul.f32 %v5074_v0, %v4004_v9 }
0x26b5   : > { %v4009_v15 = vsel %vm4008_vm5, %v5074_v0, %v4005_v12  ;;  %v4145_v12 = vperm.slane %v4120_v5, 1 }
0x26b6   : > { %v4010_v16 = vmul.f32 %v4009_v15, %v3993_v46  ;;  %v4116_v46 = vperm.slane %v4093_v43, 0 }
0x26b8   : > { %v4012_v18 = vmul.f32 %v4011_v13, %v4010_v16  ;;  %v4151_v16 = vld [vmem:[#allocation29] sm:$0x1] }
0x26ba   : > { %v4014_v48 = vadd.f32 %v4013_v17, %v4012_v18 }
0x26bc   : > { %4640 = vmatmul.msk.f32.vlgmr.msra.gmra.mxu2 %vm1401_vm2, %v4014_v48 }
0x273f   : > { %v4045_v52 = vpop.f32.mrf.mxu2 }
0x2740   : > { %v4046_v22 = vadd.f32 %v4955_v44, %v4045_v52 }
0x2742   : > { %v4048_v23 = vmax.f32 %v4046_v22, 0.0 }
0x2744   : > { %4087 = vmatmul.f32.vlgmr.msra.gmra.mxu1 %v4048_v23 }
0x27c1   : > { %v4088_v25 = vpop.f32.mrf.mxu1 }
0x27c2   : > { %v4089_v26 = vadd.f32 %v4956_v24, %v4088_v25 }
0x27c4   : > { %v4091_v27 = vadd.f32 %v4089_v26, %v4014_v48 }
0x27c6   : > { %v4094_v28 = vsel %vm1401_vm2, %v4091_v27, 0.0 }
0x27c7   : > { %4095 = vadd.xlane.f32.xlu2 %v4094_v28 }
0x283a   : > { %v4096_v29 = vpop.xlane.xlu2 %4095 }
0x283b   : > { %v4097_v32 = vmul.f32 %v4096_v29, %v6397_v31 }
0x283d   : > { %v4098_v33 = vsub.f32 %v4091_v27, %v4097_v32 }
0x283f   : > { %v4099_v34 = vmul.f32 %v4098_v33, %v4098_v33 }
0x2841   : > { %v4100_v35 = vsel %vm1401_vm2, %v4099_v34, 0.0 }
0x2842   : > { %4101 = vadd.xlane.f32.xlu0 %v4100_v35 }
0x28b5   : > { %v4102_v36 = vpop.xlane.xlu0 %4101 }
0x28b6   : > { %v4103_v10 = vmul.f32 %v4102_v36, %v6397_v31 }
0x28b8   : > { %v4104_v37 = vadd.f32 1e-05, %v4103_v10 }
0x28ba   : > { %5075 = vrsqrt.f32 %v4104_v37  ;;  %vm4111_vm11 = vweird.f32 %v4104_v37 }
0x28c0   : > { %v5076_v38 = vpop.eup %5075 }
0x28c1   : > { %v4106_v14 = vmul.f32 %v5076_v38, %v4104_v37  ;;  %vm4112_vm10 = vweird.f32 %v5076_v38 }
0x28c2   : > { %vm4113_vm12 = vmor %vm4111_vm11, %vm4112_vm10 }
0x28c3   : > { %v4107_v39 = vmul.f32 %v5076_v38, %v4106_v14 }
0x28c5   : > { %v4108_v40 = vmul.f32 0.5, %v4107_v39 }
0x28c7   : > { %v4109_v41 = vsub.f32 1.5, %v4108_v40 }
0x28c9   : > { %v4110_v45 = vmul.f32 %v5076_v38, %v4109_v41 }
0x28cb   : > { %v4114_v47 = vsel %vm4113_vm12, %v5076_v38, %v4110_v45 }
0x28cc   : > { %v4115_v49 = vmul.f32 %v4114_v47, %v4098_v33 }
0x28ce   : > { %v4117_v42 = vmul.f32 %v4116_v46, %v4115_v49 }
0x28d0   : > { %v4119_v30 = vadd.f32 %v4118_v50, %v4117_v42 }
0x28d2   : > { %v4121_v51 = vsel %vm1401_vm2, %v4119_v30, 0.0 }
0x28d3   : > { %4122 = vadd.xlane.f32.xlu2 %v4121_v51 }
0x2946   : > { %v4123_v57 = vpop.xlane.xlu2 %4122 }
0x2947   : > { %v4124_v53 = vmul.f32 %v4123_v57, %v6397_v31 }
0x2949   : > { %v4125_v54 = vsub.f32 %v4119_v30, %v4124_v53 }
0x294b   : > { %v4126_v55 = vmul.f32 %v4125_v54, %v4125_v54 }
0x294d   : > { %v4127_v56 = vsel %vm1401_vm2, %v4126_v55, 0.0 }
0x294e   : > { %4128 = vadd.xlane.f32.xlu1 %v4127_v56 }
0x29c1   : > { %v4129_v62 = vpop.xlane.xlu1 %4128 }
0x29c2   : > { %v4130_v63 = vmul.f32 %v4129_v62, %v6397_v31 }
0x29c4   : > { %v4131_v0 = vadd.f32 1e-05, %v4130_v63 }
0x29c6   : > { %5077 = vrsqrt.f32 %v4131_v0  ;;  %vm4138_vm14 = vweird.f32 %v4131_v0 }
0x29cc   : > { %v5078_v1 = vpop.eup %5077 }
0x29cd   : > { %v4133_v2 = vmul.f32 %v5078_v1, %v4131_v0  ;;  %vm4139_vm13 = vweird.f32 %v5078_v1 }
0x29ce   : > { %vm4140_vm15 = vmor %vm4138_vm14, %vm4139_vm13 }
0x29cf   : > { %v4134_v3 = vmul.f32 %v5078_v1, %v4133_v2 }
0x29d1   : > { %v4135_v4 = vmul.f32 0.5, %v4134_v3 }
0x29d3   : > { %v4136_v6 = vsub.f32 1.5, %v4135_v4 }
0x29d5   : > { %v4137_v7 = vmul.f32 %v5078_v1, %v4136_v6 }
0x29d7   : > { %v4141_v9 = vsel %vm4140_vm15, %v5078_v1, %v4137_v7 }
0x29d8   : > { %v4142_v11 = vmul.f32 %v4141_v9, %v4125_v54 }
0x29da   : > { %v4144_v31 = vmul.f32 %v4143_v8, %v4142_v11 }
0x29dc   : > { %v4146_v13 = vadd.f32 %v4145_v12, %v4144_v31 }
0x29de   : > { %v4153_v15 = vrot.slane %v4146_v13, 7 }
0x29e0   : > { %4657 = vmatmul.msk.f32.vlgmr.msrb.gmra.mxu0 %vm1401_vm2, %v4153_v15 }
0x2a5d   : > { %v4173_v17 = vpop.f32.mrf.mxu0 }
0x2a5e   : > { %v4174_v18 = vadd.f32 %v4173_v17, %v4151_v16 }
0x2a60   : > { %4177 = vst.msk [vmem:[%s1352_s23] sm:$0x1] %vm4176_vm0, %v4174_v18 }
0x2a61   : > { %5646 = shalt.err (!%p5643_p1)
}
0x2a62   : > { %4732 = dma.vmem_to_hbm [thread:$0]  (%p6018_p5), %s4190_s22, 16, %s4192_s11, %s4179_s26  }
0x2a63 PF: > { %s7065_s3 = sld [smem:[#allocation74_spill]] }
0x2a64   : > { %s7066_s14 = sld [smem:[#allocation71_spill]] }
0x2a69   : > { %p4829_p2 = scmp.ge.s32.totalorder %s7065_s3, 2 }
0x2a6a   : > { %s4203_s0 = sand.u32 1, %s7066_s14  }
0x2a6b   : > { %p4790_p3 = pnand %p4829_p2, %p6022_p6  ;;  %s4204_s2 = scalar_lea.sflag [#allocation4], %s4203_s0 }
0x2a6d   : > { %p4791_p4 = pneg %p4790_p3 }
0x2a6f   : > { %5704 = dma.done.wait (%p4791_p4), %s4204_s2, 16  }
0x2a70   : > { %5706 = vsyncadd (%p4791_p4), %s4204_s2, 4294967280  ;;  %s7068_s0 = sld [smem:[#allocation75_spill]] }
0x2a71   : > { %s7069_s22 = sld [smem:[#allocation72_spill]] }
0x2a72   : > { %s7070_s23 = sld [smem:[#allocation73_spill]] }
0x2a73   : > { %s7071_s26 = sld [smem:[#allocation76_spill]] }
0x2a76   : > { %p91_p7 = scmp.ge.s32.totalorder %s7068_s0, 4  }
0x2a78   :  { %93 = sbr.rel (!%p91_p7) target bundleno = 81 (0x51), region = 330 }
0x2a7d   :  { %4209 = vsyncpa [#allocation3], 1 }
0x2a7e   :  { %4211 = vsyncpa [#allocation3 + $0x1], 1 }
0x2a7f   :  { %4212 = vsyncpa [#allocation6], 1 }
0x2a80   :  { %4213 = vsyncpa [#allocation9], 1 }
0x2a81   :  { %4214 = vsyncpa [#allocation12], 1 }
0x2a82   :  { %4215 = vsyncpa [#allocation15], 1 }
0x2a83   :  { %4216 = vsyncpa [#allocation18], 1 }
0x2a84   :  { %4217 = vsyncpa [#allocation21], 1 }
0x2a85   :  { %4218 = vsyncpa [#allocation24], 1 }
0x2a86   :  { %4219 = vsyncpa [#allocation27], 1 }
0x2a87   :  { %4220 = vsyncpa [#allocation30], 1 }
0x2a88   :  { %4221 = vsyncpa [#allocation4], 1 }
0x2a89   :  { %4223 = vsyncpa [#allocation4 + $0x1], 1 }

</bundles_post_ra>
